<compile_context>
chip_gen: v5e
topology: v5e:2x2
jax: 0.10.0
libtpu: 0.0.40
codegen_flags: <defaults>
</compile_context>

<pallas_src>
import jax
import jax.numpy as jnp
from jax.experimental import pallas as pl
from jax.experimental.pallas import tpu as pltpu

CH_IN = 64    # channels of each child input
C_MID = 128   # channels after the 1x1 children
C_OUT = 64    # channels after `second`
BN_EPS = 1e-5


# ---------------------------------------------------------------------------
# Kernel
# ---------------------------------------------------------------------------
def _make_adj_encoder_kernel(H, W):
    Hp, Wp = H + 2, W + 2
    QP = Hp * Wp          # flattened padded spatial extent (lane axis)
    M = Wp + 1            # max |tap offset| of the 3x3 conv -> scratch margin

    def kernel(x_ref, mask_ref, w1_ref, b1_ref, w2_ref, b2_ref, o_ref, act_ref):
        # x_ref:    (1, 4*CH_IN, QP) bf16   spatially padded, children concatenated
        # mask_ref: (1, QP)           f32   1.0 on interior pixels, 0.0 on the pad border
        # w1_ref:   (C_MID, 4*CH_IN)  bf16  folded 1x1 weights (bn1..4, bn11 folded in)
        # b1_ref:   (C_MID, 1)        f32   folded stage-1 bias
        # w2_ref:   (9, C_OUT, C_MID) bf16  folded 3x3 weights (bn12 folded in)
        # b2_ref:   (C_OUT, 1)        f32   folded stage-2 bias
        # o_ref:    (1, C_OUT, QP)    f32   output on the padded grid (border discarded)
        # act_ref:  (C_MID, QP+2*M)   f32   VMEM scratch: margin-padded activation

        # ---- Stage 1: fused 1x1 children + BN + ReLU (single MXU matmul, K=256) ----
        x = x_ref[0]                                                    # (256, QP) bf16
        s = jnp.dot(w1_ref[...], x, preferred_element_type=jnp.float32)  # (128, QP) f32
        s = jnp.maximum(s + b1_ref[...], 0.0)
        # Zero the activation on padded-border pixels: the 3x3 conv's padding applies
        # to the *activation*, not to the raw inputs.
        act = s * mask_ref[...]                                         # (128, QP) f32

        # ---- Stage 2: 3x3 conv as 9 shifted matmuls on the flattened padded grid ----
        zeros_m = jnp.zeros((C_MID, M), jnp.float32)
        act_ref[:, 0:M] = zeros_m                  # left margin
        act_ref[:, M + QP:] = zeros_m              # right margin
        act_ref[:, M:M + QP] = act                 # activation body

        acc = jnp.zeros((C_OUT, QP), jnp.float32)
        for kh in range(3):
            for kw in range(3):
                off = (kh - 1) * Wp + (kw - 1)     # constant lane shift for this tap
                tap = act_ref[:, M + off:M + off + QP].astype(jnp.bfloat16)
                acc = acc + jnp.dot(w2_ref[kh * 3 + kw], tap,
                                    preferred_element_type=jnp.float32)

        acc = jnp.maximum(acc + b2_ref[...], 0.0)
        o_ref[0] = acc.astype(o_ref.dtype)

    return kernel, QP, M


# ---------------------------------------------------------------------------
# Parameter folding (done ONCE, outside the forward path)
# ---------------------------------------------------------------------------
def fold_params(params, eps=BN_EPS):
    def bn_scale_shift(bn):
        s = bn["gamma"] / jnp.sqrt(bn["var"] + eps)
        return s, bn["beta"] - s * bn["mean"]     # y = s*x + t

    s1, t1 = bn_scale_shift(params["bn1"])
    s2, t2 = bn_scale_shift(params["bn2"])
    s3, t3 = bn_scale_shift(params["bn3"])
    s4, t4 = bn_scale_shift(params["bn4"])
    s11, t11 = bn_scale_shift(params["bn11"])
    s12, t12 = bn_scale_shift(params["bn12"])

    child_w = [params["child1_w"], params["child2_w"],
               params["child3_w"], params["child4_w"]]
    child_s = [s1, s2, s3, s4]
    # Fold per-child BN scale and bn11 scale into the 1x1 weights; concatenate along
    # the input-channel axis (matches the [c1|c2|c3|c4] concatenation in the wrapper).
    w1_cols = [(s11 * si)[:, None] * w[:, :, 0, 0] for si, w in zip(child_s, child_w)]
    w1_fold = jnp.concatenate(w1_cols, axis=1)                       # (128, 256)

    bias_sum = s1 * params["child1_b"] + t1 + t2 + t3 + t4           # child2..4 no bias
    b1_fold = s11 * bias_sum + t11                                   # (128,)

    w2 = params["second_w"]                                          # (64, 128, 3, 3)
    w2_fold = jnp.stack([s12[:, None] * w2[:, :, kh, kw]
                         for kh in range(3) for kw in range(3)], axis=0)  # (9, 64, 128)
    b2_fold = s12 * params["second_b"] + t12                         # (64,)

    return {
        "w1": w1_fold.astype(jnp.bfloat16),
        "b1": b1_fold.reshape(C_MID, 1).astype(jnp.float32),
        "w2": w2_fold.astype(jnp.bfloat16),
        "b2": b2_fold.reshape(C_OUT, 1).astype(jnp.float32),
    }


# ---------------------------------------------------------------------------
# Forward wrapper
# ---------------------------------------------------------------------------
def adj_encoder_forward(c1, c2, c3, c4, folded):
    """c1..c4: (B, 64, H, W) f32.  Returns (B, 64, H, W) f32 (NCHW)."""
    B, C, H, W = c1.shape
    assert C == CH_IN and c2.shape == c1.shape and c3.shape == c1.shape and c4.shape == c1.shape
    Hp, Wp = H + 2, W + 2

    kernel, QP, M = _make_adj_encoder_kernel(H, W)

    # Concatenate children on the channel axis and zero-pad spatially once, so the
    # kernel works on a lane-dense flattened padded grid.  Inputs go to bf16 (MXU
    # native, halves the DMA stream); accumulation stays f32 in-kernel.
    x = jnp.concatenate([c1, c2, c3, c4], axis=1)                    # (B, 256, H, W)
    x = jnp.pad(x, ((0, 0), (0, 0), (1, 1), (1, 1)))                 # (B, 256, Hp, Wp)
    x = x.reshape(B, 4 * CH_IN, QP).astype(jnp.bfloat16)

    # Interior mask on the padded grid (1 inside, 0 on the pad border).
    hp = jnp.arange(Hp)[:, None]
    wp = jnp.arange(Wp)[None, :]
    interior = (hp >= 1) & (hp <= H) & (wp >= 1) & (wp <= W)
    mask = interior.reshape(1, QP).astype(jnp.float32)

    grid_spec = pltpu.PrefetchScalarGridSpec(
        num_scalar_prefetch=0,
        grid=(B,),
        in_specs=[
            pl.BlockSpec((1, 4 * CH_IN, QP), lambda b: (b, 0, 0)),     # per-image input
            pl.BlockSpec((1, QP), lambda b: (0, 0)),                   # mask  (resident)
            pl.BlockSpec((C_MID, 4 * CH_IN), lambda b: (0, 0)),        # w1    (resident)
            pl.BlockSpec((C_MID, 1), lambda b: (0, 0)),                # b1    (resident)
            pl.BlockSpec((9, C_OUT, C_MID), lambda b: (0, 0, 0)),      # w2    (resident)
            pl.BlockSpec((C_OUT, 1), lambda b: (0, 0)),                # b2    (resident)
        ],
        out_specs=pl.BlockSpec((1, C_OUT, QP), lambda b: (b, 0, 0)),
        scratch_shapes=[pltpu.VMEM((C_MID, QP + 2 * M), jnp.float32)],
    )

    out_p = pl.pallas_call(
        kernel,
        out_shape=jax.ShapeDtypeStruct((B, C_OUT, QP), jnp.float32),
        grid_spec=grid_spec,
        compiler_params=pltpu.CompilerParams(dimension_semantics=("parallel",)),
    )(x, mask, folded["w1"], folded["b1"], folded["w2"], folded["b2"])

    # Drop the pad border and return NCHW.
    out_p = out_p.reshape(B, C_OUT, Hp, Wp)
    return out_p[:, :, 1:H + 1, 1:W + 1]


# ---------------------------------------------------------------------------
# Deterministic parameters + pure-JAX reference
# ---------------------------------------------------------------------------
def init_params(key):
    ks = list(jax.random.split(key, 32))
    idx = [0]

    def nk():
        k = ks[idx[0]]
        idx[0] += 1
        return k

    def conv_w(shape):
        fan_in = shape[1] * shape[2] * shape[3]
        return jax.random.normal(nk(), shape, jnp.float32) / jnp.sqrt(fan_in)

    def bn_p(c):
        return {
            "gamma": 1.0 + 0.1 * jax.random.normal(nk(), (c,), jnp.float32),
            "beta": 0.1 * jax.random.normal(nk(), (c,), jnp.float32),
            "mean": 0.1 * jax.random.normal(nk(), (c,), jnp.float32),
            "var": 1.0 + 0.1 * jnp.abs(jax.random.normal(nk(), (c,), jnp.float32)),
        }

    return {
        "child1_w": conv_w((C_MID, CH_IN, 1, 1)),
        "child1_b": 0.1 * jax.random.normal(nk(), (C_MID,), jnp.float32),
        "child2_w": conv_w((C_MID, CH_IN, 1, 1)),
        "child3_w": conv_w((C_MID, CH_IN, 1, 1)),
        "child4_w": conv_w((C_MID, CH_IN, 1, 1)),
        "second_w": conv_w((C_OUT, C_MID, 3, 3)),
        "second_b": 0.1 * jax.random.normal(nk(), (C_OUT,), jnp.float32),
        "bn1": bn_p(C_MID), "bn2": bn_p(C_MID), "bn3": bn_p(C_MID), "bn4": bn_p(C_MID),
        "bn11": bn_p(C_MID), "bn12": bn_p(C_OUT),
    }


def reference_forward(c1, c2, c3, c4, params, eps=BN_EPS):
    def bn(x, p):
        s = p["gamma"] / jnp.sqrt(p["var"] + eps)
        t = p["beta"] - s * p["mean"]
        return x * s[None, :, None, None] + t[None, :, None, None]

    def conv1x1(x, w, b=None):
        y = jnp.einsum("bchw,oc->bohw", x, w[:, :, 0, 0])
        if b is not None:
            y = y + b[None, :, None, None]
        return y

    out = bn(conv1x1(c1, params["child1_w"], params["child1_b"]), params["bn1"])
    out = out + bn(conv1x1(c2, params["child2_w"]), params["bn2"])
    out = out + bn(conv1x1(c3, params["child3_w"]), params["bn3"])
    out = out + bn(conv1x1(c4, params["child4_w"]), params["bn4"])
    out = bn(out, params["bn11"])
    out = jnp.maximum(out, 0.0)                       # module's "elu" is nn.ReLU()
    out = jax.lax.conv_general_dilated(
        out, params["second_w"], window_strides=(1, 1), padding=((1, 1), (1, 1)),
        dimension_numbers=("NCHW", "OIHW", "NCHW"))
    out = out + params["second_b"][None, :, None, None]
    out = bn(out, params["bn12"])
    return jnp.maximum(out, 0.0)


if __name__ == "__main__":
    key = jax.random.PRNGKey(0)
    kp, k1, k2, k3, k4 = jax.random.split(key, 5)
    params = init_params(kp)
    folded = fold_params(params)

    B, H, W = 2, 16, 16
    c1 = jax.random.normal(k1, (B, CH_IN, H, W), jnp.float32)
    c2 = jax.random.normal(k2, (B, CH_IN, H, W), jnp.float32)
    c3 = jax.random.normal(k3, (B, CH_IN, H, W), jnp.float32)
    c4 = jax.random.normal(k4, (B, CH_IN, H, W), jnp.float32)

    out = adj_encoder_forward(c1, c2, c3, c4, folded)
    out = jax.block_until_ready(out)

    ref = reference_forward(c1, c2, c3, c4, params)
    assert out.shape == (B, C_OUT, H, W), out.shape
    assert bool(jnp.allclose(out, ref, atol=5e-2, rtol=5e-2)), (
        "mismatch vs JAX reference; max abs diff = "
        f"{float(jnp.max(jnp.abs(out - ref)))}")

    print("KERNEL_OK")
</pallas_src>

<mosaic_0001>
module attributes {stable_mosaic.version = 11 : i64} {
  func.func @kernel(%arg0: i32, %arg1: memref<1x256x324xbf16, #tpu.memory_space<vmem>>, %arg2: memref<1x324xf32, #tpu.memory_space<vmem>>, %arg3: memref<128x256xbf16, #tpu.memory_space<vmem>>, %arg4: memref<128x1xf32, #tpu.memory_space<vmem>>, %arg5: memref<9x64x128xbf16, #tpu.memory_space<vmem>>, %arg6: memref<64x1xf32, #tpu.memory_space<vmem>>, %arg7: memref<1x64x324xf32, #tpu.memory_space<vmem>>, %arg8: memref<128x362xf32, #tpu.memory_space<vmem>>) attributes {dimension_semantics = [#tpu.dimension_semantics<parallel>], iteration_bounds = array<i64: 2>, scalar_prefetch = 0 : i64, scratch_operands = 1 : i64, tpu.core_type = #tpu.core_type<tc>, window_params = [{transform_indices = @transform_0, window_bounds = array<i64: 1, 256, 324>}, {pipeline_mode = #tpu.pipeline_mode<synchronous>, transform_indices = @transform_1, window_bounds = array<i64: 1, 324>}, {pipeline_mode = #tpu.pipeline_mode<synchronous>, transform_indices = @transform_2, window_bounds = array<i64: 128, 256>}, {pipeline_mode = #tpu.pipeline_mode<synchronous>, transform_indices = @transform_3, window_bounds = array<i64: 128, 1>}, {pipeline_mode = #tpu.pipeline_mode<synchronous>, transform_indices = @transform_4, window_bounds = array<i64: 9, 64, 128>}, {pipeline_mode = #tpu.pipeline_mode<synchronous>, transform_indices = @transform_5, window_bounds = array<i64: 64, 1>}, {transform_indices = @transform_6, window_bounds = array<i64: 1, 64, 324>}]} {
    %c0 = arith.constant 0 : index
    %c0_0 = arith.constant 0 : index
    %c0_1 = arith.constant 0 : index
    %0 = vector.load %arg1[%c0, %c0_0, %c0_1] : memref<1x256x324xbf16, #tpu.memory_space<vmem>>, vector<1x256x324xbf16>
    %1 = vector.shape_cast %0 : vector<1x256x324xbf16> to vector<256x324xbf16>
    %c0_2 = arith.constant 0 : index
    %c0_3 = arith.constant 0 : index
    %2 = vector.load %arg3[%c0_2, %c0_3] : memref<128x256xbf16, #tpu.memory_space<vmem>>, vector<128x256xbf16>
    %cst = arith.constant dense<0.000000e+00> : vector<128x324xf32>
    %3 = tpu.matmul %2, %1, %cst {dimension_numbers = #tpu.dot_dimension_numbers<[1], [0], [0], [1], [0, 0, 1, 1], [], []>} : vector<128x256xbf16>, vector<256x324xbf16>, vector<128x324xf32> -> vector<128x324xf32>
    %c0_4 = arith.constant 0 : index
    %c0_5 = arith.constant 0 : index
    %4 = vector.load %arg4[%c0_4, %c0_5] : memref<128x1xf32, #tpu.memory_space<vmem>>, vector<128x1xf32>
    %5 = vector.broadcast %4 : vector<128x1xf32> to vector<128x324xf32>
    %6 = arith.addf %3, %5 : vector<128x324xf32>
    %cst_6 = arith.constant 0.000000e+00 : f32
    %7 = vector.broadcast %cst_6 : f32 to vector<128x324xf32>
    %8 = arith.maximumf %6, %7 : vector<128x324xf32>
    %c0_7 = arith.constant 0 : index
    %c0_8 = arith.constant 0 : index
    %9 = vector.load %arg2[%c0_7, %c0_8] : memref<1x324xf32, #tpu.memory_space<vmem>>, vector<1x324xf32>
    %10 = vector.broadcast %9 : vector<1x324xf32> to vector<128x324xf32>
    %11 = arith.mulf %8, %10 : vector<128x324xf32>
    %cst_9 = arith.constant 0.000000e+00 : f32
    %12 = vector.broadcast %cst_9 : f32 to vector<128x19xf32>
    %c0_10 = arith.constant 0 : index
    %c0_11 = arith.constant 0 : index
    %13 = vector.load %arg8[%c0_10, %c0_11] : memref<128x362xf32, #tpu.memory_space<vmem>>, vector<128x19xf32>
    tpu.vector_store %arg8[%c0_10, %c0_11], %12 {strides = array<i32>} : memref<128x362xf32, #tpu.memory_space<vmem>>, vector<128x19xf32>,
    %c0_12 = arith.constant 0 : index
    %c343 = arith.constant 343 : index
    %14 = vector.load %arg8[%c0_12, %c343] : memref<128x362xf32, #tpu.memory_space<vmem>>, vector<128x19xf32>
    tpu.vector_store %arg8[%c0_12, %c343], %12 {strides = array<i32>} : memref<128x362xf32, #tpu.memory_space<vmem>>, vector<128x19xf32>,
    %c0_13 = arith.constant 0 : index
    %c19 = arith.constant 19 : index
    %15 = vector.load %arg8[%c0_13, %c19] : memref<128x362xf32, #tpu.memory_space<vmem>>, vector<128x324xf32>
    tpu.vector_store %arg8[%c0_13, %c19], %11 {strides = array<i32>} : memref<128x362xf32, #tpu.memory_space<vmem>>, vector<128x324xf32>,
    %cst_14 = arith.constant 0.000000e+00 : f32
    %16 = vector.broadcast %cst_14 : f32 to vector<64x324xf32>
    %c0_15 = arith.constant 0 : index
    %c0_16 = arith.constant 0 : index
    %17 = vector.load %arg8[%c0_15, %c0_16] : memref<128x362xf32, #tpu.memory_space<vmem>>, vector<128x324xf32>
    %18 = arith.truncf %17 : vector<128x324xf32> to vector<128x324xbf16>
    %c0_17 = arith.constant 0 : index
    %c0_18 = arith.constant 0 : index
    %c0_19 = arith.constant 0 : index
    %19 = vector.load %arg5[%c0_17, %c0_18, %c0_19] : memref<9x64x128xbf16, #tpu.memory_space<vmem>>, vector<1x64x128xbf16>
    %20 = vector.shape_cast %19 : vector<1x64x128xbf16> to vector<64x128xbf16>
    %cst_20 = arith.constant dense<0.000000e+00> : vector<64x324xf32>
    %21 = tpu.matmul %20, %18, %cst_20 {dimension_numbers = #tpu.dot_dimension_numbers<[1], [0], [0], [1], [0, 0, 1, 1], [], []>} : vector<64x128xbf16>, vector<128x324xbf16>, vector<64x324xf32> -> vector<64x324xf32>
    %22 = arith.addf %16, %21 : vector<64x324xf32>
    %c0_21 = arith.constant 0 : index
    %c1 = arith.constant 1 : index
    %23 = vector.load %arg8[%c0_21, %c1] : memref<128x362xf32, #tpu.memory_space<vmem>>, vector<128x324xf32>
    %24 = arith.truncf %23 : vector<128x324xf32> to vector<128x324xbf16>
    %c1_22 = arith.constant 1 : index
    %c0_23 = arith.constant 0 : index
    %c0_24 = arith.constant 0 : index
    %25 = vector.load %arg5[%c1_22, %c0_23, %c0_24] : memref<9x64x128xbf16, #tpu.memory_space<vmem>>, vector<1x64x128xbf16>
    %26 = vector.shape_cast %25 : vector<1x64x128xbf16> to vector<64x128xbf16>
    %cst_25 = arith.constant dense<0.000000e+00> : vector<64x324xf32>
    %27 = tpu.matmul %26, %24, %cst_25 {dimension_numbers = #tpu.dot_dimension_numbers<[1], [0], [0], [1], [0, 0, 1, 1], [], []>} : vector<64x128xbf16>, vector<128x324xbf16>, vector<64x324xf32> -> vector<64x324xf32>
    %28 = arith.addf %22, %27 : vector<64x324xf32>
    %c0_26 = arith.constant 0 : index
    %c2 = arith.constant 2 : index
    %29 = vector.load %arg8[%c0_26, %c2] : memref<128x362xf32, #tpu.memory_space<vmem>>, vector<128x324xf32>
    %30 = arith.truncf %29 : vector<128x324xf32> to vector<128x324xbf16>
    %c2_27 = arith.constant 2 : index
    %c0_28 = arith.constant 0 : index
    %c0_29 = arith.constant 0 : index
    %31 = vector.load %arg5[%c2_27, %c0_28, %c0_29] : memref<9x64x128xbf16, #tpu.memory_space<vmem>>, vector<1x64x128xbf16>
    %32 = vector.shape_cast %31 : vector<1x64x128xbf16> to vector<64x128xbf16>
    %cst_30 = arith.constant dense<0.000000e+00> : vector<64x324xf32>
    %33 = tpu.matmul %32, %30, %cst_30 {dimension_numbers = #tpu.dot_dimension_numbers<[1], [0], [0], [1], [0, 0, 1, 1], [], []>} : vector<64x128xbf16>, vector<128x324xbf16>, vector<64x324xf32> -> vector<64x324xf32>
    %34 = arith.addf %28, %33 : vector<64x324xf32>
    %c0_31 = arith.constant 0 : index
    %c18 = arith.constant 18 : index
    %35 = vector.load %arg8[%c0_31, %c18] : memref<128x362xf32, #tpu.memory_space<vmem>>, vector<128x324xf32>
    %36 = arith.truncf %35 : vector<128x324xf32> to vector<128x324xbf16>
    %c3 = arith.constant 3 : index
    %c0_32 = arith.constant 0 : index
    %c0_33 = arith.constant 0 : index
    %37 = vector.load %arg5[%c3, %c0_32, %c0_33] : memref<9x64x128xbf16, #tpu.memory_space<vmem>>, vector<1x64x128xbf16>
    %38 = vector.shape_cast %37 : vector<1x64x128xbf16> to vector<64x128xbf16>
    %cst_34 = arith.constant dense<0.000000e+00> : vector<64x324xf32>
    %39 = tpu.matmul %38, %36, %cst_34 {dimension_numbers = #tpu.dot_dimension_numbers<[1], [0], [0], [1], [0, 0, 1, 1], [], []>} : vector<64x128xbf16>, vector<128x324xbf16>, vector<64x324xf32> -> vector<64x324xf32>
    %40 = arith.addf %34, %39 : vector<64x324xf32>
    %c0_35 = arith.constant 0 : index
    %c19_36 = arith.constant 19 : index
    %41 = vector.load %arg8[%c0_35, %c19_36] : memref<128x362xf32, #tpu.memory_space<vmem>>, vector<128x324xf32>
    %42 = arith.truncf %41 : vector<128x324xf32> to vector<128x324xbf16>
    %c4 = arith.constant 4 : index
    %c0_37 = arith.constant 0 : index
    %c0_38 = arith.constant 0 : index
    %43 = vector.load %arg5[%c4, %c0_37, %c0_38] : memref<9x64x128xbf16, #tpu.memory_space<vmem>>, vector<1x64x128xbf16>
    %44 = vector.shape_cast %43 : vector<1x64x128xbf16> to vector<64x128xbf16>
    %cst_39 = arith.constant dense<0.000000e+00> : vector<64x324xf32>
    %45 = tpu.matmul %44, %42, %cst_39 {dimension_numbers = #tpu.dot_dimension_numbers<[1], [0], [0], [1], [0, 0, 1, 1], [], []>} : vector<64x128xbf16>, vector<128x324xbf16>, vector<64x324xf32> -> vector<64x324xf32>
    %46 = arith.addf %40, %45 : vector<64x324xf32>
    %c0_40 = arith.constant 0 : index
    %c20 = arith.constant 20 : index
    %47 = vector.load %arg8[%c0_40, %c20] : memref<128x362xf32, #tpu.memory_space<vmem>>, vector<128x324xf32>
    %48 = arith.truncf %47 : vector<128x324xf32> to vector<128x324xbf16>
    %c5 = arith.constant 5 : index
    %c0_41 = arith.constant 0 : index
    %c0_42 = arith.constant 0 : index
    %49 = vector.load %arg5[%c5, %c0_41, %c0_42] : memref<9x64x128xbf16, #tpu.memory_space<vmem>>, vector<1x64x128xbf16>
    %50 = vector.shape_cast %49 : vector<1x64x128xbf16> to vector<64x128xbf16>
    %cst_43 = arith.constant dense<0.000000e+00> : vector<64x324xf32>
    %51 = tpu.matmul %50, %48, %cst_43 {dimension_numbers = #tpu.dot_dimension_numbers<[1], [0], [0], [1], [0, 0, 1, 1], [], []>} : vector<64x128xbf16>, vector<128x324xbf16>, vector<64x324xf32> -> vector<64x324xf32>
    %52 = arith.addf %46, %51 : vector<64x324xf32>
    %c0_44 = arith.constant 0 : index
    %c36 = arith.constant 36 : index
    %53 = vector.load %arg8[%c0_44, %c36] : memref<128x362xf32, #tpu.memory_space<vmem>>, vector<128x324xf32>
    %54 = arith.truncf %53 : vector<128x324xf32> to vector<128x324xbf16>
    %c6 = arith.constant 6 : index
    %c0_45 = arith.constant 0 : index
    %c0_46 = arith.constant 0 : index
    %55 = vector.load %arg5[%c6, %c0_45, %c0_46] : memref<9x64x128xbf16, #tpu.memory_space<vmem>>, vector<1x64x128xbf16>
    %56 = vector.shape_cast %55 : vector<1x64x128xbf16> to vector<64x128xbf16>
    %cst_47 = arith.constant dense<0.000000e+00> : vector<64x324xf32>
    %57 = tpu.matmul %56, %54, %cst_47 {dimension_numbers = #tpu.dot_dimension_numbers<[1], [0], [0], [1], [0, 0, 1, 1], [], []>} : vector<64x128xbf16>, vector<128x324xbf16>, vector<64x324xf32> -> vector<64x324xf32>
    %58 = arith.addf %52, %57 : vector<64x324xf32>
    %c0_48 = arith.constant 0 : index
    %c37 = arith.constant 37 : index
    %59 = vector.load %arg8[%c0_48, %c37] : memref<128x362xf32, #tpu.memory_space<vmem>>, vector<128x324xf32>
    %60 = arith.truncf %59 : vector<128x324xf32> to vector<128x324xbf16>
    %c7 = arith.constant 7 : index
    %c0_49 = arith.constant 0 : index
    %c0_50 = arith.constant 0 : index
    %61 = vector.load %arg5[%c7, %c0_49, %c0_50] : memref<9x64x128xbf16, #tpu.memory_space<vmem>>, vector<1x64x128xbf16>
    %62 = vector.shape_cast %61 : vector<1x64x128xbf16> to vector<64x128xbf16>
    %cst_51 = arith.constant dense<0.000000e+00> : vector<64x324xf32>
    %63 = tpu.matmul %62, %60, %cst_51 {dimension_numbers = #tpu.dot_dimension_numbers<[1], [0], [0], [1], [0, 0, 1, 1], [], []>} : vector<64x128xbf16>, vector<128x324xbf16>, vector<64x324xf32> -> vector<64x324xf32>
    %64 = arith.addf %58, %63 : vector<64x324xf32>
    %c0_52 = arith.constant 0 : index
    %c38 = arith.constant 38 : index
    %65 = vector.load %arg8[%c0_52, %c38] : memref<128x362xf32, #tpu.memory_space<vmem>>, vector<128x324xf32>
    %66 = arith.truncf %65 : vector<128x324xf32> to vector<128x324xbf16>
    %c8 = arith.constant 8 : index
    %c0_53 = arith.constant 0 : index
    %c0_54 = arith.constant 0 : index
    %67 = vector.load %arg5[%c8, %c0_53, %c0_54] : memref<9x64x128xbf16, #tpu.memory_space<vmem>>, vector<1x64x128xbf16>
    %68 = vector.shape_cast %67 : vector<1x64x128xbf16> to vector<64x128xbf16>
    %cst_55 = arith.constant dense<0.000000e+00> : vector<64x324xf32>
    %69 = tpu.matmul %68, %66, %cst_55 {dimension_numbers = #tpu.dot_dimension_numbers<[1], [0], [0], [1], [0, 0, 1, 1], [], []>} : vector<64x128xbf16>, vector<128x324xbf16>, vector<64x324xf32> -> vector<64x324xf32>
    %70 = arith.addf %64, %69 : vector<64x324xf32>
    %c0_56 = arith.constant 0 : index
    %c0_57 = arith.constant 0 : index
    %71 = vector.load %arg6[%c0_56, %c0_57] : memref<64x1xf32, #tpu.memory_space<vmem>>, vector<64x1xf32>
    %72 = vector.broadcast %71 : vector<64x1xf32> to vector<64x324xf32>
    %73 = arith.addf %70, %72 : vector<64x324xf32>
    %cst_58 = arith.constant 0.000000e+00 : f32
    %74 = vector.broadcast %cst_58 : f32 to vector<64x324xf32>
    %75 = arith.maximumf %73, %74 : vector<64x324xf32>
    %c0_59 = arith.constant 0 : index
    %c0_60 = arith.constant 0 : index
    %c0_61 = arith.constant 0 : index
    %76 = vector.load %arg7[%c0_59, %c0_60, %c0_61] : memref<1x64x324xf32, #tpu.memory_space<vmem>>, vector<1x64x324xf32>
    %77 = vector.shape_cast %76 : vector<1x64x324xf32> to vector<64x324xf32>
    %78 = vector.shape_cast %75 : vector<64x324xf32> to vector<1x64x324xf32>
    tpu.vector_store %arg7[%c0_59, %c0_60, %c0_61], %78 {strides = array<i32>} : memref<1x64x324xf32, #tpu.memory_space<vmem>>, vector<1x64x324xf32>,
    return
  }
  func.func @transform_0(%arg0: i32) -> (i32, i32, i32) {
    %c0_i32 = arith.constant 0 : i32
    %c0_i32_0 = arith.constant 0 : i32
    %c0_i32_1 = arith.constant 0 : i32
    return %arg0, %c0_i32, %c0_i32_0 : i32, i32, i32
  }
  func.func @transform_1(%arg0: i32) -> (i32, i32) {
    %c0_i32 = arith.constant 0 : i32
    %c0_i32_0 = arith.constant 0 : i32
    %c0_i32_1 = arith.constant 0 : i32
    return %c0_i32, %c0_i32_0 : i32, i32
  }
  func.func @transform_2(%arg0: i32) -> (i32, i32) {
    %c0_i32 = arith.constant 0 : i32
    %c0_i32_0 = arith.constant 0 : i32
    %c0_i32_1 = arith.constant 0 : i32
    return %c0_i32, %c0_i32_0 : i32, i32
  }
  func.func @transform_3(%arg0: i32) -> (i32, i32) {
    %c0_i32 = arith.constant 0 : i32
    %c0_i32_0 = arith.constant 0 : i32
    %c0_i32_1 = arith.constant 0 : i32
    return %c0_i32, %c0_i32_0 : i32, i32
  }
  func.func @transform_4(%arg0: i32) -> (i32, i32, i32) {
    %c0_i32 = arith.constant 0 : i32
    %c0_i32_0 = arith.constant 0 : i32
    %c0_i32_1 = arith.constant 0 : i32
    %c0_i32_2 = arith.constant 0 : i32
    return %c0_i32, %c0_i32_0, %c0_i32_1 : i32, i32, i32
  }
  func.func @transform_5(%arg0: i32) -> (i32, i32) {
    %c0_i32 = arith.constant 0 : i32
    %c0_i32_0 = arith.constant 0 : i32
    %c0_i32_1 = arith.constant 0 : i32
    return %c0_i32, %c0_i32_0 : i32, i32
  }
  func.func @transform_6(%arg0: i32) -> (i32, i32, i32) {
    %c0_i32 = arith.constant 0 : i32
    %c0_i32_0 = arith.constant 0 : i32
    %c0_i32_1 = arith.constant 0 : i32
    return %arg0, %c0_i32, %c0_i32_0 : i32, i32, i32
  }
}

</mosaic_0001>

<bundles_post_ra>
// kernel: tpu_custom_call.1
= control target key start
LH: loop header
LB: loop body
LE: loop exit
PB: predicated region body
PF: predicated region fallthrough
CT: control target
= control target key end

     0   :  { %11 = vsyncpa [#allocation4], 0  ;;  %s7044_s0 = inlined_call_operand.vmem [shape: bf16[2,256,324], index: 0, kind: input, shape index: {}]   ;;  %s7045_s1 = inlined_call_operand.vmem [shape: f32[1,324], index: 1, kind: input, shape index: {}]   ;;  %s7046_s2 = inlined_call_operand.vmem [shape: bf16[128,256], index: 2, kind: input, shape index: {}]   ;;  %s7047_s3 = inlined_call_operand.vmem [shape: f32[128,1], index: 3, kind: input, shape index: {}]   ;;  %s7048_s4 = inlined_call_operand.vmem [shape: bf16[9,64,128], index: 4, kind: input, shape index: {}]   ;;  %s7049_s5 = inlined_call_operand.vmem [shape: f32[64,1], index: 5, kind: input, shape index: {}]   ;;  %s7050_s6 = inlined_call_operand.hbm [shape: f32[2,64,324], index: 6, kind: output, shape index: {}]  }
   0x1   :  { %13 = vsyncpa [#allocation4 + $0x1], 0  ;;  %s4488_s21 = smov 0   ;;  %s4490_s22 = smov 0  }
   0x2   :  { %s4492_s23 = smov 0   ;;  %s4494_s24 = smov 0  }
   0x3 LB: > { %s4509_s25 = sadd.s32 4294967295, %s4438_s24   ;;  %s3722_s26 = sadd.s32 4294967294, %s4438_s24   ;;  %s4438_s24 = sphi %s4494_s24, %s7136_s24   ;;  %s4434_s23 = sphi %s4492_s23, %s7135_s23   ;;  %s4430_s22 = sphi %s4490_s22, %s7134_s22   ;;  %s4426_s21 = sphi %s4488_s21, %s7133_s21  }
   0x4   : > { %s4513_s27 = sadd.s32 1, %s4438_s24   ;;  %s157_s28 = sadd.s32 1, %s4434_s23 }
   0x5   : > { %s154_s29 = ssub.s32 %s4438_s24, %s4513_s27  ;;  %p167_p0 = scmp.ne.s32.totalorder %s4434_s23, %s4430_s22 }
   0x6   : > { %p155_p1 = scmp.eq.s32.totalorder %s154_s29, 0  ;;  %p168_p2 = scmp.eq.s32.totalorder %s4509_s25, 1 }
   0x7   : > { %p173_p3 = scmp.ne.s32.totalorder %s4430_s22, %s4426_s21  ;;  %p174_p4 = scmp.eq.s32.totalorder %s3722_s26, 1 }
   0x8   : > { %s4524_s30 = scalar_select %p155_p1, %s4434_s23, %s157_s28  }
   0x9   : > { %p4526_p5 = por %p168_p2, %p167_p0  ;;  %p4530_p6 = por %p174_p4, %p173_p3 }
   0xa   : > { %p3725_p7 = scmp.ge.s32.totalorder %s4438_s24, 1  ;;  %p215_p8 = scmp.lt.s32.totalorder %s4438_s24, 3 }
   0xc   : > { %p216_p9 = pnand %p3725_p7, %p215_p8 }
   0xe   : > { %219 = sbr.rel (%p216_p9) target bundleno = 1348 (0x544), region = 44 }
  0x13   : > { %p245_p10 = scmp.lt.s32.totalorder %s4509_s25, 1  ;;  %s4441_s12 = smov 19   ;;  %vm1160_vm0 = vcmask 154624   ;;  %vm1418_vm1 = vcmask 1047704   ;;  %vm1177_vm2 = vcmask 868024   ;;  %vm1421_vm3 = vcmask 711680  }
  0x14   : > { %s4443_s14 = smov 127   ;;  %vm1653_vm4 = vcmask 1039360   ;;  %s4444_s15 = smov 126   ;;  %vm1973_vm5 = vcmask 1031168   ;;  %vm2206_vm6 = vcmask 900096   ;;  %vm2439_vm7 = vcmask 891904  }
  0x15   : > { %s246_s9 = scalar_select %p245_p10, %s4509_s25, 1  ;;  %vm2672_vm8 = vcmask 883712   ;;  %vm2905_vm9 = vcmask 752640   ;;  %vm3138_vm10 = vcmask 744448   ;;  %vm3371_vm11 = vcmask 736256  }
  0x16   : > { %s4445_s16 = smov 110   ;;  %s4446_s18 = smov 109   ;;  %vm3621_vm12 = vcmask 556032  }
  0x17   : > { %s4319_s10 = smul.u32 384, %s246_s9  ;;  %s4449_s29 = smov 91  }
  0x18   : > { %s242_s20 = sand.u32 1, %s4430_s22   ;;  %s4320_s28 = smul.u32 192, %s4509_s25 }
  0x19   : > { %s4541_s13 = scalar_lea.vmem %s7044_s0, %s4319_s10  ;;  %s4448_s10 = smov 92  }
  0x1a   : > { %v3877_v0 = vld [vmem:[%s4541_s13 + $0xa8] sm:$0xf]  ;;  %v4216_v1 = vld [vmem:[%s4541_s13 + $0xb0] sm:$0xf0]  ;;  %v4215_v5 = vld [vmem:[%s4541_s13 + $0xac] sm:$0xf]  ;;  %s3656_s9 = scalar_lea.hbm %s7050_s6, %s4320_s28 }
  0x1b   : > { %v3973_v2 = vld [vmem:[%s4541_s13 + $0x168] sm:$0xf]  ;;  %v3878_v3 = vor.u32 %v4216_v1, %v3877_v0  ;;  %v4240_v4 = vld [vmem:[%s4541_s13 + $0x170] sm:$0xf0]  ;;  %v3879_v6 = vld [vmem:[%s4541_s13 + $0xb4] sm:$0xf0] }
  0x1c   : > { %v3974_v7 = vor.u32 %v4240_v4, %v3973_v2  ;;  %v3882_v8 = vor.u32 %v4215_v5, %v3879_v6  ;;  %v4239_v9 = vld [vmem:[%s4541_s13 + $0x16c] sm:$0xf]  ;;  %v3975_v10 = vld [vmem:[%s4541_s13 + $0x174] sm:$0xf0]  ;;  %v3865_v11 = vld [vmem:[%s4541_s13 + $0x90] sm:$0xf] }
  0x1d   : > { %762 = vmatpush.bf16.msra.mxu0 %v3878_v3  ;;  %v3978_v12 = vor.u32 %v4239_v9, %v3975_v10  ;;  %v4213_v13 = vld [vmem:[%s4541_s13 + $0x98] sm:$0xf0]  ;;  %v3961_v14 = vld [vmem:[%s4541_s13 + $0x150] sm:$0xf]  ;;  %v4212_v18 = vld [vmem:[%s4541_s13 + $0x94] sm:$0xf] }
  0x1e   : > { %v4237_v15 = vld [vmem:[%s4541_s13 + $0x158] sm:$0xf0]  ;;  %811 = vmatpush.bf16.msra.mxu1 %v3974_v7  ;;  %860 = vmatpush.bf16.msra.mxu2 %v3882_v8  ;;  %v3866_v16 = vor.u32 %v4213_v13, %v3865_v11  ;;  %v3867_v19 = vld [vmem:[%s4541_s13 + $0x9c] sm:$0xf0]  ;;  %v4236_v20 = vld [vmem:[%s4541_s13 + $0x154] sm:$0xf] }
  0x1f   : > { %v3962_v17 = vor.u32 %v4237_v15, %v3961_v14  ;;  %909 = vmatpush.bf16.msra.mxu3 %v3978_v12  ;;  %v3870_v21 = vor.u32 %v4212_v18, %v3867_v19  ;;  %v3963_v22 = vld [vmem:[%s4541_s13 + $0x15c] sm:$0xf0]  ;;  %v3853_v23 = vld [vmem:[%s4541_s13 + $0x78] sm:$0xf]  ;;  %v4210_v24 = vld [vmem:[%s4541_s13 + $0x80] sm:$0xf0] }
  0x20   : > { %v3966_v25 = vor.u32 %v4236_v20, %v3963_v22  ;;  %v3949_v26 = vld [vmem:[%s4541_s13 + $0x138] sm:$0xf]  ;;  %v4234_v27 = vld [vmem:[%s4541_s13 + $0x140] sm:$0xf0]  ;;  %v4209_v28 = vld [vmem:[%s4541_s13 + $0x7c] sm:$0xf]  ;;  %v3854_v29 = vor.u32 %v4210_v24, %v3853_v23 }
  0x21   : > { %763 = vmatpush.bf16.msra.mxu0 %v3866_v16  ;;  %v3855_v30 = vld [vmem:[%s4541_s13 + $0x84] sm:$0xf0]  ;;  %v4233_v31 = vld [vmem:[%s4541_s13 + $0x13c] sm:$0xf]  ;;  %v3950_v33 = vor.u32 %v4234_v27, %v3949_v26  ;;  %v3841_v35 = vld [vmem:[%s4541_s13 + $0x60] sm:$0xf] }
  0x22   : > { %v3951_v32 = vld [vmem:[%s4541_s13 + $0x144] sm:$0xf0]  ;;  %812 = vmatpush.bf16.msra.mxu1 %v3962_v17  ;;  %861 = vmatpush.bf16.msra.mxu2 %v3870_v21  ;;  %v3858_v34 = vor.u32 %v4209_v28, %v3855_v30  ;;  %v4207_v36 = vld [vmem:[%s4541_s13 + $0x68] sm:$0xf0]  ;;  %v3937_v37 = vld [vmem:[%s4541_s13 + $0x120] sm:$0xf] }
  0x23   : > { %910 = vmatpush.bf16.msra.mxu3 %v3966_v25  ;;  %v3954_v38 = vor.u32 %v4233_v31, %v3951_v32  ;;  %v4231_v39 = vld [vmem:[%s4541_s13 + $0x128] sm:$0xf0]  ;;  %v4206_v40 = vld [vmem:[%s4541_s13 + $0x64] sm:$0xf]  ;;  %v3843_v41 = vld [vmem:[%s4541_s13 + $0x6c] sm:$0xf0]  ;;  %v3842_v44 = vor.u32 %v4207_v36, %v3841_v35 }
  0x24   : > { %v4230_v42 = vld [vmem:[%s4541_s13 + $0x124] sm:$0xf]  ;;  %v3939_v43 = vld [vmem:[%s4541_s13 + $0x12c] sm:$0xf0]  ;;  %v3938_v45 = vor.u32 %v4231_v39, %v3937_v37  ;;  %v3846_v46 = vor.u32 %v4206_v40, %v3843_v41  ;;  %v3829_v47 = vld [vmem:[%s4541_s13 + $0x48] sm:$0xf] }
  0x25   : > { %764 = vmatpush.bf16.msra.mxu0 %v3854_v29  ;;  %v4204_v48 = vld [vmem:[%s4541_s13 + $0x50] sm:$0xf0]  ;;  %v3925_v49 = vld [vmem:[%s4541_s13 + $0x108] sm:$0xf]  ;;  %v3942_v50 = vor.u32 %v4230_v42, %v3939_v43  ;;  %v4203_v52 = vld [vmem:[%s4541_s13 + $0x4c] sm:$0xf] }
  0x26   : > { %813 = vmatpush.bf16.msra.mxu1 %v3950_v33  ;;  %862 = vmatpush.bf16.msra.mxu2 %v3858_v34  ;;  %v4228_v51 = vld [vmem:[%s4541_s13 + $0x110] sm:$0xf0]  ;;  %v3831_v53 = vld [vmem:[%s4541_s13 + $0x54] sm:$0xf0]  ;;  %v4227_v54 = vld [vmem:[%s4541_s13 + $0x10c] sm:$0xf]  ;;  %v3830_v56 = vor.u32 %v4204_v48, %v3829_v47 }
  0x27   : > { %911 = vmatpush.bf16.msra.mxu3 %v3954_v38  ;;  %v3927_v55 = vld [vmem:[%s4541_s13 + $0x114] sm:$0xf0]  ;;  %v3926_v57 = vor.u32 %v4228_v51, %v3925_v49  ;;  %v3834_v58 = vor.u32 %v4203_v52, %v3831_v53  ;;  %v3817_v59 = vld [vmem:[%s4541_s13 + $0x30] sm:$0xf]  ;;  %v4201_v60 = vld [vmem:[%s4541_s13 + $0x38] sm:$0xf0] }
  0x28   : > { %v3913_v61 = vld [vmem:[%s4541_s13 + $0xf0] sm:$0xf]  ;;  %v3930_v62 = vor.u32 %v4227_v54, %v3927_v55  ;;  %v4225_v63 = vld [vmem:[%s4541_s13 + $0xf8] sm:$0xf0]  ;;  %v4200_v0 = vld [vmem:[%s4541_s13 + $0x34] sm:$0xf]  ;;  %v3818_v4 = vor.u32 %v4201_v60, %v3817_v59 }
  0x29   : > { %765 = vmatpush.bf16.msra.mxu0 %v3842_v44  ;;  %v3819_v1 = vld [vmem:[%s4541_s13 + $0x3c] sm:$0xf0]  ;;  %v4224_v2 = vld [vmem:[%s4541_s13 + $0xf4] sm:$0xf]  ;;  %v3914_v5 = vor.u32 %v4225_v63, %v3913_v61  ;;  %v3805_v7 = vld [vmem:[%s4541_s13 + $0x18] sm:$0xf] }
  0x2a   : > { %814 = vmatpush.bf16.msra.mxu1 %v3938_v45  ;;  %863 = vmatpush.bf16.msra.mxu2 %v3846_v46  ;;  %v3915_v3 = vld [vmem:[%s4541_s13 + $0xfc] sm:$0xf0]  ;;  %v3822_v6 = vor.u32 %v4200_v0, %v3819_v1  ;;  %v4198_v8 = vld [vmem:[%s4541_s13 + $0x20] sm:$0xf0]  ;;  %v3901_v9 = vld [vmem:[%s4541_s13 + $0xd8] sm:$0xf] }
  0x2b   : > { %912 = vmatpush.bf16.msra.mxu3 %v3942_v50  ;;  %v3918_v10 = vor.u32 %v4224_v2, %v3915_v3  ;;  %v4222_v11 = vld [vmem:[%s4541_s13 + $0xe0] sm:$0xf0]  ;;  %v4197_v12 = vld [vmem:[%s4541_s13 + $0x1c] sm:$0xf]  ;;  %v3807_v13 = vld [vmem:[%s4541_s13 + $0x24] sm:$0xf0]  ;;  %v3806_v17 = vor.u32 %v4198_v8, %v3805_v7 }
  0x2c   : > { %v4221_v14 = vld [vmem:[%s4541_s13 + $0xdc] sm:$0xf]  ;;  %v3903_v15 = vld [vmem:[%s4541_s13 + $0xe4] sm:$0xf0]  ;;  %v330_v16 = vld [vmem:[%s7047_s3] sm:$0xff]  ;;  %v4440_v19 = vmov 0   ;;  %v3902_v20 = vor.u32 %v4222_v11, %v3901_v9  ;;  %v3810_v21 = vor.u32 %v4197_v12, %v3807_v13 }
  0x2d   : > { %766 = vmatpush.bf16.msra.mxu0 %v3830_v56  ;;  %v3793_v18 = vld [vmem:[%s4541_s13] sm:$0xf]  ;;  %4373 = vset.pattern.permute.xlu0 %v4440_v19  ;;  %v4195_v22 = vld [vmem:[%s4541_s13 + $0x8] sm:$0xf0]  ;;  %v332_v24 = vld [vmem:[%s7047_s3 + $0x10] sm:$0xff]  ;;  %v3906_v25 = vor.u32 %v4221_v14, %v3903_v15  ;;  %s4318_s26 = smul.u32 192, %s242_s20 }
  0x2e   : > { %815 = vmatpush.bf16.msra.mxu1 %v3926_v57  ;;  %864 = vmatpush.bf16.msra.mxu2 %v3834_v58  ;;  %v3889_v23 = vld [vmem:[%s4541_s13 + $0xc0] sm:$0xf]  ;;  %v4219_v26 = vld [vmem:[%s4541_s13 + $0xc8] sm:$0xf0]  ;;  %v4194_v27 = vld [vmem:[%s4541_s13 + $0x4] sm:$0xf]  ;;  %v3794_v31 = vor.u32 %v4195_v22, %v3793_v18 }
  0x2f   : > { %913 = vmatpush.bf16.msra.mxu3 %v3930_v62  ;;  %v3795_v28 = vld [vmem:[%s4541_s13 + $0xc] sm:$0xf0]  ;;  %348 = vperm.xlu0 %4373, %v330_v16   ;;  %v4218_v29 = vld [vmem:[%s4541_s13 + $0xc4] sm:$0xf]  ;;  %v3729_v32 = vld [vmem:[%s7046_s2] sm:$0xf]  ;;  %v3890_v34 = vor.u32 %v4219_v26, %v3889_v23 }
  0x30   : > { %v3891_v30 = vld [vmem:[%s4541_s13 + $0xcc] sm:$0xf0]  ;;  %4374 = vset.pattern.permute.xlu1 %v4440_v19  ;;  %4375 = vset.pattern.permute.xlu2 %v4440_v19  ;;  %v4243_v33 = vld [vmem:[%s7046_s2 + $0x4] sm:$0xf0]  ;;  %v3798_v35 = vor.u32 %v4194_v27, %v3795_v28  ;;  %v4242_v36 = vld [vmem:[%s7046_s2 + $0x4] sm:$0xf] }
  0x31   : > { %767 = vmatpush.bf16.msra.mxu0 %v3818_v4  ;;  %358 = vperm.xlu1 %4374, %v332_v24   ;;  %v3731_v37 = vld [vmem:[%s7046_s2 + $0x8] sm:$0xf0]  ;;  %v3894_v38 = vor.u32 %v4218_v29, %v3891_v30  ;;  %v4625_v39 = vor.u32 %v4243_v33, %v3729_v32  ;;  %v333_v42 = vld [vmem:[%s7047_s3 + $0x18] sm:$0xff]  ;;  %v3737_v43 = vld [vmem:[%s7046_s2 + $0x10] sm:$0xf] }
  0x32   : > { %816 = vmatpush.bf16.msra.mxu1 %v3914_v5  ;;  %865 = vmatpush.bf16.msra.mxu2 %v3822_v6  ;;  %v331_v40 = vld [vmem:[%s7047_s3 + $0x8] sm:$0xff]  ;;  %v4630_v41 = vor.u32 %v4242_v36, %v3731_v37  ;;  %v4245_v44 = vld [vmem:[%s7046_s2 + $0x14] sm:$0xf0]  ;;  %v4244_v45 = vld [vmem:[%s7046_s2 + $0x14] sm:$0xf] }
  0x33   : > { %914 = vmatpush.bf16.msra.mxu3 %v3918_v10  ;;  %v3739_v46 = vld [vmem:[%s7046_s2 + $0x18] sm:$0xf0]  ;;  %v4651_v47 = vor.u32 %v4245_v44, %v3737_v43  ;;  %v336_v49 = vld [vmem:[%s7047_s3 + $0x30] sm:$0xff]  ;;  %v3745_v50 = vld [vmem:[%s7046_s2 + $0x20] sm:$0xf] }
  0x34   : > { %v4653_v48 = vor.u32 %v4244_v45, %v3739_v46  ;;  %v4247_v51 = vld [vmem:[%s7046_s2 + $0x24] sm:$0xf0]  ;;  %v4246_v52 = vld [vmem:[%s7046_s2 + $0x24] sm:$0xf]  ;;  %v3747_v53 = vld [vmem:[%s7046_s2 + $0x28] sm:$0xf0] }
  0x35   : > { %768 = vmatpush.bf16.msra.mxu0 %v3806_v17  ;;  %v4674_v54 = vor.u32 %v4247_v51, %v3745_v50  ;;  %v4676_v55 = vor.u32 %v4246_v52, %v3747_v53  ;;  %v334_v56 = vld [vmem:[%s7047_s3 + $0x20] sm:$0xff]  ;;  %v337_v57 = vld [vmem:[%s7047_s3 + $0x38] sm:$0xff]  ;;  %v335_v58 = vld [vmem:[%s7047_s3 + $0x28] sm:$0xff] }
  0x36   : > { %817 = vmatpush.bf16.msra.mxu1 %v3902_v20  ;;  %866 = vmatpush.bf16.msra.mxu2 %v3810_v21  ;;  %v3753_v59 = vld [vmem:[%s7046_s2 + $0x30] sm:$0xf]  ;;  %v4249_v60 = vld [vmem:[%s7046_s2 + $0x34] sm:$0xf0]  ;;  %v4248_v61 = vld [vmem:[%s7046_s2 + $0x34] sm:$0xf] }
  0x37   : > { %915 = vmatpush.bf16.msra.mxu3 %v3906_v25  ;;  %353 = vperm.xlu0 %4373, %v331_v40   ;;  %v3755_v62 = vld [vmem:[%s7046_s2 + $0x38] sm:$0xf0]  ;;  %v4703_v63 = vor.u32 %v4249_v60, %v3753_v59  ;;  %v339_v1 = vld [vmem:[%s7047_s3 + $0x48] sm:$0xff]  ;;  %v340_v2 = vld [vmem:[%s7047_s3 + $0x50] sm:$0xff] }
  0x38   : > { %368 = vperm.xlu2 %4375, %v334_v56   ;;  %v4705_v0 = vor.u32 %v4248_v61, %v3755_v62  ;;  %v3885_v3 = vld [vmem:[%s4541_s13 + $0xb0] sm:$0xf]  ;;  %v4217_v4 = vld [vmem:[%s4541_s13 + $0xb8] sm:$0xf0]  ;;  %v3761_v6 = vld [vmem:[%s7046_s2 + $0x40] sm:$0xf] }
  0x39   : > { %769 = vmatpush.bf16.msra.mxu0 %v3794_v31  ;;  %363 = vperm.xlu1 %4374, %v333_v42   ;;  %v3886_v5 = vor.u32 %v4217_v4, %v3885_v3  ;;  %v4251_v7 = vld [vmem:[%s7046_s2 + $0x44] sm:$0xf0]  ;;  %v4250_v8 = vld [vmem:[%s7046_s2 + $0x44] sm:$0xf]  ;;  %v3763_v9 = vld [vmem:[%s7046_s2 + $0x48] sm:$0xf0] }
  0x3a   : > { %818 = vmatpush.bf16.msra.mxu1 %v3890_v34  ;;  %867 = vmatpush.bf16.msra.mxu2 %v3798_v35  ;;  %v4731_v10 = vor.u32 %v4251_v7, %v3761_v6  ;;  %v4733_v11 = vor.u32 %v4250_v8, %v3763_v9  ;;  %v3981_v12 = vld [vmem:[%s4541_s13 + $0x170] sm:$0xf]  ;;  %v4241_v13 = vld [vmem:[%s4541_s13 + $0x178] sm:$0xf0]  ;;  %v338_v15 = vld [vmem:[%s7047_s3 + $0x40] sm:$0xff] }
  0x3b   : > { %916 = vmatpush.bf16.msra.mxu3 %v3894_v38  ;;  %v3982_v14 = vor.u32 %v4241_v13, %v3981_v12  ;;  %v3873_v16 = vld [vmem:[%s4541_s13 + $0x98] sm:$0xf]  ;;  %v4214_v17 = vld [vmem:[%s4541_s13 + $0xa0] sm:$0xf0]  ;;  %v3861_v21 = vld [vmem:[%s4541_s13 + $0x80] sm:$0xf] }
  0x3c   : > { %770 = vmatmul.bf16.vlgmr.msra.gmra.mxu0 %v4625_v39  ;;  %v3874_v18 = vor.u32 %v4214_v17, %v3873_v16  ;;  %v3969_v19 = vld [vmem:[%s4541_s13 + $0x158] sm:$0xf]  ;;  %v4238_v20 = vld [vmem:[%s4541_s13 + $0x160] sm:$0xf0]  ;;  %v4211_v23 = vld [vmem:[%s4541_s13 + $0x88] sm:$0xf0] }
  0x3d   : > { %819 = vmatmul.bf16.vlgmr.msra.gmra.mxu1 %v4630_v41  ;;  %868 = vmatmul.bf16.vlgmr.msra.gmra.mxu2 %v4625_v39  ;;  %v3970_v22 = vor.u32 %v4238_v20, %v3969_v19  ;;  %v3957_v24 = vld [vmem:[%s4541_s13 + $0x140] sm:$0xf]  ;;  %v4235_v25 = vld [vmem:[%s4541_s13 + $0x148] sm:$0xf0]  ;;  %v3862_v26 = vor.u32 %v4211_v23, %v3861_v21  ;;  %v344_v27 = vld [vmem:[%s7047_s3 + $0x70] sm:$0xff] }
  0x3e   : > { %917 = vmatmul.bf16.vlgmr.msra.gmra.mxu3 %v4630_v41  ;;  %958 = vmatpush.bf16.msrb.mxu0 %v3886_v5  ;;  %v3958_v28 = vor.u32 %v4235_v25, %v3957_v24  ;;  %v3849_v29 = vld [vmem:[%s4541_s13 + $0x68] sm:$0xf]  ;;  %v4208_v30 = vld [vmem:[%s4541_s13 + $0x70] sm:$0xf0]  ;;  %v3769_v33 = vld [vmem:[%s7046_s2 + $0x50] sm:$0xf] }
  0x3f   : > { %378 = vperm.xlu0 %4373, %v336_v49   ;;  %1007 = vmatpush.bf16.msrb.mxu1 %v3982_v14  ;;  %v3945_v31 = vld [vmem:[%s4541_s13 + $0x128] sm:$0xf]  ;;  %v4232_v32 = vld [vmem:[%s4541_s13 + $0x130] sm:$0xf0]  ;;  %v4253_v34 = vld [vmem:[%s7046_s2 + $0x54] sm:$0xf0]  ;;  %v3850_v35 = vor.u32 %v4208_v30, %v3849_v29 }
  0x40   : > { %373 = vperm.xlu2 %4375, %v335_v58   ;;  %v4252_v36 = vld [vmem:[%s7046_s2 + $0x54] sm:$0xf]  ;;  %v3771_v37 = vld [vmem:[%s7046_s2 + $0x58] sm:$0xf0]  ;;  %v3946_v38 = vor.u32 %v4232_v32, %v3945_v31  ;;  %v4771_v40 = vor.u32 %v4253_v34, %v3769_v33  ;;  %v3837_v43 = vld [vmem:[%s4541_s13 + $0x50] sm:$0xf] }
  0x41   : > { %383 = vperm.xlu1 %4374, %v337_v57   ;;  %v4773_v42 = vor.u32 %v4252_v36, %v3771_v37  ;;  %v4205_v44 = vld [vmem:[%s4541_s13 + $0x58] sm:$0xf0]  ;;  %v3933_v45 = vld [vmem:[%s4541_s13 + $0x110] sm:$0xf]  ;;  %v343_v51 = vld [vmem:[%s7047_s3 + $0x68] sm:$0xff] }
  0x42   : > { %959 = vmatpush.bf16.msrb.mxu0 %v3874_v18  ;;  %v3838_v46 = vor.u32 %v4205_v44, %v3837_v43  ;;  %v4229_v49 = vld [vmem:[%s4541_s13 + $0x118] sm:$0xf0]  ;;  %v3825_v52 = vld [vmem:[%s4541_s13 + $0x38] sm:$0xf]  ;;  %v4202_v53 = vld [vmem:[%s4541_s13 + $0x40] sm:$0xf0] }
  0x43   : > { %1008 = vmatpush.bf16.msrb.mxu1 %v3970_v22  ;;  %v3934_v50 = vor.u32 %v4229_v49, %v3933_v45  ;;  %v3826_v56 = vor.u32 %v4202_v53, %v3825_v52  ;;  %v3921_v57 = vld [vmem:[%s4541_s13 + $0xf8] sm:$0xf]  ;;  %v4226_v58 = vld [vmem:[%s4541_s13 + $0x100] sm:$0xf0]  ;;  %v3813_v59 = vld [vmem:[%s4541_s13 + $0x20] sm:$0xf] }
  0x44   : > { %v3922_v60 = vor.u32 %v4226_v58, %v3921_v57  ;;  %v4199_v61 = vld [vmem:[%s4541_s13 + $0x28] sm:$0xf0]  ;;  %v3909_v62 = vld [vmem:[%s4541_s13 + $0xe0] sm:$0xf]  ;;  %v4255_v6 = vld [vmem:[%s7046_s2 + $0x64] sm:$0xf0] }
  0x45   : > { %v3814_v3 = vor.u32 %v4199_v61, %v3813_v59  ;;  %v3777_v5 = vld [vmem:[%s7046_s2 + $0x60] sm:$0xf]  ;;  %v4254_v7 = vld [vmem:[%s7046_s2 + $0x64] sm:$0xf]  ;;  %v3779_v8 = vld [vmem:[%s7046_s2 + $0x68] sm:$0xf0] }
  0x46   : > { %960 = vmatpush.bf16.msrb.mxu0 %v3862_v26  ;;  %v3801_v9 = vld [vmem:[%s4541_s13 + $0x8] sm:$0xf]  ;;  %v4196_v12 = vld [vmem:[%s4541_s13 + $0x10] sm:$0xf0]  ;;  %v4812_v14 = vor.u32 %v4255_v6, %v3777_v5  ;;  %v4815_v17 = vor.u32 %v4254_v7, %v3779_v8  ;;  %v345_v19 = vld [vmem:[%s7047_s3 + $0x78] sm:$0xff] }
  0x47   : > { %393 = vperm.xlu0 %4373, %v339_v1   ;;  %1009 = vmatpush.bf16.msrb.mxu1 %v3958_v28  ;;  %v4223_v1 = vld [vmem:[%s4541_s13 + $0xe8] sm:$0xf0]  ;;  %v3897_v13 = vld [vmem:[%s4541_s13 + $0xc8] sm:$0xf]  ;;  %v4220_v16 = vld [vmem:[%s4541_s13 + $0xd0] sm:$0xf0] }
  0x48   : > { %388 = vperm.xlu2 %4375, %v338_v15   ;;  %v3910_v4 = vor.u32 %v4223_v1, %v3909_v62  ;;  %v3802_v15 = vor.u32 %v4196_v12, %v3801_v9  ;;  %v3898_v18 = vor.u32 %v4220_v16, %v3897_v13  ;;  %v342_v20 = vld [vmem:[%s7047_s3 + $0x60] sm:$0xff]  ;;  %v3785_v21 = vld [vmem:[%s7046_s2 + $0x70] sm:$0xf]  ;;  %v4257_v22 = vld [vmem:[%s7046_s2 + $0x74] sm:$0xf0]  ;;  %s4447_s13 = smov 108  }
  0x49   : > { %398 = vperm.xlu1 %4374, %v340_v2   ;;  %v341_v2 = vld [vmem:[%s7047_s3 + $0x58] sm:$0xff]  ;;  %v4256_v23 = vld [vmem:[%s7046_s2 + $0x74] sm:$0xf]  ;;  %v4839_v25 = vor.u32 %v4257_v22, %v3785_v21  ;;  %v4852_v29 = vld [vmem:[%s7045_s1] sm:$0x7] }
  0x4a   : > { %961 = vmatpush.bf16.msrb.mxu0 %v3850_v35  ;;  %v3787_v24 = vld [vmem:[%s7046_s2 + $0x78] sm:$0xf0]  ;;  %v4856_v33 = vperm.slane %v4852_v29, 0 }
  0x4b   : > { %1010 = vmatpush.bf16.msrb.mxu1 %v3946_v38  ;;  %v4841_v26 = vor.u32 %v4256_v23, %v3787_v24 }
  0x4c   : > { %775 = vmatmul.bf16.gmra.mxu0 %v4651_v47 }
  0x4d   : > { %824 = vmatmul.bf16.gmra.mxu1 %v4653_v48  ;;  %873 = vmatmul.bf16.gmra.mxu2 %v4651_v47 }
  0x4e   : > { %922 = vmatmul.bf16.gmra.mxu3 %v4653_v48  ;;  %962 = vmatpush.bf16.msrb.mxu0 %v3838_v46 }
  0x4f   : > { %418 = vperm.xlu0 %4373, %v344_v27   ;;  %1011 = vmatpush.bf16.msrb.mxu1 %v3934_v50 }
  0x50   : > { %403 = vperm.xlu2 %4375, %v341_v2  }
  0x51   : > { %423 = vperm.xlu1 %4374, %v345_v19  }
  0x52   : > { %963 = vmatpush.bf16.msrb.mxu0 %v3826_v56 }
  0x53   : > { %1012 = vmatpush.bf16.msrb.mxu1 %v3922_v60 }
  0x56   : > { %964 = vmatpush.bf16.msrb.mxu0 %v3814_v3 }
  0x57   : > { %413 = vperm.xlu0 %4373, %v343_v51   ;;  %1013 = vmatpush.bf16.msrb.mxu1 %v3910_v4 }
  0x58   : > { %408 = vperm.xlu2 %4375, %v342_v20  }
  0x5a   : > { %965 = vmatpush.bf16.msrb.mxu0 %v3802_v15 }
  0x5b   : > { %1014 = vmatpush.bf16.msrb.mxu1 %v3898_v18 }
  0x5c   : > { %780 = vmatmul.bf16.gmra.mxu0 %v4674_v54 }
  0x5d   : > { %829 = vmatmul.bf16.gmra.mxu1 %v4676_v55  ;;  %878 = vmatmul.bf16.gmra.mxu2 %v4674_v54 }
  0x5e   : > { %927 = vmatmul.bf16.gmra.mxu3 %v4676_v55 }
  0x6c   : > { %785 = vmatmul.bf16.gmra.mxu0 %v4703_v63 }
  0x6d   : > { %834 = vmatmul.bf16.gmra.mxu1 %v4705_v0  ;;  %883 = vmatmul.bf16.gmra.mxu2 %v4703_v63 }
  0x6e   : > { %932 = vmatmul.bf16.gmra.mxu3 %v4705_v0 }
  0x7c   : > { %790 = vmatmul.bf16.gmra.mxu0 %v4731_v10 }
  0x7d   : > { %839 = vmatmul.bf16.gmra.mxu1 %v4733_v11  ;;  %888 = vmatmul.bf16.gmra.mxu2 %v4731_v10 }
  0x7e   : > { %937 = vmatmul.bf16.gmra.mxu3 %v4733_v11 }
  0x8c   : > { %795 = vmatmul.bf16.gmra.mxu0 %v4771_v40 }
  0x8d   : > { %844 = vmatmul.bf16.gmra.mxu1 %v4773_v42  ;;  %893 = vmatmul.bf16.gmra.mxu2 %v4771_v40 }
  0x8e   : > { %942 = vmatmul.bf16.gmra.mxu3 %v4773_v42 }
  0x92   : > { %v4889_v19 = vpop.permute.xlu2 %368 }
  0x9c   : > { %800 = vmatmul.bf16.gmra.mxu0 %v4812_v14 }
  0x9d   : > { %849 = vmatmul.bf16.gmra.mxu1 %v4815_v17  ;;  %898 = vmatmul.bf16.gmra.mxu2 %v4812_v14 }
  0x9e   : > { %947 = vmatmul.bf16.gmra.mxu3 %v4815_v17 }
  0xa1   : > { %v4847_v27 = vpop.permute.xlu0 %348 }
  0xa3   : > { %v4869_v51 = vpop.permute.xlu1 %358 }
  0xa9   : > { %v4860_v35 = vpop.permute.xlu0 %353 }
  0xab   : > { %v4879_v5 = vpop.permute.xlu1 %363 }
  0xac   : > { %805 = vmatmul.bf16.gmra.mxu0 %v4839_v25 }
  0xad   : > { %854 = vmatmul.bf16.gmra.mxu1 %v4841_v26  ;;  %903 = vmatmul.bf16.gmra.mxu2 %v4839_v25 }
  0xae   : > { %952 = vmatmul.bf16.gmra.mxu3 %v4841_v26 }
  0xb9   : > { %v771_v28 = vpop.f32.mrf.mxu0 }
  0xba   : > { %v772_v30 = vadd.f32 %v771_v28, %v4847_v27  ;;  %v820_v31 = vpop.f32.mrf.mxu1 }
  0xbc   : > { %v821_v32 = vadd.f32 %v820_v31, %v772_v30  ;;  %966 = vmatmul.bf16.vlgmr.msrb.gmra.mxu0 %v4625_v39  ;;  %v4867_v39 = vperm.slane %v4852_v29, 1 }
  0xbd   : > { %1015 = vmatmul.bf16.vlgmr.msrb.gmra.mxu1 %v4630_v41 }
  0xbe   : > { %v1056_v34 = vmax.f32 %v821_v32, 0.0  ;;  %v4900_v32 = vpop.permute.xlu2 %373 }
  0xc0   : > { %v1112_v36 = vmul.f32 %v4856_v33, %v1056_v34  ;;  %v869_v37 = vpop.f32.mrf.mxu2 }
  0xc1   : > { %v870_v38 = vadd.f32 %v869_v37, %v4847_v27  ;;  %v773_v43 = vpop.f32.mrf.mxu0  ;;  %v918_v44 = vpop.f32.mrf.mxu3 }
  0xc2   : > { %v774_v45 = vadd.f32 %v773_v43, %v4860_v35  ;;  %v822_v46 = vpop.f32.mrf.mxu1  ;;  %1242 = vrot.lane.b32.xlu1 %v1112_v36, %s4441_s12 }
  0xc3   : > { %v919_v49 = vadd.f32 %v918_v44, %v870_v38 }
  0xc4   : > { %v823_v41 = vadd.f32 %v822_v46, %v774_v45 }
  0xc5   : > { %v1057_v50 = vmax.f32 %v919_v49, 0.0 }
  0xc6   : > { %v1059_v52 = vmax.f32 %v823_v41, 0.0 }
  0xc7   : > { %v1113_v53 = vmul.f32 %v4867_v39, %v1057_v50  ;;  %v4907_v50 = vpop.permute.xlu0 %378 }
  0xc8   : > { %v871_v56 = vpop.f32.mrf.mxu2  ;;  %v1115_v57 = vmul.f32 %v4856_v33, %v1059_v52 }
  0xc9   : > { %v872_v58 = vadd.f32 %v871_v56, %v4860_v35  ;;  %v776_v59 = vpop.f32.mrf.mxu0  ;;  %v920_v60 = vpop.f32.mrf.mxu3  ;;  %1244 = vrot.lane.b32.xlu2 %v1113_v53, %s4441_s12 }
  0xca   : > { %v777_v61 = vadd.f32 %v776_v59, %v4869_v51  ;;  %v825_v62 = vpop.f32.mrf.mxu1  ;;  %1248 = vrot.lane.b32.xlu1 %v1115_v57, %s4441_s12 }
  0xcb   : > { %v921_v1 = vadd.f32 %v920_v60, %v872_v58 }
  0xcc   : > { %v826_v2 = vadd.f32 %v825_v62, %v777_v61  ;;  %971 = vmatmul.bf16.gmra.mxu0 %v4651_v47 }
  0xcd   : > { %v1060_v3 = vmax.f32 %v921_v1, 0.0  ;;  %1020 = vmatmul.bf16.gmra.mxu1 %v4653_v48 }
  0xce   : > { %v1062_v4 = vmax.f32 %v826_v2, 0.0 }
  0xcf   : > { %v1116_v6 = vmul.f32 %v4867_v39, %v1060_v3 }
  0xd0   : > { %v1118_v7 = vmul.f32 %v4856_v33, %v1062_v4  ;;  %v874_v8 = vpop.f32.mrf.mxu2  ;;  %v4917_v4 = vpop.permute.xlu1 %383 }
  0xd1   : > { %v875_v9 = vadd.f32 %v874_v8, %v4869_v51  ;;  %v778_v12 = vpop.f32.mrf.mxu0  ;;  %v923_v13 = vpop.f32.mrf.mxu3  ;;  %1250 = vrot.lane.b32.xlu2 %v1116_v6, %s4441_s12 }
  0xd2   : > { %v779_v15 = vadd.f32 %v778_v12, %v4879_v5  ;;  %v827_v47 = vpop.f32.mrf.mxu1  ;;  %1254 = vrot.lane.b32.xlu1 %v1118_v7, %s4441_s12 }
  0xd3   : > { %v924_v48 = vadd.f32 %v923_v13, %v875_v9 }
  0xd4   : > { %v4887_v16 = vadd.f32 %v827_v47, %v779_v15 }
  0xd5   : > { %v1063_v18 = vmax.f32 %v924_v48, 0.0 }
  0xd7   : > { %v1119_v20 = vmul.f32 %v4867_v39, %v1063_v18 }
  0xd8   : > { %v4892_v21 = vpop.f32.mrf.mxu2 }
  0xd9   : > { %v781_v22 = vpop.f32.mrf.mxu0  ;;  %v4894_v23 = vpop.f32.mrf.mxu3  ;;  %1256 = vrot.lane.b32.xlu2 %v1119_v20, %s4441_s12 }
  0xda   : > { %v782_v24 = vadd.f32 %v781_v22, %v4889_v19  ;;  %v830_v28 = vpop.f32.mrf.mxu1  ;;  %v4925_v20 = vpop.permute.xlu2 %388 }
  0xdc   : > { %v831_v30 = vadd.f32 %v830_v28, %v782_v24  ;;  %976 = vmatmul.bf16.gmra.mxu0 %v4674_v54 }
  0xdd   : > { %1025 = vmatmul.bf16.gmra.mxu1 %v4676_v55 }
  0xde   : > { %v1068_v31 = vmax.f32 %v831_v30, 0.0 }
  0xe0   : > { %v1124_v34 = vmul.f32 %v4856_v33, %v1068_v31  ;;  %v879_v36 = vpop.f32.mrf.mxu2 }
  0xe1   : > { %v880_v37 = vadd.f32 %v879_v36, %v4889_v19  ;;  %v783_v38 = vpop.f32.mrf.mxu0  ;;  %v928_v43 = vpop.f32.mrf.mxu3 }
  0xe2   : > { %v784_v44 = vadd.f32 %v783_v38, %v4900_v32  ;;  %v832_v45 = vpop.f32.mrf.mxu1  ;;  %1266 = vrot.lane.b32.xlu2 %v1124_v34, %s4441_s12 }
  0xe3   : > { %v929_v46 = vadd.f32 %v928_v43, %v880_v37 }
  0xe4   : > { %v833_v49 = vadd.f32 %v832_v45, %v784_v44 }
  0xe5   : > { %v1069_v54 = vmax.f32 %v929_v46, 0.0  ;;  %v4935_v46 = vpop.permute.xlu0 %393 }
  0xe6   : > { %v1071_v41 = vmax.f32 %v833_v49, 0.0 }
  0xe7   : > { %v1125_v55 = vmul.f32 %v4867_v39, %v1069_v54 }
  0xe8   : > { %v881_v52 = vpop.f32.mrf.mxu2  ;;  %v1127_v53 = vmul.f32 %v4856_v33, %v1071_v41 }
  0xe9   : > { %v882_v56 = vadd.f32 %v881_v52, %v4900_v32  ;;  %1268 = vrot.lane.b32.xlu0 %v1125_v55, %s4441_s12  ;;  %v786_v57 = vpop.f32.mrf.mxu0  ;;  %v930_v58 = vpop.f32.mrf.mxu3 }
  0xea   : > { %v787_v59 = vadd.f32 %v786_v57, %v4907_v50  ;;  %v835_v60 = vpop.f32.mrf.mxu1  ;;  %1272 = vrot.lane.b32.xlu2 %v1127_v53, %s4441_s12 }
  0xeb   : > { %v931_v61 = vadd.f32 %v930_v58, %v882_v56 }
  0xec   : > { %v836_v62 = vadd.f32 %v835_v60, %v787_v59  ;;  %981 = vmatmul.bf16.gmra.mxu0 %v4703_v63  ;;  %v4943_v60 = vpop.permute.xlu1 %398 }
  0xed   : > { %v1072_v1 = vmax.f32 %v931_v61, 0.0  ;;  %1030 = vmatmul.bf16.gmra.mxu1 %v4705_v0 }
  0xee   : > { %v1074_v2 = vmax.f32 %v836_v62, 0.0 }
  0xef   : > { %v1128_v3 = vmul.f32 %v4867_v39, %v1072_v1 }
  0xf0   : > { %v1130_v6 = vmul.f32 %v4856_v33, %v1074_v2  ;;  %v884_v7 = vpop.f32.mrf.mxu2 }
  0xf1   : > { %v885_v8 = vadd.f32 %v884_v7, %v4907_v50  ;;  %1274 = vrot.lane.b32.xlu0 %v1128_v3, %s4441_s12  ;;  %v788_v9 = vpop.f32.mrf.mxu0  ;;  %v933_v12 = vpop.f32.mrf.mxu3 }
  0xf2   : > { %v789_v13 = vadd.f32 %v788_v9, %v4917_v4  ;;  %v837_v63 = vpop.f32.mrf.mxu1  ;;  %1278 = vrot.lane.b32.xlu2 %v1130_v6, %s4441_s12 }
  0xf3   : > { %v934_v0 = vadd.f32 %v933_v12, %v885_v8 }
  0xf4   : > { %v838_v15 = vadd.f32 %v837_v63, %v789_v13  ;;  %v4952_v13 = vpop.permute.xlu2 %403 }
  0xf5   : > { %v1075_v47 = vmax.f32 %v934_v0, 0.0 }
  0xf6   : > { %v1077_v48 = vmax.f32 %v838_v15, 0.0 }
  0xf7   : > { %v1131_v18 = vmul.f32 %v4867_v39, %v1075_v47 }
  0xf8   : > { %v886_v22 = vpop.f32.mrf.mxu2  ;;  %v1133_v24 = vmul.f32 %v4856_v33, %v1077_v48 }
  0xf9   : > { %v887_v28 = vadd.f32 %v886_v22, %v4917_v4  ;;  %1280 = vrot.lane.b32.xlu0 %v1131_v18, %s4441_s12  ;;  %v791_v30 = vpop.f32.mrf.mxu0  ;;  %v935_v31 = vpop.f32.mrf.mxu3 }
  0xfa   : > { %v792_v34 = vadd.f32 %v791_v30, %v4925_v20  ;;  %v840_v36 = vpop.f32.mrf.mxu1  ;;  %1284 = vrot.lane.b32.xlu2 %v1133_v24, %s4441_s12 }
  0xfb   : > { %v936_v37 = vadd.f32 %v935_v31, %v887_v28  ;;  %v4960_v31 = vpop.permute.xlu0 %418 }
  0xfc   : > { %v841_v38 = vadd.f32 %v840_v36, %v792_v34  ;;  %986 = vmatmul.bf16.gmra.mxu0 %v4731_v10  ;;  %v4442_v34 = vmov 0.0  }
  0xfd   : > { %v1078_v43 = vmax.f32 %v936_v37, 0.0  ;;  %1035 = vmatmul.bf16.gmra.mxu1 %v4733_v11  ;;  %1161 = vst.msk [vmem:[#allocation2] sm:$0xff] %vm1160_vm0, %v4442_v34 }
  0xfe   : > { %v1080_v44 = vmax.f32 %v841_v38, 0.0  ;;  %1162 = vst.msk [vmem:[#allocation2 + $0x18] sm:$0xff] %vm1160_vm0, %v4442_v34  ;;  %v4967_v38 = vpop.permute.xlu2 %408 }
  0xff   : > { %v1134_v45 = vmul.f32 %v4867_v39, %v1078_v43  ;;  %1163 = vst.msk [vmem:[#allocation2 + $0x30] sm:$0xff] %vm1160_vm0, %v4442_v34 }
 0x100   : > { %v1136_v49 = vmul.f32 %v4856_v33, %v1080_v44  ;;  %v889_v54 = vpop.f32.mrf.mxu2  ;;  %1164 = vst.msk [vmem:[#allocation2 + $0x48] sm:$0xff] %vm1160_vm0, %v4442_v34 }
 0x101   : > { %v890_v41 = vadd.f32 %v889_v54, %v4925_v20  ;;  %1286 = vrot.lane.b32.xlu0 %v1134_v45, %s4441_s12  ;;  %v793_v55 = vpop.f32.mrf.mxu0  ;;  %v938_v52 = vpop.f32.mrf.mxu3  ;;  %1165 = vst.msk [vmem:[#allocation2 + $0x60] sm:$0xff] %vm1160_vm0, %v4442_v34 }
 0x102   : > { %v794_v53 = vadd.f32 %v793_v55, %v4935_v46  ;;  %v842_v10 = vpop.f32.mrf.mxu1  ;;  %1290 = vrot.lane.b32.xlu2 %v1136_v49, %s4441_s12  ;;  %1166 = vst.msk [vmem:[#allocation2 + $0x78] sm:$0xff] %vm1160_vm0, %v4442_v34 }
 0x103   : > { %v939_v11 = vadd.f32 %v938_v52, %v890_v41  ;;  %1167 = vst.msk [vmem:[#allocation2 + $0x90] sm:$0xff] %vm1160_vm0, %v4442_v34 }
 0x104   : > { %v843_v56 = vadd.f32 %v842_v10, %v794_v53  ;;  %1168 = vst.msk [vmem:[#allocation2 + $0xa8] sm:$0xff] %vm1160_vm0, %v4442_v34 }
 0x105   : > { %v1081_v57 = vmax.f32 %v939_v11, 0.0  ;;  %1169 = vst.msk [vmem:[#allocation2 + $0xc0] sm:$0xff] %vm1160_vm0, %v4442_v34 }
 0x106   : > { %v1083_v58 = vmax.f32 %v843_v56, 0.0  ;;  %1170 = vst.msk [vmem:[#allocation2 + $0xd8] sm:$0xff] %vm1160_vm0, %v4442_v34 }
 0x107   : > { %v1137_v59 = vmul.f32 %v4867_v39, %v1081_v57  ;;  %v4993_v57 = vpop.permute.xlu0 %413  ;;  %1171 = vst.msk [vmem:[#allocation2 + $0xf0] sm:$0xff] %vm1160_vm0, %v4442_v34 }
 0x108   : > { %v891_v61 = vpop.f32.mrf.mxu2  ;;  %v1139_v62 = vmul.f32 %v4856_v33, %v1083_v58  ;;  %1172 = vst.msk [vmem:[#allocation2 + $0x108] sm:$0xff] %vm1160_vm0, %v4442_v34 }
 0x109   : > { %v892_v1 = vadd.f32 %v891_v61, %v4935_v46  ;;  %1292 = vrot.lane.b32.xlu0 %v1137_v59, %s4441_s12  ;;  %v796_v2 = vpop.f32.mrf.mxu0  ;;  %v940_v3 = vpop.f32.mrf.mxu3  ;;  %1173 = vst.msk [vmem:[#allocation2 + $0x120] sm:$0xff] %vm1160_vm0, %v4442_v34 }
 0x10a   : > { %v797_v6 = vadd.f32 %v796_v2, %v4943_v60  ;;  %v845_v7 = vpop.f32.mrf.mxu1  ;;  %1296 = vrot.lane.b32.xlu2 %v1139_v62, %s4441_s12  ;;  %1174 = vst.msk [vmem:[#allocation2 + $0x138] sm:$0xff] %vm1160_vm0, %v4442_v34 }
 0x10b   : > { %v941_v8 = vadd.f32 %v940_v3, %v892_v1  ;;  %1175 = vst.msk [vmem:[#allocation2 + $0x150] sm:$0xff] %vm1160_vm0, %v4442_v34 }
 0x10c   : > { %v846_v9 = vadd.f32 %v845_v7, %v797_v6  ;;  %991 = vmatmul.bf16.gmra.mxu0 %v4771_v40  ;;  %1176 = vst.msk [vmem:[#allocation2 + $0x168] sm:$0xff] %vm1160_vm0, %v4442_v34 }
 0x10d   : > { %v1084_v12 = vmax.f32 %v941_v8, 0.0  ;;  %1040 = vmatmul.bf16.gmra.mxu1 %v4773_v42  ;;  %1178 = vst.msk [vmem:[#allocation2 + $0x10] sm:$0xff] %vm1177_vm2, %v4442_v34 }
 0x10e   : > { %v1086_v63 = vmax.f32 %v846_v9, 0.0  ;;  %1179 = vst.msk [vmem:[#allocation2 + $0x28] sm:$0xff] %vm1177_vm2, %v4442_v34 }
 0x10f   : > { %v1140_v0 = vmul.f32 %v4867_v39, %v1084_v12  ;;  %1180 = vst.msk [vmem:[#allocation2 + $0x40] sm:$0xff] %vm1177_vm2, %v4442_v34 }
 0x110   : > { %v1142_v15 = vmul.f32 %v4856_v33, %v1086_v63  ;;  %v894_v47 = vpop.f32.mrf.mxu2  ;;  %1181 = vst.msk [vmem:[#allocation2 + $0x58] sm:$0xff] %vm1177_vm2, %v4442_v34 }
 0x111   : > { %v895_v48 = vadd.f32 %v894_v47, %v4943_v60  ;;  %1298 = vrot.lane.b32.xlu0 %v1140_v0, %s4441_s12  ;;  %v798_v18 = vpop.f32.mrf.mxu0  ;;  %v943_v22 = vpop.f32.mrf.mxu3  ;;  %1182 = vst.msk [vmem:[#allocation2 + $0x70] sm:$0xff] %vm1177_vm2, %v4442_v34 }
 0x112   : > { %v799_v24 = vadd.f32 %v798_v18, %v4952_v13  ;;  %v847_v40 = vpop.f32.mrf.mxu1  ;;  %1302 = vrot.lane.b32.xlu2 %v1142_v15, %s4441_s12  ;;  %1183 = vst.msk [vmem:[#allocation2 + $0x88] sm:$0xff] %vm1177_vm2, %v4442_v34 }
 0x113   : > { %v944_v42 = vadd.f32 %v943_v22, %v895_v48  ;;  %v5020_v22 = vpop.permute.xlu1 %423  ;;  %1184 = vst.msk [vmem:[#allocation2 + $0xa0] sm:$0xff] %vm1177_vm2, %v4442_v34 }
 0x114   : > { %v848_v28 = vadd.f32 %v847_v40, %v799_v24  ;;  %1185 = vst.msk [vmem:[#allocation2 + $0xb8] sm:$0xff] %vm1177_vm2, %v4442_v34 }
 0x115   : > { %v1087_v30 = vmax.f32 %v944_v42, 0.0  ;;  %1186 = vst.msk [vmem:[#allocation2 + $0xd0] sm:$0xff] %vm1177_vm2, %v4442_v34 }
 0x116   : > { %v1089_v36 = vmax.f32 %v848_v28, 0.0  ;;  %1187 = vst.msk [vmem:[#allocation2 + $0xe8] sm:$0xff] %vm1177_vm2, %v4442_v34 }
 0x117   : > { %v1143_v37 = vmul.f32 %v4867_v39, %v1087_v30  ;;  %1188 = vst.msk [vmem:[#allocation2 + $0x100] sm:$0xff] %vm1177_vm2, %v4442_v34 }
 0x118   : > { %v896_v43 = vpop.f32.mrf.mxu2  ;;  %v1145_v44 = vmul.f32 %v4856_v33, %v1089_v36  ;;  %1189 = vst.msk [vmem:[#allocation2 + $0x118] sm:$0xff] %vm1177_vm2, %v4442_v34 }
 0x119   : > { %v897_v45 = vadd.f32 %v896_v43, %v4952_v13  ;;  %1304 = vrot.lane.b32.xlu0 %v1143_v37, %s4441_s12  ;;  %v801_v49 = vpop.f32.mrf.mxu0  ;;  %v945_v54 = vpop.f32.mrf.mxu3  ;;  %1190 = vst.msk [vmem:[#allocation2 + $0x130] sm:$0xff] %vm1177_vm2, %v4442_v34 }
 0x11a   : > { %v802_v41 = vadd.f32 %v801_v49, %v4967_v38  ;;  %v850_v55 = vpop.f32.mrf.mxu1  ;;  %1308 = vrot.lane.b32.xlu2 %v1145_v44, %s4441_s12  ;;  %1191 = vst.msk [vmem:[#allocation2 + $0x148] sm:$0xff] %vm1177_vm2, %v4442_v34 }
 0x11b   : > { %v946_v52 = vadd.f32 %v945_v54, %v897_v45  ;;  %v877_v54 = vadd.f32 %v4892_v21, %v4879_v5  ;;  %1192 = vst.msk [vmem:[#allocation2 + $0x160] sm:$0xff] %vm1177_vm2, %v4442_v34 }
 0x11c   : > { %v851_v53 = vadd.f32 %v850_v55, %v802_v41  ;;  %996 = vmatmul.bf16.gmra.mxu0 %v4812_v14  ;;  %1193 = vst.msk [vmem:[#allocation2 + $0x178] sm:$0xff] %vm1177_vm2, %v4442_v34 }
 0x11d   : > { %v1090_v10 = vmax.f32 %v946_v52, 0.0  ;;  %1045 = vmatmul.bf16.gmra.mxu1 %v4815_v17 }
 0x11e   : > { %v1092_v11 = vmax.f32 %v851_v53, 0.0 }
 0x11f   : > { %v1146_v56 = vmul.f32 %v4867_v39, %v1090_v10 }
 0x120   : > { %v1148_v14 = vmul.f32 %v4856_v33, %v1092_v11  ;;  %v899_v58 = vpop.f32.mrf.mxu2 }
 0x121   : > { %v900_v17 = vadd.f32 %v899_v58, %v4967_v38  ;;  %1310 = vrot.lane.b32.xlu0 %v1146_v56, %s4441_s12  ;;  %v803_v59 = vpop.f32.mrf.mxu0  ;;  %v948_v61 = vpop.f32.mrf.mxu3  ;;  %v926_v56 = vadd.f32 %v4894_v23, %v877_v54 }
 0x122   : > { %v804_v62 = vadd.f32 %v803_v59, %v4993_v57  ;;  %v852_v1 = vpop.f32.mrf.mxu1  ;;  %1314 = vrot.lane.b32.xlu2 %v1148_v14, %s4441_s12 }
 0x123   : > { %v949_v2 = vadd.f32 %v948_v61, %v900_v17  ;;  %v5008_v3 = vpop.permute.xlu2 %1244 }
 0x124   : > { %v853_v6 = vadd.f32 %v852_v1, %v804_v62  ;;  %v1066_v1 = vmax.f32 %v926_v56, 0.0 }
 0x125   : > { %v1093_v7 = vmax.f32 %v949_v2, 0.0 }
 0x126   : > { %v1095_v8 = vmax.f32 %v853_v6, 0.0 }
 0x127   : > { %v1149_v9 = vmul.f32 %v4867_v39, %v1093_v7 }
 0x128   : > { %v901_v12 = vpop.f32.mrf.mxu2  ;;  %v1151_v63 = vmul.f32 %v4856_v33, %v1095_v8 }
 0x129   : > { %v902_v0 = vadd.f32 %v901_v12, %v4993_v57  ;;  %1316 = vrot.lane.b32.xlu0 %v1149_v9, %s4441_s12  ;;  %v806_v15 = vpop.f32.mrf.mxu0  ;;  %v950_v47 = vpop.f32.mrf.mxu3 }
 0x12a   : > { %v807_v48 = vadd.f32 %v806_v15, %v4960_v31  ;;  %v855_v18 = vpop.f32.mrf.mxu1  ;;  %1320 = vrot.lane.b32.xlu2 %v1151_v63, %s4441_s12 }
 0x12b   : > { %v951_v24 = vadd.f32 %v950_v47, %v902_v0  ;;  %v5022_v40 = vpop.permute.xlu2 %1250  ;;  %v1122_v0 = vmul.f32 %v4867_v39, %v1066_v1 }
 0x12c   : > { %v856_v42 = vadd.f32 %v855_v18, %v807_v48  ;;  %1001 = vmatmul.bf16.gmra.mxu0 %v4839_v25 }
 0x12d   : > { %v1096_v28 = vmax.f32 %v951_v24, 0.0  ;;  %1050 = vmatmul.bf16.gmra.mxu1 %v4841_v26  ;;  %v5057_v24 = vperm.slane %v4852_v29, 2 }
 0x12e   : > { %v1098_v30 = vmax.f32 %v856_v42, 0.0 }
 0x12f   : > { %v1152_v36 = vmul.f32 %v4867_v39, %v1096_v28 }
 0x130   : > { %v1154_v37 = vmul.f32 %v4856_v33, %v1098_v30  ;;  %v904_v43 = vpop.f32.mrf.mxu2 }
 0x131   : > { %v905_v44 = vadd.f32 %v904_v43, %v4960_v31  ;;  %1322 = vrot.lane.b32.xlu0 %v1152_v36, %s4441_s12  ;;  %v808_v45 = vpop.f32.mrf.mxu0  ;;  %v953_v49 = vpop.f32.mrf.mxu3 }
 0x132   : > { %v809_v25 = vadd.f32 %v808_v45, %v5020_v22  ;;  %v857_v41 = vpop.f32.mrf.mxu1  ;;  %1326 = vrot.lane.b32.xlu2 %v1154_v37, %s4441_s12 }
 0x133   : > { %v954_v26 = vadd.f32 %v953_v49, %v905_v44  ;;  %v5034_v55 = vpop.permute.xlu2 %1256 }
 0x134   : > { %v858_v52 = vadd.f32 %v857_v41, %v809_v25  ;;  %v1243_v53 = vpop.permute.xlu1 %1242 }
 0x135   : > { %v1099_v10 = vmax.f32 %v954_v26, 0.0  ;;  %v1338_v11 = vsel %vm1160_vm0, %v1243_v53, %v5008_v3  ;;  %1419 = vst.msk [vmem:[#allocation2] sm:$0xff] %vm1418_vm1, %v1243_v53 }
 0x136   : > { %v1101_v21 = vmax.f32 %v858_v52, 0.0 }
 0x137   : > { %v1155_v14 = vmul.f32 %v4867_v39, %v1099_v10 }
 0x138   : > { %v906_v58 = vpop.f32.mrf.mxu2  ;;  %v1157_v17 = vmul.f32 %v4856_v33, %v1101_v21 }
 0x139   : > { %v907_v59 = vadd.f32 %v906_v58, %v5020_v22  ;;  %1328 = vrot.lane.b32.xlu0 %v1155_v14, %s4441_s12  ;;  %v955_v61 = vpop.f32.mrf.mxu3  ;;  %v967_v62 = vpop.f32.mrf.mxu0 }
 0x13a   : > { %v1016_v2 = vpop.f32.mrf.mxu1  ;;  %1332 = vrot.lane.b32.xlu2 %v1157_v17, %s4441_s12  ;;  %v968_v7 = vadd.f32 %v967_v62, %v4847_v27 }
 0x13b   : > { %v956_v6 = vadd.f32 %v955_v61, %v907_v59 }
 0x13c   : > { %v1249_v23 = vpop.permute.xlu1 %1248  ;;  %v1267_v8 = vpop.permute.xlu2 %1266  ;;  %v1017_v15 = vadd.f32 %v1016_v2, %v968_v7 }
 0x13d   : > { %v1102_v9 = vmax.f32 %v956_v6, 0.0  ;;  %v1340_v12 = vsel %vm1160_vm0, %v1249_v23, %v5022_v40  ;;  %1423 = vst.msk [vmem:[#allocation2 + $0x18] sm:$0xff] %vm1418_vm1, %v1249_v23 }
 0x13e   : > { %v5049_v63 = vpack.c.bf16 %v1340_v12, %v1338_v11  ;;  %1432 = vst.msk [vmem:[#allocation2 + $0x60] sm:$0xff] %vm1418_vm1, %v1267_v8  ;;  %v1058_v18 = vmax.f32 %v1017_v15, 0.0 }
 0x13f   : > { %v1158_v47 = vmul.f32 %v4867_v39, %v1102_v9 }
 0x140   : > { %v1114_v39 = vmul.f32 %v5057_v24, %v1058_v18 }
 0x141   : > { %1334 = vrot.lane.b32.xlu0 %v1158_v47, %s4441_s12  ;;  %v969_v27 = vpop.f32.mrf.mxu0 }
 0x142   : > { %v1018_v48 = vpop.f32.mrf.mxu1  ;;  %1262 = vrot.lane.b32.xlu2 %v1122_v0, %s4441_s12  ;;  %v970_v42 = vadd.f32 %v969_v27, %v4860_v35 }
 0x144   : > { %v1255_v28 = vpop.permute.xlu1 %1254  ;;  %v1273_v30 = vpop.permute.xlu2 %1272  ;;  %v1019_v37 = vadd.f32 %v1018_v48, %v970_v42 }
 0x145   : > { %v5062_v36 = vsel %vm1160_vm0, %v1255_v28, %v5034_v55  ;;  %1426 = vst.msk [vmem:[#allocation2 + $0x30] sm:$0xff] %vm1418_vm1, %v1255_v28 }
 0x146   : > { %1435 = vst.msk [vmem:[#allocation2 + $0x78] sm:$0xff] %vm1418_vm1, %v1273_v30  ;;  %v1061_v44 = vmax.f32 %v1019_v37, 0.0 }
 0x148   : > { %v1117_v54 = vmul.f32 %v5057_v24, %v1061_v44 }
 0x149   : > { %1246 = vrot.lane.b32.xlu0 %v1114_v39, %s4441_s12  ;;  %v972_v43 = vpop.f32.mrf.mxu0 }
 0x14a   : > { %v1021_v29 = vpop.f32.mrf.mxu1  ;;  %v973_v35 = vadd.f32 %v972_v43, %v4869_v51 }
 0x14c   : > { %v1279_v45 = vpop.permute.xlu2 %1278  ;;  %v1022_v49 = vadd.f32 %v1021_v29, %v973_v35 }
 0x14d   : > { %1438 = vst.msk [vmem:[#allocation2 + $0x90] sm:$0xff] %vm1418_vm1, %v1279_v45 }
 0x14e   : > { %v1064_v26 = vmax.f32 %v1022_v49, 0.0 }
 0x150   : > { %v1120_v10 = vmul.f32 %v5057_v24, %v1064_v26 }
 0x151   : > { %1252 = vrot.lane.b32.xlu0 %v1117_v54, %s4441_s12  ;;  %v974_v25 = vpop.f32.mrf.mxu0 }
 0x152   : > { %v1023_v41 = vpop.f32.mrf.mxu1  ;;  %v975_v52 = vadd.f32 %v974_v25, %v4879_v5 }
 0x154   : > { %v1285_v53 = vpop.permute.xlu2 %1284  ;;  %v1024_v11 = vadd.f32 %v1023_v41, %v975_v52 }
 0x155   : > { %1441 = vst.msk [vmem:[#allocation2 + $0xa8] sm:$0xff] %vm1418_vm1, %v1285_v53 }
 0x156   : > { %v1067_v14 = vmax.f32 %v1024_v11, 0.0 }
 0x158   : > { %v1123_v62 = vmul.f32 %v5057_v24, %v1067_v14 }
 0x159   : > { %1258 = vrot.lane.b32.xlu0 %v1120_v10, %s4441_s12  ;;  %v977_v51 = vpop.f32.mrf.mxu0 }
 0x15a   : > { %v978_v56 = vadd.f32 %v977_v51, %v4889_v19  ;;  %v1026_v21 = vpop.f32.mrf.mxu1 }
 0x15b   : > { %v5077_v58 = vpop.permute.xlu0 %1268 }
 0x15c   : > { %v1027_v17 = vadd.f32 %v1026_v21, %v978_v56  ;;  %v1346_v59 = vsel %vm1160_vm0, %v1267_v8, %v5077_v58  ;;  %v1291_v5 = vpop.permute.xlu2 %1290 }
 0x15d   : > { %1444 = vst.msk [vmem:[#allocation2 + $0xc0] sm:$0xff] %vm1418_vm1, %v1291_v5 }
 0x15e   : > { %v1070_v61 = vmax.f32 %v1027_v17, 0.0 }
 0x160   : > { %v1126_v1 = vmul.f32 %v5057_v24, %v1070_v61 }
 0x161   : > { %1264 = vrot.lane.b32.xlu0 %v1123_v62, %s4441_s12  ;;  %v979_v2 = vpop.f32.mrf.mxu0 }
 0x162   : > { %v980_v19 = vadd.f32 %v979_v2, %v4900_v32  ;;  %v1028_v6 = vpop.f32.mrf.mxu1  ;;  %1270 = vrot.lane.b32.xlu1 %v1126_v1, %s4441_s12 }
 0x163   : > { %v5087_v7 = vpop.permute.xlu0 %1274 }
 0x164   : > { %v1029_v23 = vadd.f32 %v1028_v6, %v980_v19  ;;  %v1348_v8 = vsel %vm1160_vm0, %v1273_v30, %v5087_v7  ;;  %v1297_v9 = vpop.permute.xlu2 %1296 }
 0x165   : > { %v5091_v12 = vpack.c.bf16 %v1348_v8, %v1346_v59  ;;  %1447 = vst.msk [vmem:[#allocation2 + $0xd8] sm:$0xff] %vm1418_vm1, %v1297_v9 }
 0x166   : > { %v1073_v0 = vmax.f32 %v1029_v23, 0.0 }
 0x168   : > { %v1129_v15 = vmul.f32 %v5057_v24, %v1073_v0 }
 0x169   : > { %v982_v47 = vpop.f32.mrf.mxu0 }
 0x16a   : > { %v983_v32 = vadd.f32 %v982_v47, %v4907_v50  ;;  %v1031_v27 = vpop.f32.mrf.mxu1  ;;  %1276 = vrot.lane.b32.xlu1 %v1129_v15, %s4441_s12 }
 0x16b   : > { %v5097_v48 = vpop.permute.xlu0 %1280 }
 0x16c   : > { %v1032_v18 = vadd.f32 %v1031_v27, %v983_v32  ;;  %v1350_v42 = vsel %vm1160_vm0, %v1279_v45, %v5097_v48  ;;  %v1303_v28 = vpop.permute.xlu2 %1302 }
 0x16d   : > { %1450 = vst.msk [vmem:[#allocation2 + $0xf0] sm:$0xff] %vm1418_vm1, %v1303_v28 }
 0x16e   : > { %v1076_v30 = vmax.f32 %v1032_v18, 0.0 }
 0x170   : > { %v1132_v39 = vmul.f32 %v5057_v24, %v1076_v30 }
 0x171   : > { %v984_v37 = vpop.f32.mrf.mxu0 }
 0x172   : > { %v985_v43 = vadd.f32 %v984_v37, %v4917_v4  ;;  %v1033_v29 = vpop.f32.mrf.mxu1  ;;  %1282 = vrot.lane.b32.xlu1 %v1132_v39, %s4441_s12 }
 0x173   : > { %v5105_v50 = vpop.permute.xlu0 %1286 }
 0x174   : > { %v1034_v44 = vadd.f32 %v1033_v29, %v985_v43  ;;  %v1352_v35 = vsel %vm1160_vm0, %v1285_v53, %v5105_v50  ;;  %v1309_v49 = vpop.permute.xlu2 %1308 }
 0x175   : > { %v5109_v45 = vpack.c.bf16 %v1352_v35, %v1350_v42  ;;  %1453 = vst.msk [vmem:[#allocation2 + $0x108] sm:$0xff] %vm1418_vm1, %v1309_v49 }
 0x176   : > { %v1079_v54 = vmax.f32 %v1034_v44, 0.0 }
 0x178   : > { %v1135_v25 = vmul.f32 %v5057_v24, %v1079_v54 }
 0x179   : > { %v987_v41 = vpop.f32.mrf.mxu0 }
 0x17a   : > { %v988_v4 = vadd.f32 %v987_v41, %v4925_v20  ;;  %v1036_v26 = vpop.f32.mrf.mxu1  ;;  %1288 = vrot.lane.b32.xlu1 %v1135_v25, %s4441_s12 }
 0x17b   : > { %v5115_v52 = vpop.permute.xlu0 %1292 }
 0x17c   : > { %v1037_v10 = vadd.f32 %v1036_v26, %v988_v4  ;;  %v5119_v53 = vsel %vm1160_vm0, %v1291_v5, %v5115_v52  ;;  %v1315_v11 = vpop.permute.xlu2 %1314 }
 0x17d   : > { %1456 = vst.msk [vmem:[#allocation2 + $0x120] sm:$0xff] %vm1418_vm1, %v1315_v11 }
 0x17e   : > { %v1082_v51 = vmax.f32 %v1037_v10, 0.0 }
 0x180   : > { %v1138_v56 = vmul.f32 %v5057_v24, %v1082_v51 }
 0x181   : > { %v989_v21 = vpop.f32.mrf.mxu0 }
 0x182   : > { %v990_v14 = vadd.f32 %v989_v21, %v4935_v46  ;;  %v1038_v20 = vpop.f32.mrf.mxu1  ;;  %1294 = vrot.lane.b32.xlu1 %v1138_v56, %s4441_s12 }
 0x183   : > { %v5125_v17 = vpop.permute.xlu0 %1298 }
 0x184   : > { %v1039_v59 = vadd.f32 %v1038_v20, %v990_v14  ;;  %v5129_v61 = vsel %vm1160_vm0, %v1297_v9, %v5125_v17  ;;  %v1321_v5 = vpop.permute.xlu2 %1320 }
 0x185   : > { %1459 = vst.msk [vmem:[#allocation2 + $0x138] sm:$0xff] %vm1418_vm1, %v1321_v5 }
 0x186   : > { %v1085_v62 = vmax.f32 %v1039_v59, 0.0 }
 0x188   : > { %v1141_v1 = vmul.f32 %v5057_v24, %v1085_v62 }
 0x189   : > { %v992_v2 = vpop.f32.mrf.mxu0 }
 0x18a   : > { %v993_v19 = vadd.f32 %v992_v2, %v4943_v60  ;;  %v1041_v46 = vpop.f32.mrf.mxu1  ;;  %1300 = vrot.lane.b32.xlu1 %v1141_v1, %s4441_s12 }
 0x18b   : > { %v5135_v6 = vpop.permute.xlu0 %1304 }
 0x18c   : > { %v1042_v23 = vadd.f32 %v1041_v46, %v993_v19  ;;  %v1358_v8 = vsel %vm1160_vm0, %v1303_v28, %v5135_v6  ;;  %v1327_v9 = vpop.permute.xlu2 %1326 }
 0x18d   : > { %1462 = vst.msk [vmem:[#allocation2 + $0x150] sm:$0xff] %vm1418_vm1, %v1327_v9 }
 0x18e   : > { %v1088_v0 = vmax.f32 %v1042_v23, 0.0 }
 0x190   : > { %v1144_v15 = vmul.f32 %v5057_v24, %v1088_v0 }
 0x191   : > { %v994_v47 = vpop.f32.mrf.mxu0 }
 0x192   : > { %v995_v32 = vadd.f32 %v994_v47, %v4952_v13  ;;  %v1043_v27 = vpop.f32.mrf.mxu1  ;;  %1306 = vrot.lane.b32.xlu1 %v1144_v15, %s4441_s12 }
 0x193   : > { %v5143_v60 = vpop.permute.xlu0 %1310 }
 0x194   : > { %v1044_v18 = vadd.f32 %v1043_v27, %v995_v32  ;;  %v1360_v42 = vsel %vm1160_vm0, %v1309_v49, %v5143_v60  ;;  %v1333_v30 = vpop.permute.xlu2 %1332  ;;  %v1065_v32 = vmax.f32 %v4887_v16, 0.0 }
 0x195   : > { %1465 = vst.msk [vmem:[#allocation2 + $0x168] sm:$0xff] %vm1418_vm1, %v1333_v30  ;;  %v5205_v62 = vpack.c.bf16 %v1360_v42, %v1358_v8  ;;  %v5218_v8 = vpack.c.bf16 %v5129_v61, %v5119_v53  ;;  %v1507_v42 = vld [vmem:[#allocation2 + $0x138] sm:$0xff] }
 0x196   : > { %v1091_v28 = vmax.f32 %v1044_v18, 0.0 }
 0x197   : > { %7068 = vst [vmem:[#allocation7_spill] sm:$0xff] %v5205_v62 }
 0x198   : > { %v1147_v39 = vmul.f32 %v5057_v24, %v1091_v28 }
 0x199   : > { %v997_v37 = vpop.f32.mrf.mxu0 }
 0x19a   : > { %v998_v43 = vadd.f32 %v997_v37, %v4967_v38  ;;  %v1046_v29 = vpop.f32.mrf.mxu1  ;;  %1312 = vrot.lane.b32.xlu1 %v1147_v39, %s4441_s12 }
 0x19b   : > { %v5151_v13 = vpop.permute.xlu0 %1316 }
 0x19c   : > { %v1047_v44 = vadd.f32 %v1046_v29, %v998_v43  ;;  %v1362_v35 = vsel %vm1160_vm0, %v1315_v11, %v5151_v13  ;;  %v1513_v27 = vld [vmem:[#allocation2 + $0x168] sm:$0xff]  ;;  %v5258_v39 = vpop.permute.xlu2 %1262 }
 0x19e   : > { %v1094_v49 = vmax.f32 %v1047_v44, 0.0 }
 0x1a0   : > { %v1150_v38 = vmul.f32 %v5057_v24, %v1094_v49 }
 0x1a1   : > { %v999_v54 = vpop.f32.mrf.mxu0 }
 0x1a2   : > { %v1000_v25 = vadd.f32 %v999_v54, %v4993_v57  ;;  %v1048_v41 = vpop.f32.mrf.mxu1  ;;  %1318 = vrot.lane.b32.xlu1 %v1150_v38, %s4441_s12  ;;  %v1495_v54 = vld [vmem:[#allocation2 + $0xd8] sm:$0xff] }
 0x1a3   : > { %v5172_v4 = vpop.permute.xlu0 %1322 }
 0x1a4   : > { %v1049_v26 = vadd.f32 %v1048_v41, %v1000_v25  ;;  %v1364_v10 = vsel %vm1160_vm0, %v1321_v5, %v5172_v4  ;;  %v1492_v41 = vld [vmem:[#allocation2 + $0xc0] sm:$0xff] }
 0x1a5   : > { %v5180_v11 = vpack.c.bf16 %v1364_v10, %v1362_v35  ;;  %v1498_v35 = vld [vmem:[#allocation2 + $0xf0] sm:$0xff]  ;;  %v1489_v10 = vld [vmem:[#allocation2 + $0xa8] sm:$0xff] }
 0x1a6   : > { %v1097_v57 = vmax.f32 %v1049_v26, 0.0  ;;  %v5273_v26 = vpack.c.bf16 %v1495_v54, %v1492_v41 }
 0x1a7   : > { %7067 = vst [vmem:[#allocation6_spill] sm:$0xff] %v5180_v11  ;;  %1643 = vrot.lane.b32.xlu2 %v5180_v11, %s4443_s14 }
 0x1a8   : > { %v1153_v51 = vmul.f32 %v5057_v24, %v1097_v57 }
 0x1a9   : > { %v1002_v56 = vpop.f32.mrf.mxu0 }
 0x1aa   : > { %v1003_v21 = vadd.f32 %v1002_v56, %v4960_v31  ;;  %v1051_v14 = vpop.f32.mrf.mxu1  ;;  %1324 = vrot.lane.b32.xlu1 %v1153_v51, %s4441_s12  ;;  %v1486_v51 = vld [vmem:[#allocation2 + $0x90] sm:$0xff] }
 0x1ab   : > { %v5197_v20 = vpop.permute.xlu0 %1328  ;;  %v5280_v56 = vpack.c.bf16 %v1489_v10, %v1486_v51 }
 0x1ac   : > { %v1052_v59 = vadd.f32 %v1051_v14, %v1003_v21  ;;  %v1366_v5 = vsel %vm1160_vm0, %v1327_v9, %v5197_v20  ;;  %v1483_v21 = vld [vmem:[#allocation2 + $0x78] sm:$0xff] }
 0x1ae   : > { %v1100_v31 = vmax.f32 %v1052_v59, 0.0  ;;  %v1480_v59 = vld [vmem:[#allocation2 + $0x60] sm:$0xff] }
 0x1af   : > { %1637 = vrot.lane.b32.xlu2 %v5205_v62, %s4443_s14 }
 0x1b0   : > { %v1156_v1 = vmul.f32 %v5057_v24, %v1100_v31 }
 0x1b1   : > { %v1004_v2 = vpop.f32.mrf.mxu0 }
 0x1b2   : > { %v1005_v19 = vadd.f32 %v1004_v2, %v5020_v22  ;;  %1330 = vrot.lane.b32.xlu1 %v1156_v1, %s4441_s12  ;;  %v1053_v46 = vpop.f32.mrf.mxu1 }
 0x1b3   : > { %v5212_v23 = vpop.permute.xlu0 %1334 }
 0x1b4   : > { %v1054_v9 = vadd.f32 %v1053_v46, %v1005_v19  ;;  %v1368_v34 = vsel %vm1160_vm0, %v1333_v30, %v5212_v23  ;;  %v1504_v30 = vld [vmem:[#allocation2 + $0x120] sm:$0xff] }
 0x1b5   : > { %v5220_v0 = vpack.c.bf16 %v1368_v34, %v1366_v5  ;;  %v5254_v28 = vpack.c.bf16 %v1507_v42, %v1504_v30  ;;  %v5287_v5 = vpack.c.bf16 %v1483_v21, %v1480_v59 }
 0x1b6   : > { %v1103_v15 = vmax.f32 %v1054_v9, 0.0 }
 0x1b7   : > { %7069 = vst [vmem:[#allocation8_spill] sm:$0xff] %v5220_v0  ;;  %1631 = vrot.lane.b32.xlu2 %v5218_v8, %s4443_s14  ;;  %1834 = vmatpush.bf16.msra.mxu0 %v5220_v0 }
 0x1b8   : > { %v1159_v22 = vmul.f32 %v5057_v24, %v1103_v15  ;;  %v1121_v24 = vmul.f32 %v4856_v33, %v1065_v32  ;;  %7070 = vst [vmem:[#allocation9_spill] sm:$0xff] %v5254_v28 }
 0x1ba   : > { %1336 = vrot.lane.b32.xlu1 %v1159_v22, %s4441_s12 }
 0x1bb   : > { %v1247_v47 = vpop.permute.xlu0 %1246  ;;  %1835 = vmatpush.bf16.msra.mxu0 %v5180_v11 }
 0x1bc   : > { %v1339_v53 = vsel %vm1160_vm0, %v5008_v3, %v1247_v47  ;;  %v1510_v3 = vld [vmem:[#allocation2 + $0x150] sm:$0xff] }
 0x1bd   : > { %1422 = vst.msk [vmem:[#allocation2 + $0x10] sm:$0xff] %vm1421_vm3, %v1339_v53  ;;  %v5244_v18 = vpack.c.bf16 %v1513_v27, %v1510_v3 }
 0x1bf   : > { %1625 = vrot.lane.b32.xlu2 %v5109_v45, %s4443_s14  ;;  %1836 = vmatpush.bf16.msra.mxu0 %v5205_v62 }
 0x1c2   : > { %1260 = vrot.lane.b32.xlu1 %v1121_v24, %s4441_s12  ;;  %s3645_s12 = scalar_lea.sflag [#allocation4], %s242_s20 }
 0x1c3   : > { %v1253_v61 = vpop.permute.xlu0 %1252  ;;  %1837 = vmatpush.bf16.msra.mxu0 %v5218_v8 }
 0x1c4   : > { %v1341_v16 = vsel %vm1160_vm0, %v5022_v40, %v1253_v61 }
 0x1c5   : > { %1425 = vst.msk [vmem:[#allocation2 + $0x28] sm:$0xff] %vm1421_vm3, %v1341_v16 }
 0x1c7   : > { %1649 = vrot.lane.b32.xlu2 %v5220_v0, %s4443_s14  ;;  %1838 = vmatpush.bf16.msra.mxu0 %v5109_v45 }
 0x1ca   : > { %1647 = vrot.lane.b32.xlu1 %v5244_v18, %s4443_s14 }
 0x1cb   : > { %v1259_v33 = vpop.permute.xlu0 %1258  ;;  %1839 = vmatpush.bf16.msra.mxu0 %v5091_v12 }
 0x1cc   : > { %v1343_v40 = vsel %vm1160_vm0, %v5034_v55, %v1259_v33  ;;  %v1501_v55 = vld [vmem:[#allocation2 + $0x108] sm:$0xff] }
 0x1cd   : > { %1428 = vst.msk [vmem:[#allocation2 + $0x40] sm:$0xff] %vm1421_vm3, %v1343_v40  ;;  %v5266_v49 = vpack.c.bf16 %v1501_v55, %v1498_v35 }
 0x1cf   : > { %1619 = vrot.lane.b32.xlu2 %v5091_v12, %s4443_s14 }
 0x1d2   : > { %1641 = vrot.lane.b32.xlu1 %v5254_v28, %s4443_s14 }
 0x1d3   : > { %v1265_v37 = vpop.permute.xlu0 %1264 }
 0x1d4   : > { %v1345_v43 = vsel %vm1160_vm0, %v5258_v39, %v1265_v37  ;;  %v1271_v29 = vpop.permute.xlu1 %1270 }
 0x1d5   : > { %1431 = vst.msk [vmem:[#allocation2 + $0x58] sm:$0xff] %vm1421_vm3, %v1345_v43  ;;  %v1347_v44 = vsel %vm1160_vm0, %v5077_v58, %v1271_v29 }
 0x1d6   : > { %1434 = vst.msk [vmem:[#allocation2 + $0x70] sm:$0xff] %vm1421_vm3, %v1347_v44 }
 0x1da   : > { %1635 = vrot.lane.b32.xlu1 %v5266_v49, %s4443_s14 }
 0x1dc   : > { %v1277_v38 = vpop.permute.xlu1 %1276  ;;  %v1479_v21 = vld [vmem:[#allocation2 + $0x58] sm:$0xff] }
 0x1dd   : > { %v1349_v25 = vsel %vm1160_vm0, %v5087_v7, %v1277_v38 }
 0x1de   : > { %1437 = vst.msk [vmem:[#allocation2 + $0x88] sm:$0xff] %vm1421_vm3, %v1349_v25 }
 0x1e2   : > { %1629 = vrot.lane.b32.xlu1 %v5273_v26, %s4443_s14 }
 0x1e4   : > { %v1283_v58 = vpop.permute.xlu1 %1282 }
 0x1e5   : > { %v1351_v57 = vsel %vm1160_vm0, %v5097_v48, %v1283_v58  ;;  %v1482_v58 = vld [vmem:[#allocation2 + $0x70] sm:$0xff] }
 0x1e6   : > { %1440 = vst.msk [vmem:[#allocation2 + $0xa0] sm:$0xff] %vm1421_vm3, %v1351_v57 }
 0x1ea   : > { %1623 = vrot.lane.b32.xlu1 %v5280_v56, %s4443_s14 }
 0x1ec   : > { %v1289_v7 = vpop.permute.xlu1 %1288 }
 0x1ed   : > { %v1353_v14 = vsel %vm1160_vm0, %v5105_v50, %v1289_v7  ;;  %v1488_v31 = vld [vmem:[#allocation2 + $0xa0] sm:$0xff]  ;;  %v1471_v7 = vld [vmem:[#allocation2 + $0x18] sm:$0xff] }
 0x1ee   : > { %1443 = vst.msk [vmem:[#allocation2 + $0xb8] sm:$0xff] %vm1421_vm3, %v1353_v14  ;;  %v1468_v14 = vld [vmem:[#allocation2] sm:$0xff] }
 0x1f2   : > { %1617 = vrot.lane.b32.xlu1 %v5287_v5, %s4443_s14 }
 0x1f4   : > { %v1295_v48 = vpop.permute.xlu1 %1294 }
 0x1f5   : > { %v1491_v1 = vld [vmem:[#allocation2 + $0xb8] sm:$0xff]  ;;  %v1355_v2 = vsel %vm1160_vm0, %v5115_v52, %v1295_v48  ;;  %v5371_v48 = vpack.c.bf16 %v1471_v7, %v1468_v14  ;;  %v5514_v7 = vld [vmem:[%s7048_s4 + $0x20] sm:$0xff] }
 0x1f6   : > { %v5293_v19 = vpack.c.bf16 %v1491_v1, %v1488_v31  ;;  %1446 = vst.msk [vmem:[#allocation2 + $0xd0] sm:$0xff] %vm1421_vm3, %v1355_v2  ;;  %v1476_v31 = vld [vmem:[#allocation2 + $0x40] sm:$0xff] }
 0x1f7   : > { %7075 = vst [vmem:[#allocation14_spill] sm:$0xff] %v5371_v48  ;;  %v5375_v2 = vpack.c.bf16 %v1479_v21, %v1476_v31  ;;  %v5533_v31 = vld [vmem:[%s7048_s4 + $0x8] sm:$0xff] }
 0x1f8   : > { %1627 = vrot.lane.b32.xlu0 %v5293_v19, %s4443_s14 }
 0x1fc   : > { %v1301_v50 = vpop.permute.xlu1 %1300 }
 0x1fd   : > { %v1357_v46 = vsel %vm1160_vm0, %v5125_v17, %v1301_v50  ;;  %v1494_v34 = vld [vmem:[#allocation2 + $0xd0] sm:$0xff]  ;;  %v1473_v50 = vld [vmem:[#allocation2 + $0x28] sm:$0xff] }
 0x1fe   : > { %1449 = vst.msk [vmem:[#allocation2 + $0xe8] sm:$0xff] %vm1421_vm3, %v1357_v46 }
 0x201   : > { %v5311_v17 = vpop.permute.xlu2 %1643 }
 0x204   : > { %v1307_v9 = vpop.permute.xlu1 %1306 }
 0x205   : > { %v1497_v15 = vld [vmem:[#allocation2 + $0xe8] sm:$0xff]  ;;  %v1359_v22 = vsel %vm1160_vm0, %v5135_v6, %v1307_v9  ;;  %v1470_v9 = vld [vmem:[#allocation2 + $0x10] sm:$0xff] }
 0x206   : > { %v5303_v52 = vpack.c.bf16 %v1497_v15, %v1494_v34  ;;  %1452 = vst.msk [vmem:[#allocation2 + $0x100] sm:$0xff] %vm1421_vm3, %v1359_v22  ;;  %v5387_v15 = vpack.c.bf16 %v1473_v50, %v1470_v9 }
 0x208   : > { %7071 = vst [vmem:[#allocation10_spill] sm:$0xff] %v5303_v52  ;;  %1633 = vrot.lane.b32.xlu0 %v5303_v52, %s4443_s14 }
 0x209   : > { %v5322_v3 = vpop.permute.xlu2 %1637 }
 0x20c   : > { %v1313_v47 = vpop.permute.xlu1 %1312 }
 0x20d   : > { %v1361_v32 = vsel %vm1160_vm0, %v5143_v60, %v1313_v47  ;;  %v1500_v24 = vld [vmem:[#allocation2 + $0x100] sm:$0xff] }
 0x20e   : > { %1455 = vst.msk [vmem:[#allocation2 + $0x118] sm:$0xff] %vm1421_vm3, %v1361_v32 }
 0x211   : > { %v5330_v37 = vpop.permute.xlu2 %1631 }
 0x214   : > { %v1319_v53 = vpop.permute.xlu1 %1318 }
 0x215   : > { %v1503_v61 = vld [vmem:[#allocation2 + $0x118] sm:$0xff]  ;;  %v1363_v6 = vsel %vm1160_vm0, %v5151_v13, %v1319_v53 }
 0x216   : > { %v5315_v16 = vpack.c.bf16 %v1503_v61, %v1500_v24  ;;  %1458 = vst.msk [vmem:[#allocation2 + $0x130] sm:$0xff] %vm1421_vm3, %v1363_v6 }
 0x218   : > { %7072 = vst [vmem:[#allocation11_spill] sm:$0xff] %v5315_v16  ;;  %1639 = vrot.lane.b32.xlu0 %v5315_v16, %s4443_s14 }
 0x219   : > { %v5337_v29 = vpop.permute.xlu2 %1625 }
 0x21c   : > { %v1325_v27 = vpop.permute.xlu1 %1324 }
 0x21d   : > { %v1365_v60 = vsel %vm1160_vm0, %v5172_v4, %v1325_v27  ;;  %v1506_v40 = vld [vmem:[#allocation2 + $0x130] sm:$0xff] }
 0x21e   : > { %1461 = vst.msk [vmem:[#allocation2 + $0x148] sm:$0xff] %vm1421_vm3, %v1365_v60 }
 0x221   : > { %v5353_v25 = vpop.permute.xlu2 %1649 }
 0x224   : > { %v1331_v33 = vpop.permute.xlu1 %1330 }
 0x225   : > { %v1509_v42 = vld [vmem:[#allocation2 + $0x148] sm:$0xff]  ;;  %v1367_v13 = vsel %vm1160_vm0, %v5197_v20, %v1331_v33 }
 0x226   : > { %v5327_v30 = vpack.c.bf16 %v1509_v42, %v1506_v40  ;;  %1464 = vst.msk [vmem:[#allocation2 + $0x160] sm:$0xff] %vm1421_vm3, %v1367_v13 }
 0x228   : > { %7073 = vst [vmem:[#allocation12_spill] sm:$0xff] %v5327_v30  ;;  %1645 = vrot.lane.b32.xlu0 %v5327_v30, %s4443_s14 }
 0x229   : > { %v5413_v24 = vpop.permute.xlu2 %1619 }
 0x22c   : > { %v1337_v4 = vpop.permute.xlu1 %1336 }
 0x22d   : > { %v1369_v43 = vsel %vm1160_vm0, %v5212_v23, %v1337_v4  ;;  %v1512_v44 = vld [vmem:[#allocation2 + $0x160] sm:$0xff]  ;;  %v1485_v23 = vld [vmem:[#allocation2 + $0x88] sm:$0xff] }
 0x22e   : > { %1467 = vst.msk [vmem:[#allocation2 + $0x178] sm:$0xff] %vm1421_vm3, %v1369_v43  ;;  %v5361_v51 = vpack.c.bf16 %v1485_v23, %v1482_v58 }
 0x234   : > { %v1261_v55 = vpop.permute.xlu1 %1260 }
 0x235   : > { %v1515_v20 = vld [vmem:[#allocation2 + $0x178] sm:$0xff]  ;;  %v1344_v35 = vsel %vm1160_vm0, %v1261_v55, %v5258_v39  ;;  %1429 = vst.msk [vmem:[#allocation2 + $0x48] sm:$0xff] %vm1418_vm1, %v1261_v55  ;;  %v1474_v39 = vld [vmem:[#allocation2 + $0x30] sm:$0xff] }
 0x236   : > { %v5342_v38 = vpack.c.bf16 %v1515_v20, %v1512_v44  ;;  %v5345_v54 = vpack.c.bf16 %v1344_v35, %v5062_v36 }
 0x238   : > { %7074 = vst [vmem:[#allocation13_spill] sm:$0xff] %v5342_v38  ;;  %1651 = vrot.lane.b32.xlu0 %v5342_v38, %s4443_s14  ;;  %1863 = vmatpush.bf16.msra.mxu1 %v5342_v38 }
 0x239   : > { %1613 = vrot.lane.b32.xlu2 %v5345_v54, %s4443_s14  ;;  %1840 = vmatpush.bf16.msra.mxu0 %v5345_v54 }
 0x23c   : > { %v1477_v41 = vld [vmem:[#allocation2 + $0x48] sm:$0xff]  ;;  %1864 = vmatpush.bf16.msra.mxu1 %v5327_v30  ;;  %v1648_v36 = vpop.permute.xlu1 %1647 }
 0x23d   : > { %v5356_v10 = vpack.c.bf16 %v1477_v41, %v1474_v39  ;;  %v1668_v57 = vsel %vm1653_vm4, %v1648_v36, %v5353_v25  ;;  %1841 = vmatpush.bf16.msra.mxu0 %v5049_v63 }
 0x23e   : > { %1694 = vmatpush.bf16.msrb.mxu2 %v1668_v57 }
 0x23f   : > { %1611 = vrot.lane.b32.xlu1 %v5356_v10, %s4443_s14 }
 0x240   : > { %1621 = vrot.lane.b32.xlu0 %v5361_v51, %s4443_s14  ;;  %1865 = vmatpush.bf16.msra.mxu1 %v5315_v16 }
 0x241   : > { %1607 = vrot.lane.b32.xlu2 %v5049_v63, %s4443_s14 }
 0x244   : > { %1866 = vmatpush.bf16.msra.mxu1 %v5303_v52  ;;  %v1642_v59 = vpop.permute.xlu1 %1641 }
 0x245   : > { %v1666_v1 = vsel %vm1653_vm4, %v1642_v59, %v5311_v17 }
 0x246   : > { %1695 = vmatpush.bf16.msrb.mxu2 %v1666_v1 }
 0x247   : > { %1605 = vrot.lane.b32.xlu1 %v5371_v48, %s4443_s14 }
 0x248   : > { %1867 = vmatpush.bf16.msra.mxu1 %v5293_v19  ;;  %1615 = vrot.lane.b32.xlu0 %v5375_v2, %s4443_s14 }
 0x249   : > { %1969 = vrot.lane.b32.xlu2 %v5220_v0, %s4444_s15 }
 0x24c   : > { %1868 = vmatpush.bf16.msra.mxu1 %v5361_v51  ;;  %v1636_v46 = vpop.permute.xlu1 %1635 }
 0x24d   : > { %v1664_v34 = vsel %vm1653_vm4, %v1636_v46, %v5322_v3 }
 0x24e   : > { %1696 = vmatpush.bf16.msrb.mxu2 %v1664_v34 }
 0x24f   : > { %1967 = vrot.lane.b32.xlu1 %v5244_v18, %s4444_s15 }
 0x250   : > { %1609 = vrot.lane.b32.xlu0 %v5387_v15, %s4443_s14  ;;  %1869 = vmatpush.bf16.msra.mxu1 %v5375_v2 }
 0x251   : > { %1955 = vrot.lane.b32.xlu2 %v5266_v49, %s4444_s15 }
 0x254   : > { %v1630_v22 = vpop.permute.xlu1 %1629  ;;  %1870 = vmatpush.bf16.msra.mxu1 %v5387_v15 }
 0x255   : > { %v1662_v47 = vsel %vm1653_vm4, %v1630_v22, %v5330_v37  ;;  %v5552_v22 = vld [vmem:[%s7048_s4 + $0x28] sm:$0xff] }
 0x256   : > { %1697 = vmatpush.bf16.msrb.mxu2 %v1662_v47 }
 0x257   : > { %1963 = vrot.lane.b32.xlu1 %v5180_v11, %s4444_s15 }
 0x258   : > { %1961 = vrot.lane.b32.xlu0 %v5254_v28, %s4444_s15 }
 0x259   : > { %1951 = vrot.lane.b32.xlu2 %v5218_v8, %s4444_s15 }
 0x25c   : > { %v1624_v32 = vpop.permute.xlu1 %1623 }
 0x25d   : > { %v1660_v53 = vsel %vm1653_vm4, %v1624_v32, %v5337_v29 }
 0x25e   : > { %1698 = vmatpush.bf16.msrb.mxu2 %v1660_v53 }
 0x25f   : > { %1949 = vrot.lane.b32.xlu1 %v5273_v26, %s4444_s15 }
 0x260   : > { %1957 = vrot.lane.b32.xlu0 %v5205_v62, %s4444_s15 }
 0x261   : > { %1937 = vrot.lane.b32.xlu2 %v5287_v5, %s4444_s15 }
 0x264   : > { %v1618_v61 = vpop.permute.xlu1 %1617 }
 0x265   : > { %v1658_v6 = vsel %vm1653_vm4, %v1618_v61, %v5413_v24 }
 0x266   : > { %1699 = vmatpush.bf16.msrb.mxu2 %v1658_v6 }
 0x267   : > { %1945 = vrot.lane.b32.xlu1 %v5109_v45, %s4444_s15 }
 0x268   : > { %1943 = vrot.lane.b32.xlu0 %v5280_v56, %s4444_s15 }
 0x269   : > { %1933 = vrot.lane.b32.xlu2 %v5345_v54, %s4444_s15 }
 0x26a   : > { %v5447_v27 = vpop.permute.xlu0 %1627 }
 0x26f   : > { %1931 = vrot.lane.b32.xlu1 %v5356_v10, %s4444_s15 }
 0x270   : > { %1939 = vrot.lane.b32.xlu0 %v5091_v12, %s4444_s15 }
 0x271   : > { %1953 = vrot.lane.b32.xlu2 %v5303_v52, %s4444_s15 }
 0x277   : > { %1927 = vrot.lane.b32.xlu1 %v5049_v63, %s4444_s15 }
 0x278   : > { %1925 = vrot.lane.b32.xlu0 %v5371_v48, %s4444_s15 }
 0x279   : > { %1935 = vrot.lane.b32.xlu2 %v5375_v2, %s4444_s15 }
 0x27a   : > { %v5455_v60 = vpop.permute.xlu0 %1633 }
 0x27b   : > { %v1663_v36 = vsel %vm1653_vm4, %v5330_v37, %v5455_v60  ;;  %v1661_v37 = vsel %vm1653_vm4, %v5337_v29, %v5447_v27 }
 0x27f   : > { %1959 = vrot.lane.b32.xlu1 %v5315_v16, %s4444_s15 }
 0x280   : > { %1965 = vrot.lane.b32.xlu0 %v5327_v30, %s4444_s15 }
 0x281   : > { %2200 = vrot.lane.b32.xlu2 %v5244_v18, %s4445_s16 }
 0x287   : > { %1941 = vrot.lane.b32.xlu1 %v5361_v51, %s4444_s15 }
 0x288   : > { %1947 = vrot.lane.b32.xlu0 %v5293_v19, %s4444_s15 }
 0x289   : > { %2194 = vrot.lane.b32.xlu2 %v5254_v28, %s4445_s16 }
 0x28a   : > { %v1640_v40 = vpop.permute.xlu0 %1639 }
 0x28f   : > { %2202 = vrot.lane.b32.xlu1 %v5220_v0, %s4445_s16 }
 0x290   : > { %1929 = vrot.lane.b32.xlu0 %v5387_v15, %s4444_s15 }
 0x291   : > { %2188 = vrot.lane.b32.xlu2 %v5266_v49, %s4445_s16 }
 0x293   : > { %v1614_v33 = vpop.permute.xlu2 %1613 }
 0x297   : > { %2198 = vrot.lane.b32.xlu1 %v5327_v30, %s4445_s16 }
 0x298   : > { %2196 = vrot.lane.b32.xlu0 %v5180_v11, %s4445_s16 }
 0x299   : > { %2182 = vrot.lane.b32.xlu2 %v5273_v26, %s4445_s16 }
 0x29a   : > { %v1646_v13 = vpop.permute.xlu0 %1645 }
 0x29b   : > { %v1608_v42 = vpop.permute.xlu2 %1607  ;;  %v1667_v20 = vsel %vm1653_vm4, %v5311_v17, %v1646_v13  ;;  %v1665_v17 = vsel %vm1653_vm4, %v5322_v3, %v1640_v40 }
 0x29f   : > { %2192 = vrot.lane.b32.xlu1 %v5315_v16, %s4445_s16 }
 0x2a0   : > { %2190 = vrot.lane.b32.xlu0 %v5205_v62, %s4445_s16 }
 0x2a1   : > { %2176 = vrot.lane.b32.xlu2 %v5280_v56, %s4445_s16 }
 0x2a3   : > { %v5469_v4 = vpop.permute.xlu2 %1969 }
 0x2a7   : > { %2186 = vrot.lane.b32.xlu1 %v5303_v52, %s4445_s16 }
 0x2a8   : > { %2184 = vrot.lane.b32.xlu0 %v5218_v8, %s4445_s16 }
 0x2a9   : > { %2170 = vrot.lane.b32.xlu2 %v5287_v5, %s4445_s16 }
 0x2aa   : > { %v1652_v43 = vpop.permute.xlu0 %1651 }
 0x2ab   : > { %v1669_v55 = vsel %vm1653_vm4, %v5353_v25, %v1652_v43  ;;  %v5479_v44 = vpop.permute.xlu2 %1955  ;;  %v5493_v25 = vld [vmem:[%s7048_s4] sm:$0xff] }
 0x2ac   : > { %1723 = vmatpush.bf16.msrb.mxu3 %v1669_v55  ;;  %1871 = vmatmul.bf16.vlgmr.msra.gmra.mxu1 %v5493_v25 }
 0x2ad   : > { %1842 = vmatmul.bf16.vlgmr.msra.gmra.mxu0 %v5493_v25 }
 0x2af   : > { %2180 = vrot.lane.b32.xlu1 %v5293_v19, %s4445_s16 }
 0x2b0   : > { %2178 = vrot.lane.b32.xlu0 %v5109_v45, %s4445_s16  ;;  %1724 = vmatpush.bf16.msrb.mxu3 %v1667_v20 }
 0x2b1   : > { %v1612_v35 = vpop.permute.xlu1 %1611  ;;  %2164 = vrot.lane.b32.xlu2 %v5356_v10, %s4445_s16 }
 0x2b2   : > { %v1622_v23 = vpop.permute.xlu0 %1621  ;;  %v1656_v39 = vsel %vm1653_vm4, %v1612_v35, %v1614_v33 }
 0x2b3   : > { %1700 = vmatpush.bf16.msrb.mxu2 %v1656_v39  ;;  %v5497_v41 = vpop.permute.xlu2 %1951  ;;  %v1659_v14 = vsel %vm1653_vm4, %v5413_v24, %v1622_v23  ;;  %v5624_v39 = vld [vmem:[%s7048_s4 + $0x38] sm:$0xff] }
 0x2b4   : > { %1725 = vmatpush.bf16.msrb.mxu3 %v1665_v17 }
 0x2b7   : > { %2174 = vrot.lane.b32.xlu1 %v5361_v51, %s4445_s16 }
 0x2b8   : > { %2172 = vrot.lane.b32.xlu0 %v5091_v12, %s4445_s16  ;;  %1726 = vmatpush.bf16.msrb.mxu3 %v1663_v36 }
 0x2b9   : > { %v1606_v58 = vpop.permute.xlu1 %1605  ;;  %2435 = vrot.lane.b32.xlu2 %v5220_v0, %s4446_s18 }
 0x2ba   : > { %v1616_v3 = vpop.permute.xlu0 %1615  ;;  %v1654_v57 = vsel %vm1653_vm4, %v1606_v58, %v1608_v42 }
 0x2bb   : > { %1701 = vmatpush.bf16.msrb.mxu2 %v1654_v57  ;;  %v5519_v21 = vpop.permute.xlu2 %1937  ;;  %v1657_v1 = vsel %vm1653_vm4, %v1614_v33, %v1616_v3 }
 0x2bc   : > { %1727 = vmatpush.bf16.msrb.mxu3 %v1661_v37  ;;  %1876 = vmatmul.bf16.gmra.mxu1 %v5533_v31 }
 0x2bd   : > { %1847 = vmatmul.bf16.gmra.mxu0 %v5533_v31 }
 0x2be   : > { %1702 = vmatmul.bf16.vlgmr.msrb.gmra.mxu2 %v5514_v7 }
 0x2bf   : > { %1752 = vmatpush.bf16.msra.mxu2 %v1652_v43  ;;  %2168 = vrot.lane.b32.xlu1 %v5375_v2, %s4445_s16 }
 0x2c0   : > { %2166 = vrot.lane.b32.xlu0 %v5345_v54, %s4445_s16  ;;  %1728 = vmatpush.bf16.msrb.mxu3 %v1659_v14 }
 0x2c1   : > { %v1968_v59 = vpop.permute.xlu1 %1967  ;;  %2421 = vrot.lane.b32.xlu2 %v5266_v49, %s4446_s18 }
 0x2c2   : > { %v1610_v29 = vpop.permute.xlu0 %1609  ;;  %v1988_v61 = vsel %vm1973_vm5, %v1968_v59, %v5469_v4 }
 0x2c3   : > { %1753 = vmatpush.bf16.msra.mxu2 %v1646_v13  ;;  %v5536_v50 = vpop.permute.xlu2 %1933  ;;  %v1655_v46 = vsel %vm1653_vm4, %v1608_v42, %v1610_v29 }
 0x2c4   : > { %1729 = vmatpush.bf16.msrb.mxu3 %v1657_v1 }
 0x2c7   : > { %1754 = vmatpush.bf16.msra.mxu2 %v1640_v40  ;;  %2162 = vrot.lane.b32.xlu1 %v5387_v15, %s4445_s16 }
 0x2c8   : > { %2160 = vrot.lane.b32.xlu0 %v5049_v63, %s4445_s16  ;;  %1730 = vmatpush.bf16.msrb.mxu3 %v1655_v46 }
 0x2c9   : > { %v5546_v9 = vpop.permute.xlu1 %1963  ;;  %1971 = vrot.lane.b32.xlu2 %v5342_v38, %s4444_s15 }
 0x2ca   : > { %v1962_v34 = vpop.permute.xlu0 %1961 }
 0x2cb   : > { %1755 = vmatpush.bf16.msra.mxu2 %v5455_v60  ;;  %1731 = vmatmul.bf16.vlgmr.msrb.gmra.mxu3 %v5514_v7  ;;  %v5557_v47 = vpop.permute.xlu2 %1953  ;;  %v5589_v60 = vld [vmem:[%s7048_s4 + $0x30] sm:$0xff]  ;;  %v1986_v40 = vsel %vm1973_vm5, %v1962_v34, %v5546_v9 }
 0x2cc   : > { %1805 = vmatpush.bf16.msra.mxu3 %v5244_v18 }
 0x2ce   : > { %1707 = vmatmul.bf16.gmra.mxu2 %v5552_v22 }
 0x2cf   : > { %1756 = vmatpush.bf16.msra.mxu2 %v5447_v27  ;;  %2433 = vrot.lane.b32.xlu1 %v5244_v18, %s4446_s18 }
 0x2d0   : > { %1806 = vmatpush.bf16.msra.mxu3 %v5254_v28  ;;  %2158 = vrot.lane.b32.xlu0 %v5371_v48, %s4445_s16 }
 0x2d1   : > { %v1950_v32 = vpop.permute.xlu1 %1949  ;;  %2417 = vrot.lane.b32.xlu2 %v5218_v8, %s4446_s18 }
 0x2d2   : > { %v5567_v53 = vpop.permute.xlu0 %1957  ;;  %v1982_v20 = vsel %vm1973_vm5, %v1950_v32, %v5497_v41  ;;  %v5681_v32 = vld [vmem:[%s7048_s4 + $0x10] sm:$0xff] }
 0x2d3   : > { %1757 = vmatpush.bf16.msra.mxu2 %v1622_v23  ;;  %v5571_v24 = vpop.permute.xlu2 %1935  ;;  %v1984_v13 = vsel %vm1973_vm5, %v5479_v44, %v5567_v53  ;;  %1881 = vmatmul.bf16.gmra.mxu1 %v5681_v32 }
 0x2d4   : > { %1807 = vmatpush.bf16.msra.mxu3 %v5266_v49 }
 0x2d7   : > { %1758 = vmatpush.bf16.msra.mxu2 %v1616_v3  ;;  %2429 = vrot.lane.b32.xlu1 %v5180_v11, %s4446_s18 }
 0x2d8   : > { %1808 = vmatpush.bf16.msra.mxu3 %v5273_v26  ;;  %2427 = vrot.lane.b32.xlu0 %v5254_v28, %s4446_s18 }
 0x2d9   : > { %v5580_v6 = vpop.permute.xlu1 %1945  ;;  %2403 = vrot.lane.b32.xlu2 %v5287_v5, %s4446_s18 }
 0x2da   : > { %v1944_v27 = vpop.permute.xlu0 %1943 }
 0x2db   : > { %1759 = vmatpush.bf16.msra.mxu2 %v1610_v29  ;;  %1736 = vmatmul.bf16.gmra.mxu3 %v5552_v22  ;;  %v2201_v33 = vpop.permute.xlu2 %2200  ;;  %v1980_v35 = vsel %vm1973_vm5, %v1944_v27, %v5580_v6 }
 0x2dc   : > { %1809 = vmatpush.bf16.msra.mxu3 %v5280_v56 }
 0x2de   : > { %1712 = vmatmul.bf16.gmra.mxu2 %v5589_v60 }
 0x2df   : > { %2014 = vmatpush.bf16.msrb.mxu2 %v1988_v61  ;;  %2415 = vrot.lane.b32.xlu1 %v5273_v26, %s4446_s18 }
 0x2e0   : > { %1810 = vmatpush.bf16.msra.mxu3 %v5287_v5  ;;  %2423 = vrot.lane.b32.xlu0 %v5205_v62, %s4446_s18 }
 0x2e1   : > { %v1932_v42 = vpop.permute.xlu1 %1931  ;;  %2399 = vrot.lane.b32.xlu2 %v5345_v54, %s4446_s18 }
 0x2e2   : > { %v5603_v43 = vpop.permute.xlu0 %1939  ;;  %v1976_v3 = vsel %vm1973_vm5, %v1932_v42, %v5536_v50 }
 0x2e3   : > { %2015 = vmatpush.bf16.msrb.mxu2 %v1986_v40  ;;  %v2195_v55 = vpop.permute.xlu2 %2194  ;;  %v1978_v36 = vsel %vm1973_vm5, %v5519_v21, %v5603_v43 }
 0x2e4   : > { %1811 = vmatpush.bf16.msra.mxu3 %v5356_v10 }
 0x2e7   : > { %2016 = vmatpush.bf16.msrb.mxu2 %v1984_v13  ;;  %2411 = vrot.lane.b32.xlu1 %v5109_v45, %s4446_s18 }
 0x2e8   : > { %1812 = vmatpush.bf16.msra.mxu3 %v5371_v48  ;;  %2409 = vrot.lane.b32.xlu0 %v5280_v56, %s4446_s18 }
 0x2e9   : > { %v5615_v44 = vpop.permute.xlu1 %1927  ;;  %2204 = vrot.lane.b32.xlu2 %v5342_v38, %s4445_s16  ;;  %s4450_s16 = smov 90  }
 0x2ea   : > { %v1926_v23 = vpop.permute.xlu0 %1925 }
 0x2eb   : > { %2017 = vmatpush.bf16.msrb.mxu2 %v1982_v20  ;;  %1741 = vmatmul.bf16.gmra.mxu3 %v5589_v60  ;;  %v2189_v17 = vpop.permute.xlu2 %2188  ;;  %v1974_v21 = vsel %vm1973_vm5, %v1926_v23, %v5615_v44 }
 0x2ec   : > { %4294 = vmatpush.bf16.msrb.mxu3 %v5220_v0 }
 0x2ee   : > { %1717 = vmatmul.bf16.gmra.mxu2 %v5624_v39 }
 0x2ef   : > { %2018 = vmatpush.bf16.msrb.mxu2 %v1980_v35  ;;  %2397 = vrot.lane.b32.xlu1 %v5356_v10, %s4446_s18 }
 0x2f0   : > { %4295 = vmatpush.bf16.msrb.mxu3 %v5180_v11  ;;  %2405 = vrot.lane.b32.xlu0 %v5091_v12, %s4446_s18 }
 0x2f1   : > { %v5637_v58 = vpop.permute.xlu1 %1959  ;;  %2393 = vrot.lane.b32.xlu2 %v5049_v63, %s4446_s18 }
 0x2f2   : > { %v5641_v57 = vpop.permute.xlu0 %1965 }
 0x2f3   : > { %2019 = vmatpush.bf16.msrb.mxu2 %v1978_v36  ;;  %v2183_v37 = vpop.permute.xlu2 %2182 }
 0x2f4   : > { %4296 = vmatpush.bf16.msrb.mxu3 %v5205_v62 }
 0x2f7   : > { %2020 = vmatpush.bf16.msrb.mxu2 %v1976_v3  ;;  %2391 = vrot.lane.b32.xlu1 %v5371_v48, %s4446_s18 }
 0x2f8   : > { %4297 = vmatpush.bf16.msrb.mxu3 %v5218_v8  ;;  %2431 = vrot.lane.b32.xlu0 %v5327_v30, %s4446_s18 }
 0x2f9   : > { %v5653_v14 = vpop.permute.xlu1 %1941  ;;  %2419 = vrot.lane.b32.xlu2 %v5303_v52, %s4446_s18 }
 0x2fa   : > { %v5655_v59 = vpop.permute.xlu0 %1947 }
 0x2fb   : > { %2021 = vmatpush.bf16.msrb.mxu2 %v1974_v21  ;;  %1746 = vmatmul.bf16.gmra.mxu3 %v5624_v39  ;;  %v2177_v29 = vpop.permute.xlu2 %2176 }
 0x2fc   : > { %4298 = vmatpush.bf16.msrb.mxu3 %v5109_v45 }
 0x2fe   : > { %1760 = vmatmul.bf16.vlgmr.msra.gmra.mxu2 %v5514_v7 }
 0x2ff   : > { %2425 = vrot.lane.b32.xlu1 %v5315_v16, %s4446_s18 }
 0x300   : > { %4299 = vmatpush.bf16.msrb.mxu3 %v5091_v12  ;;  %2413 = vrot.lane.b32.xlu0 %v5293_v19, %s4446_s18 }
 0x301   : > { %v5667_v1 = vpop.permute.xlu1 %2202  ;;  %2401 = vrot.lane.b32.xlu2 %v5375_v2, %s4446_s18 }
 0x302   : > { %v5669_v46 = vpop.permute.xlu0 %1929  ;;  %v2221_v34 = vsel %vm2206_vm6, %v2201_v33, %v5667_v1 }
 0x303   : > { %2247 = vmatpush.bf16.msrb.mxu1 %v2221_v34  ;;  %v2171_v7 = vpop.permute.xlu2 %2170 }
 0x304   : > { %4300 = vmatpush.bf16.msrb.mxu3 %v5345_v54 }
 0x307   : > { %2407 = vrot.lane.b32.xlu1 %v5361_v51, %s4446_s18 }
 0x308   : > { %4301 = vmatpush.bf16.msrb.mxu3 %v5049_v63  ;;  %2395 = vrot.lane.b32.xlu0 %v5387_v15, %s4446_s18 }
 0x309   : > { %v5685_v61 = vpop.permute.xlu1 %2198  ;;  %2668 = vrot.lane.b32.xlu2 %v5220_v0, %s4447_s13 }
 0x30a   : > { %v5688_v27 = vpop.permute.xlu0 %2196 }
 0x30b   : > { %1813 = vmatmul.bf16.vlgmr.msra.gmra.mxu3 %v5493_v25  ;;  %v2219_v33 = vsel %vm2206_vm6, %v2195_v55, %v5688_v27  ;;  %v2165_v40 = vpop.permute.xlu2 %2164 }
 0x30c   : > { %2248 = vmatpush.bf16.msrb.mxu1 %v2219_v33 }
 0x30e   : > { %1765 = vmatmul.bf16.gmra.mxu2 %v5552_v22  ;;  %v5715_v22 = vld [vmem:[%s7048_s4 + $0x18] sm:$0xff] }
 0x30f   : > { %2666 = vrot.lane.b32.xlu1 %v5244_v18, %s4447_s13  ;;  %1886 = vmatmul.bf16.gmra.mxu1 %v5715_v22 }
 0x310   : > { %2660 = vrot.lane.b32.xlu0 %v5254_v28, %s4447_s13 }
 0x311   : > { %v5700_v42 = vpop.permute.xlu1 %2192  ;;  %2664 = vrot.lane.b32.xlu2 %v5327_v30, %s4447_s13 }
 0x312   : > { %v5702_v25 = vpop.permute.xlu0 %2190 }
 0x313   : > { %v2217_v13 = vsel %vm2206_vm6, %v2189_v17, %v5702_v25  ;;  %v5708_v55 = vpop.permute.xlu2 %2435 }
 0x314   : > { %2249 = vmatpush.bf16.msrb.mxu1 %v2217_v13 }
 0x317   : > { %2662 = vrot.lane.b32.xlu1 %v5180_v11, %s4447_s13 }
 0x318   : > { %2654 = vrot.lane.b32.xlu0 %v5266_v49, %s4447_s13 }
 0x319   : > { %v5719_v20 = vpop.permute.xlu1 %2186  ;;  %2658 = vrot.lane.b32.xlu2 %v5315_v16, %s4447_s13 }
 0x31a   : > { %v5722_v35 = vpop.permute.xlu0 %2184 }
 0x31b   : > { %1818 = vmatmul.bf16.gmra.mxu3 %v5533_v31  ;;  %v2215_v23 = vsel %vm2206_vm6, %v2183_v37, %v5722_v35  ;;  %v5729_v17 = vpop.permute.xlu2 %2421 }
 0x31c   : > { %2250 = vmatpush.bf16.msrb.mxu1 %v2215_v23 }
 0x31e   : > { %1770 = vmatmul.bf16.gmra.mxu2 %v5589_v60 }
 0x31f   : > { %2656 = vrot.lane.b32.xlu1 %v5205_v62, %s4447_s13 }
 0x320   : > { %2648 = vrot.lane.b32.xlu0 %v5273_v26, %s4447_s13 }
 0x321   : > { %v5736_v36 = vpop.permute.xlu1 %2180  ;;  %2652 = vrot.lane.b32.xlu2 %v5303_v52, %s4447_s13 }
 0x322   : > { %v5738_v31 = vpop.permute.xlu0 %2178 }
 0x323   : > { %v2213_v3 = vsel %vm2206_vm6, %v2177_v29, %v5738_v31  ;;  %v1972_v37 = vpop.permute.xlu2 %1971  ;;  %v1987_v29 = vsel %vm1973_vm5, %v5546_v9, %v5641_v57  ;;  %v1985_v9 = vsel %vm1973_vm5, %v5567_v53, %v5637_v58 }
 0x324   : > { %2251 = vmatpush.bf16.msrb.mxu1 %v2213_v3  ;;  %v1989_v60 = vsel %vm1973_vm5, %v5469_v4, %v1972_v37  ;;  %2072 = vmatpush.bf16.msrb.mxu0 %v1972_v37  ;;  %v1975_v3 = vsel %vm1973_vm5, %v5615_v44, %v5669_v46 }
 0x325   : > { %2043 = vmatpush.bf16.msra.mxu3 %v1989_v60  ;;  %v5836_v60 = vld [vmem:[%s7048_s4 + $0x60] sm:$0xff] }
 0x327   : > { %2650 = vrot.lane.b32.xlu1 %v5218_v8, %s4447_s13 }
 0x328   : > { %2642 = vrot.lane.b32.xlu0 %v5280_v56, %s4447_s13  ;;  %2073 = vmatpush.bf16.msrb.mxu0 %v5641_v57 }
 0x329   : > { %v5750_v21 = vpop.permute.xlu1 %2174  ;;  %2044 = vmatpush.bf16.msra.mxu3 %v1987_v29  ;;  %2646 = vrot.lane.b32.xlu2 %v5293_v19, %s4447_s13 }
 0x32a   : > { %v5756_v34 = vpop.permute.xlu0 %2172 }
 0x32b   : > { %1823 = vmatmul.bf16.gmra.mxu3 %v5681_v32  ;;  %v2211_v4 = vsel %vm2206_vm6, %v2171_v7, %v5756_v34  ;;  %v5763_v33 = vpop.permute.xlu2 %2417  ;;  %v1983_v7 = vsel %vm1973_vm5, %v5497_v41, %v5557_v47 }
 0x32c   : > { %2252 = vmatpush.bf16.msrb.mxu1 %v2211_v4  ;;  %2074 = vmatpush.bf16.msrb.mxu0 %v5637_v58  ;;  %v1981_v58 = vsel %vm1973_vm5, %v5580_v6, %v5655_v59  ;;  %v5808_v6 = vld [vmem:[%s7048_s4 + $0x40] sm:$0xff] }
 0x32d   : > { %2045 = vmatpush.bf16.msra.mxu3 %v1985_v9 }
 0x32e   : > { %1775 = vmatmul.bf16.gmra.mxu2 %v5624_v39 }
 0x32f   : > { %2644 = vrot.lane.b32.xlu1 %v5109_v45, %s4447_s13 }
 0x330   : > { %2636 = vrot.lane.b32.xlu0 %v5287_v5, %s4447_s13  ;;  %2075 = vmatpush.bf16.msrb.mxu0 %v5557_v47  ;;  %v1979_v47 = vsel %vm1973_vm5, %v5603_v43, %v5653_v14  ;;  %v1977_v43 = vsel %vm1973_vm5, %v5536_v50, %v5571_v24 }
 0x331   : > { %v5774_v57 = vpop.permute.xlu1 %2168  ;;  %2046 = vmatpush.bf16.msra.mxu3 %v1983_v7  ;;  %2640 = vrot.lane.b32.xlu2 %v5361_v51, %s4447_s13  ;;  %v1843_v7 = vpop.f32.mrf.mxu0 }
 0x332   : > { %v5780_v13 = vpop.permute.xlu0 %2166 }
 0x333   : > { %v2209_v53 = vsel %vm2206_vm6, %v2165_v40, %v5780_v13  ;;  %v5786_v39 = vpop.permute.xlu2 %2403 }
 0x334   : > { %2253 = vmatpush.bf16.msrb.mxu1 %v2209_v53  ;;  %2076 = vmatpush.bf16.msrb.mxu0 %v5655_v59  ;;  %v5858_v53 = vld [vmem:[%s7048_s4 + $0x48] sm:$0xff] }
 0x335   : > { %2047 = vmatpush.bf16.msra.mxu3 %v1981_v58  ;;  %v2220_v58 = vsel %vm2206_vm6, %v5688_v27, %v5685_v61  ;;  %v2218_v27 = vsel %vm2206_vm6, %v5702_v25, %v5700_v42  ;;  %v2216_v25 = vsel %vm2206_vm6, %v5722_v35, %v5719_v20  ;;  %v2214_v35 = vsel %vm2206_vm6, %v5738_v31, %v5736_v36 }
 0x336   : > { %v2212_v31 = vsel %vm2206_vm6, %v5756_v34, %v5750_v21 }
 0x337   : > { %2638 = vrot.lane.b32.xlu1 %v5091_v12, %s4447_s13 }
 0x338   : > { %2437 = vrot.lane.b32.xlu0 %v5342_v38, %s4446_s18  ;;  %2077 = vmatpush.bf16.msrb.mxu0 %v5653_v14  ;;  %s6901_s18 = scalar_lea.vmem [#allocation3], %s4318_s26 }
 0x339   : > { %v5796_v41 = vpop.permute.xlu1 %2162  ;;  %2048 = vmatpush.bf16.msra.mxu3 %v1979_v47  ;;  %2634 = vrot.lane.b32.xlu2 %v5375_v2, %s4447_s13  ;;  %s3657_s11 = sshll.u32 %s6901_s18, 4  ;;  %s3658_s11 = int_to_ptr.vmem [resolvable:$true] %s3657_s11 }
 0x33a   : > { %v5802_v40 = vpop.permute.xlu0 %2160 }
 0x33b   : > { %1828 = vmatmul.bf16.gmra.mxu3 %v5715_v22  ;;  %v5812_v59 = vpop.permute.xlu2 %2399 }
 0x33c   : > { %2078 = vmatpush.bf16.msrb.mxu0 %v5571_v24 }
 0x33d   : > { %2049 = vmatpush.bf16.msra.mxu3 %v1977_v43 }
 0x33e   : > { %2022 = vmatmul.bf16.vlgmr.msrb.gmra.mxu2 %v5808_v6 }
 0x33f   : > { %2632 = vrot.lane.b32.xlu1 %v5345_v54, %s4447_s13 }
 0x340   : > { %2630 = vrot.lane.b32.xlu0 %v5356_v10, %s4447_s13  ;;  %2079 = vmatpush.bf16.msrb.mxu0 %v5669_v46 }
 0x341   : > { %v2434_v14 = vpop.permute.xlu1 %2433  ;;  %v5823_v23 = vpop.f32.mrf.mxu2  ;;  %2050 = vmatpush.bf16.msra.mxu3 %v1975_v3  ;;  %2628 = vrot.lane.b32.xlu2 %v5387_v15, %s4447_s13 }
 0x342   : > { %v2454_v50 = vsel %vm2439_vm7, %v2434_v14, %v5708_v55  ;;  %v2159_v24 = vpop.permute.xlu0 %2158 }
 0x343   : > { %v2207_v37 = vsel %vm2206_vm6, %v2159_v24, %v5802_v40  ;;  %2080 = vmatmul.bf16.vlgmr.msrb.gmra.mxu0 %v5808_v6  ;;  %v2205_v44 = vpop.permute.xlu2 %2204 }
 0x344   : > { %2480 = vmatpush.bf16.msra.mxu0 %v2454_v50  ;;  %2254 = vmatpush.bf16.msrb.mxu1 %v2207_v37  ;;  %v2222_v46 = vsel %vm2206_vm6, %v5667_v1, %v2205_v44  ;;  %v5896_v37 = vpop.f32.mrf.mxu0 }
 0x345   : > { %2276 = vmatpush.bf16.msra.mxu2 %v2222_v46  ;;  %7078 = vst [vmem:[#allocation17_spill] sm:$0xff] %v5896_v37 }
 0x347   : > { %2626 = vrot.lane.b32.xlu1 %v5049_v63, %s4447_s13  ;;  %2255 = vmatmul.bf16.vlgmr.msrb.gmra.mxu1 %v5836_v60 }
 0x348   : > { %2624 = vrot.lane.b32.xlu0 %v5371_v48, %s4447_s13 }
 0x349   : > { %v5848_v29 = vpop.permute.xlu1 %2429  ;;  %v5850_v4 = vpop.f32.mrf.mxu2  ;;  %2887 = vrot.lane.b32.xlu2 %v5266_v49, %s4448_s10  ;;  %2277 = vmatpush.bf16.msra.mxu2 %v2220_v58 }
 0x34a   : > { %v2428_v9 = vpop.permute.xlu0 %2427 }
 0x34b   : > { %1852 = vmatmul.bf16.vlgmr.msrb.gmra.mxu3 %v5681_v32  ;;  %v2452_v1 = vsel %vm2439_vm7, %v2428_v9, %v5848_v29  ;;  %v5865_v32 = vpop.permute.xlu2 %2393 }
 0x34c   : > { %2305 = vmatpush.bf16.msrb.mxu3 %v2205_v44  ;;  %2481 = vmatpush.bf16.msra.mxu0 %v2452_v1  ;;  %v5924_v1 = vld [vmem:[%s7048_s4 + $0x50] sm:$0xff] }
 0x34d   : > { %2278 = vmatpush.bf16.msra.mxu2 %v2218_v27 }
 0x34e   : > { %v1732_v47 = vpop.f32.mrf.mxu3  ;;  %2027 = vmatmul.bf16.gmra.mxu2 %v5858_v53 }
 0x34f   : > { %2901 = vrot.lane.b32.xlu1 %v5220_v0, %s4448_s10  ;;  %v5870_v43 = vadd.f32 %v1843_v7, %v1732_v47  ;;  %v1848_v47 = vpop.f32.mrf.mxu0 }
 0x350   : > { %2306 = vmatpush.bf16.msrb.mxu3 %v5685_v61  ;;  %2899 = vrot.lane.b32.xlu0 %v5244_v18, %s4448_s10  ;;  %v5888_v61 = vld [vmem:[%s7048_s4 + $0x68] sm:$0xff] }
 0x351   : > { %7076 = vst [vmem:[#allocation15_spill] sm:$0xff] %v5870_v43  ;;  %v2416_v14 = vpop.permute.xlu1 %2415  ;;  %v5878_v3 = vpop.f32.mrf.mxu2  ;;  %2670 = vrot.lane.b32.xlu2 %v5342_v38, %s4447_s13  ;;  %2279 = vmatpush.bf16.msra.mxu2 %v2216_v25 }
 0x352   : > { %7077 = vst [vmem:[#allocation16_spill] sm:$0xff] %v5878_v3  ;;  %v5880_v50 = vpop.permute.xlu0 %2423 }
 0x353   : > { %v2450_v24 = vsel %vm2439_vm7, %v5729_v17, %v5880_v50  ;;  %2085 = vmatmul.bf16.gmra.mxu0 %v5858_v53  ;;  %v5899_v17 = vpop.permute.xlu2 %2419 }
 0x354   : > { %2307 = vmatpush.bf16.msrb.mxu3 %v5700_v42  ;;  %2482 = vmatpush.bf16.msra.mxu0 %v2450_v24  ;;  %v2448_v42 = vsel %vm2439_vm7, %v2416_v14, %v5763_v33 }
 0x355   : > { %2280 = vmatpush.bf16.msra.mxu2 %v2214_v35 }
 0x356   : > { %v5901_v44 = vpop.f32.mrf.mxu3 }
 0x357   : > { %7079 = vst [vmem:[#allocation18_spill] sm:$0xff] %v5901_v44  ;;  %2895 = vrot.lane.b32.xlu1 %v5180_v11, %s4448_s10  ;;  %2260 = vmatmul.bf16.gmra.mxu1 %v5888_v61 }
 0x358   : > { %2308 = vmatpush.bf16.msrb.mxu3 %v5719_v20  ;;  %2893 = vrot.lane.b32.xlu0 %v5254_v28, %s4448_s10 }
 0x359   : > { %2483 = vmatpush.bf16.msra.mxu0 %v2448_v42  ;;  %v5914_v46 = vpop.permute.xlu1 %2411  ;;  %v5916_v9 = vpop.f32.mrf.mxu2  ;;  %2883 = vrot.lane.b32.xlu2 %v5218_v8, %s4448_s10  ;;  %v5952_v42 = vld [vmem:[%s7048_s4 + $0x70] sm:$0xff] }
 0x35a   : > { %7080 = vst [vmem:[#allocation19_spill] sm:$0xff] %v5916_v9  ;;  %v2410_v7 = vpop.permute.xlu0 %2409  ;;  %2281 = vmatpush.bf16.msra.mxu2 %v2212_v31 }
 0x35b   : > { %1857 = vmatmul.bf16.gmra.mxu3 %v5715_v22  ;;  %v2446_v20 = vsel %vm2439_vm7, %v2410_v7, %v5914_v46  ;;  %v5932_v22 = vpop.permute.xlu2 %2401 }
 0x35c   : > { %2309 = vmatpush.bf16.msrb.mxu3 %v5736_v36  ;;  %v2210_v36 = vsel %vm2206_vm6, %v5780_v13, %v5774_v57 }
 0x35d   : > { %2484 = vmatpush.bf16.msra.mxu0 %v2446_v20 }
 0x35e   : > { %v1737_v58 = vpop.f32.mrf.mxu3  ;;  %2032 = vmatmul.bf16.gmra.mxu2 %v5924_v1 }
 0x35f   : > { %2881 = vrot.lane.b32.xlu1 %v5273_v26, %s4448_s10  ;;  %v5937_v27 = vadd.f32 %v1848_v47, %v1737_v58  ;;  %2282 = vmatpush.bf16.msra.mxu2 %v2210_v36 }
 0x360   : > { %2310 = vmatpush.bf16.msrb.mxu3 %v5750_v21  ;;  %2889 = vrot.lane.b32.xlu0 %v5205_v62, %s4448_s10  ;;  %v2208_v21 = vsel %vm2206_vm6, %v5802_v40, %v5796_v41 }
 0x361   : > { %7081 = vst [vmem:[#allocation20_spill] sm:$0xff] %v5937_v27  ;;  %v2398_v34 = vpop.permute.xlu1 %2397  ;;  %v5945_v14 = vpop.f32.mrf.mxu2  ;;  %2869 = vrot.lane.b32.xlu2 %v5287_v5, %s4448_s10 }
 0x362   : > { %7082 = vst [vmem:[#allocation21_spill] sm:$0xff] %v5945_v14  ;;  %v2406_v24 = vpop.permute.xlu0 %2405 }
 0x363   : > { %v2444_v25 = vsel %vm2439_vm7, %v5786_v39, %v2406_v24  ;;  %2283 = vmatpush.bf16.msra.mxu2 %v2208_v21  ;;  %2090 = vmatmul.bf16.gmra.mxu0 %v5924_v1  ;;  %v5961_v13 = vpop.permute.xlu2 %2668  ;;  %v1872_v21 = vpop.f32.mrf.mxu1 }
 0x364   : > { %2311 = vmatpush.bf16.msrb.mxu3 %v5774_v57  ;;  %2485 = vmatpush.bf16.msra.mxu0 %v2444_v25  ;;  %v2442_v57 = vsel %vm2439_vm7, %v2398_v34, %v5812_v59  ;;  %v6015_v25 = vld [vmem:[%s7048_s4 + $0x78] sm:$0xff] }
 0x366   : > { %v5963_v39 = vpop.f32.mrf.mxu3 }
 0x367   : > { %7083 = vst [vmem:[#allocation22_spill] sm:$0xff] %v5963_v39  ;;  %2877 = vrot.lane.b32.xlu1 %v5109_v45, %s4448_s10  ;;  %2265 = vmatmul.bf16.gmra.mxu1 %v5952_v42 }
 0x368   : > { %2312 = vmatpush.bf16.msrb.mxu3 %v5796_v41  ;;  %2875 = vrot.lane.b32.xlu0 %v5280_v56, %s4448_s10  ;;  %v5983_v41 = vld [vmem:[%s7048_s4 + $0x58] sm:$0xff] }
 0x369   : > { %2486 = vmatpush.bf16.msra.mxu0 %v2442_v57  ;;  %v2392_v40 = vpop.permute.xlu1 %2391  ;;  %v5973_v35 = vpop.f32.mrf.mxu2  ;;  %2865 = vrot.lane.b32.xlu2 %v5345_v54, %s4448_s10 }
 0x36a   : > { %7084 = vst [vmem:[#allocation23_spill] sm:$0xff] %v5973_v35  ;;  %v5975_v7 = vpop.permute.xlu0 %2431  ;;  %v2440_v20 = vsel %vm2439_vm7, %v2392_v40, %v5865_v32 }
 0x36b   : > { %2051 = vmatmul.bf16.vlgmr.msra.gmra.mxu3 %v5808_v6  ;;  %v5990_v31 = vsel %vm2439_vm7, %v5848_v29, %v5975_v7  ;;  %v5992_v58 = vpop.permute.xlu2 %2664  ;;  %v6044_v27 = vpop.f32.mrf.mxu1 }
 0x36c   : > { %7089 = vst [vmem:[#allocation28_spill] sm:$0xff] %v6044_v27 }
 0x36d   : > { %2487 = vmatpush.bf16.msra.mxu0 %v2440_v20 }
 0x36e   : > { %v5994_v47 = vpop.f32.mrf.mxu3  ;;  %2037 = vmatmul.bf16.gmra.mxu2 %v5983_v41 }
 0x36f   : > { %7085 = vst [vmem:[#allocation24_spill] sm:$0xff] %v5994_v47  ;;  %2863 = vrot.lane.b32.xlu1 %v5356_v10, %s4448_s10 }
 0x370   : > { %2871 = vrot.lane.b32.xlu0 %v5091_v12, %s4448_s10 }
 0x371   : > { %v6001_v6 = vpop.permute.xlu1 %2425  ;;  %v6003_v36 = vpop.f32.mrf.mxu2  ;;  %2885 = vrot.lane.b32.xlu2 %v5303_v52, %s4448_s10 }
 0x372   : > { %7086 = vst [vmem:[#allocation25_spill] sm:$0xff] %v6003_v36  ;;  %v6005_v34 = vpop.permute.xlu0 %2413  ;;  %v6010_v29 = vsel %vm2439_vm7, %v5880_v50, %v6001_v6 }
 0x373   : > { %2095 = vmatmul.bf16.gmra.mxu0 %v5983_v41  ;;  %v6020_v57 = vpop.permute.xlu2 %2658  ;;  %v1877_v35 = vpop.f32.mrf.mxu1 }
 0x376   : > { %v6022_v40 = vpop.f32.mrf.mxu3 }
 0x377   : > { %7087 = vst [vmem:[#allocation26_spill] sm:$0xff] %v6022_v40  ;;  %2859 = vrot.lane.b32.xlu1 %v5049_v63, %s4448_s10  ;;  %2270 = vmatmul.bf16.gmra.mxu1 %v6015_v25 }
 0x378   : > { %2857 = vrot.lane.b32.xlu0 %v5371_v48, %s4448_s10 }
 0x379   : > { %v6029_v50 = vpop.permute.xlu1 %2407  ;;  %v6031_v20 = vpop.f32.mrf.mxu2  ;;  %2867 = vrot.lane.b32.xlu2 %v5375_v2, %s4448_s10 }
 0x37a   : > { %7088 = vst [vmem:[#allocation27_spill] sm:$0xff] %v6031_v20  ;;  %v6033_v47 = vpop.permute.xlu0 %2395  ;;  %v6037_v39 = vsel %vm2439_vm7, %v2406_v24, %v6029_v50 }
 0x37b   : > { %2056 = vmatmul.bf16.gmra.mxu3 %v5858_v53  ;;  %v6042_v40 = vpop.permute.xlu2 %2652  ;;  %v6056_v53 = vld [vmem:[%s7048_s4 + $0x80] sm:$0xff] }
 0x37e   : > { %v6046_v37 = vpop.f32.mrf.mxu3  ;;  %2284 = vmatmul.bf16.vlgmr.msra.gmra.mxu2 %v5836_v60 }
 0x37f   : > { %7090 = vst [vmem:[#allocation29_spill] sm:$0xff] %v6046_v37  ;;  %2891 = vrot.lane.b32.xlu1 %v5315_v16, %s4448_s10 }
 0x380   : > { %2897 = vrot.lane.b32.xlu0 %v5327_v30, %s4448_s10 }
 0x381   : > { %v2667_v24 = vpop.permute.xlu1 %2666  ;;  %v1761_v20 = vpop.f32.mrf.mxu2  ;;  %2903 = vrot.lane.b32.xlu2 %v5342_v38, %s4448_s10 }
 0x382   : > { %v2687_v27 = vsel %vm2672_vm8, %v2667_v24, %v5961_v13  ;;  %v2661_v37 = vpop.permute.xlu0 %2660  ;;  %v6060_v44 = vadd.f32 %v1872_v21, %v1761_v20 }
 0x383   : > { %2713 = vmatpush.bf16.msra.mxu3 %v2687_v27  ;;  %2488 = vmatmul.bf16.vlgmr.msra.gmra.mxu0 %v6056_v53  ;;  %v6065_v36 = vpop.permute.xlu2 %2646 }
 0x386   : > { %v6067_v43 = vpop.f32.mrf.mxu3 }
 0x387   : > { %7091 = vst [vmem:[#allocation30_spill] sm:$0xff] %v6067_v43  ;;  %2873 = vrot.lane.b32.xlu1 %v5361_v51, %s4448_s10 }
 0x388   : > { %2879 = vrot.lane.b32.xlu0 %v5293_v19, %s4448_s10 }
 0x389   : > { %v6073_v24 = vpop.permute.xlu1 %2662  ;;  %v6075_v27 = vpop.f32.mrf.mxu2  ;;  %3136 = vrot.lane.b32.xlu2 %v5342_v38, %s4449_s29 }
 0x38a   : > { %7092 = vst [vmem:[#allocation31_spill] sm:$0xff] %v6075_v27  ;;  %v2655_v21 = vpop.permute.xlu0 %2654  ;;  %v2685_v20 = vsel %vm2672_vm8, %v2661_v37, %v6073_v24 }
 0x38b   : > { %2061 = vmatmul.bf16.gmra.mxu3 %v5924_v1  ;;  %v6082_v43 = vpop.permute.xlu2 %2640  ;;  %v6096_v1 = vld [vmem:[%s7048_s4 + $0x88] sm:$0xff] }
 0x38c   : > { %2714 = vmatpush.bf16.msra.mxu3 %v2685_v20  ;;  %7093 = vst [vmem:[#allocation32_spill] sm:$0xff] %v6096_v1  ;;  %v6098_v20 = vpop.f32.mrf.mxu1 }
 0x38d   : > { %7094 = vst [vmem:[#allocation33_spill] sm:$0xff] %v6098_v20 }
 0x38e   : > { %v6084_v14 = vpop.f32.mrf.mxu3  ;;  %2289 = vmatmul.bf16.gmra.mxu2 %v5888_v61 }
 0x38f   : > { %3134 = vrot.lane.b32.xlu1 %v5220_v0, %s4449_s29 }
 0x390   : > { %2861 = vrot.lane.b32.xlu0 %v5387_v15, %s4448_s10  ;;  %s3659_s10 = sshll.u32 %s3656_s9, 4  ;;  %s3660_s10 = int_to_ptr.hbm [resolvable:$true] %s3659_s10 }
 0x391   : > { %v6091_v37 = vpop.permute.xlu1 %2656  ;;  %v1766_v27 = vpop.f32.mrf.mxu2  ;;  %3132 = vrot.lane.b32.xlu2 %v5244_v18, %s4449_s29  ;;  %s4390_s14 = sshra.s32 %s3660_s10, 4  ;;  %s4391_s14 = int_to_ptr.hbm [resolvable:$true] %s4390_s14 }
 0x392   : > { %v2649_v38 = vpop.permute.xlu0 %2648  ;;  %v2683_v9 = vsel %vm2672_vm8, %v2655_v21, %v6091_v37  ;;  %v6102_v3 = vadd.f32 %v1877_v35, %v1766_v27  ;;  %s4392_s15 = scalar_lea.hbm %s4391_s14, 192  ;;  %p4397_p0 = scmp.lt.s32.totalorder %s4391_s14, %s7050_s6 }
 0x393   : > { %2715 = vmatpush.bf16.msra.mxu3 %v2683_v9  ;;  %2493 = vmatmul.bf16.gmra.mxu0 %v6096_v1  ;;  %v6107_v48 = vpop.permute.xlu2 %2634  ;;  %p4393_p11 = scmp.ne.s32.totalorder %s4391_s14, %s4392_s15 }
 0x394   : > { %7095 = vst [vmem:[#allocation34_spill] sm:$0xff] %v6102_v3  ;;  %v1882_v21 = vpop.f32.mrf.mxu1 }
 0x395   : > { %p4394_p12 = pnand %p4393_p11, %p4526_p5 }
 0x396   : > { %v6109_v0 = vpop.f32.mrf.mxu3 }
 0x397   : > { %3130 = vrot.lane.b32.xlu1 %v5327_v30, %s4449_s29  ;;  %p4395_p13 = pneg %p4394_p12 }
 0x398   : > { %3128 = vrot.lane.b32.xlu0 %v5180_v11, %s4449_s29 }
 0x399   : > { %v6115_v20 = vpop.permute.xlu1 %2650  ;;  %v6117_v9 = vpop.f32.mrf.mxu2  ;;  %3126 = vrot.lane.b32.xlu2 %v5254_v28, %s4449_s29 }
 0x39a   : > { %7096 = vst [vmem:[#allocation35_spill] sm:$0xff] %v6117_v9  ;;  %v2643_v35 = vpop.permute.xlu0 %2642  ;;  %v2681_v27 = vsel %vm2672_vm8, %v2649_v38, %v6115_v20 }
 0x39b   : > { %2066 = vmatmul.bf16.gmra.mxu3 %v5983_v41  ;;  %v6124_v1 = vpop.permute.xlu2 %2628  ;;  %v6138_v41 = vld [vmem:[%s7048_s4 + $0x90] sm:$0xff] }
 0x39c   : > { %2716 = vmatpush.bf16.msra.mxu3 %v2681_v27  ;;  %7097 = vst [vmem:[#allocation36_spill] sm:$0xff] %v6138_v41 }
 0x39e   : > { %v6126_v30 = vpop.f32.mrf.mxu3  ;;  %2294 = vmatmul.bf16.gmra.mxu2 %v5952_v42 }
 0x39f   : > { %3124 = vrot.lane.b32.xlu1 %v5315_v16, %s4449_s29 }
 0x3a0   : > { %3122 = vrot.lane.b32.xlu0 %v5205_v62, %s4449_s29  ;;  %v6149_v62 = vpop.f32.mrf.mxu1 }
 0x3a1   : > { %v6133_v38 = vpop.permute.xlu1 %2644  ;;  %v1771_v27 = vpop.f32.mrf.mxu2  ;;  %3120 = vrot.lane.b32.xlu2 %v5266_v49, %s4449_s29  ;;  %7098 = vst [vmem:[#allocation37_spill] sm:$0xff] %v6149_v62 }
 0x3a2   : > { %v2637_v9 = vpop.permute.xlu0 %2636  ;;  %v2679_v28 = vsel %vm2672_vm8, %v2643_v35, %v6133_v38  ;;  %v6142_v11 = vadd.f32 %v1882_v21, %v1771_v27 }
 0x3a3   : > { %2717 = vmatpush.bf16.msra.mxu3 %v2679_v28  ;;  %2498 = vmatmul.bf16.gmra.mxu0 %v6138_v41  ;;  %v6147_v16 = vpop.permute.xlu2 %2887 }
 0x3a6   : > { %v6151_v3 = vpop.f32.mrf.mxu3 }
 0x3a7   : > { %3118 = vrot.lane.b32.xlu1 %v5303_v52, %s4449_s29 }
 0x3a8   : > { %3116 = vrot.lane.b32.xlu0 %v5218_v8, %s4449_s29 }
 0x3a9   : > { %v6157_v28 = vpop.permute.xlu1 %2638  ;;  %v6159_v35 = vpop.f32.mrf.mxu2  ;;  %3114 = vrot.lane.b32.xlu2 %v5273_v26, %s4449_s29 }
 0x3aa   : > { %7099 = vst [vmem:[#allocation38_spill] sm:$0xff] %v6159_v35  ;;  %v2438_v21 = vpop.permute.xlu0 %2437  ;;  %v2677_v27 = vsel %vm2672_vm8, %v2637_v9, %v6157_v28 }
 0x3ab   : > { %v2455_v41 = vsel %vm2439_vm7, %v5708_v55, %v2438_v21  ;;  %2313 = vmatmul.bf16.vlgmr.msrb.gmra.mxu3 %v5836_v60  ;;  %2538 = vmatpush.bf16.msrb.mxu2 %v2438_v21  ;;  %v6168_v62 = vpop.permute.xlu2 %2670  ;;  %v1887_v55 = vpop.f32.mrf.mxu1 }
 0x3ac   : > { %2718 = vmatpush.bf16.msra.mxu3 %v2677_v27  ;;  %2509 = vmatpush.bf16.msra.mxu1 %v2455_v41  ;;  %v2688_v35 = vsel %vm2672_vm8, %v5961_v13, %v6168_v62  ;;  %v6191_v27 = vld [vmem:[%s7048_s4 + $0x98] sm:$0xff] }
 0x3ad   : > { %2742 = vmatpush.bf16.msrb.mxu0 %v2688_v35 }
 0x3ae   : > { %v6170_v52 = vpop.f32.mrf.mxu3  ;;  %2299 = vmatmul.bf16.gmra.mxu2 %v6015_v25 }
 0x3af   : > { %3112 = vrot.lane.b32.xlu1 %v5293_v19, %s4449_s29  ;;  %2539 = vmatpush.bf16.msrb.mxu2 %v5975_v7  ;;  %v2686_v7 = vsel %vm2672_vm8, %v6073_v24, %v5992_v58 }
 0x3b0   : > { %3110 = vrot.lane.b32.xlu0 %v5109_v45, %s4449_s29  ;;  %2510 = vmatpush.bf16.msra.mxu1 %v5990_v31 }
 0x3b1   : > { %v6182_v60 = vpop.permute.xlu1 %2632  ;;  %v1776_v9 = vpop.f32.mrf.mxu2  ;;  %3108 = vrot.lane.b32.xlu2 %v5280_v56, %s4449_s29  ;;  %2743 = vmatpush.bf16.msrb.mxu0 %v2686_v7 }
 0x3b2   : > { %v2631_v41 = vpop.permute.xlu0 %2630  ;;  %v6184_v21 = vadd.f32 %v1887_v55, %v1776_v9  ;;  %v2684_v9 = vsel %vm2672_vm8, %v6091_v37, %v6020_v57  ;;  %v2682_v37 = vsel %vm2672_vm8, %v6115_v20, %v6042_v40  ;;  %v2680_v20 = vsel %vm2672_vm8, %v6133_v38, %v6065_v36 }
 0x3b3   : > { %v2675_v13 = vsel %vm2672_vm8, %v2631_v41, %v6182_v60  ;;  %2540 = vmatpush.bf16.msrb.mxu2 %v6001_v6  ;;  %v6200_v31 = vpop.permute.xlu2 %2883  ;;  %2503 = vmatmul.bf16.gmra.mxu0 %v6191_v27  ;;  %v2449_v6 = vsel %vm2439_vm7, %v5763_v33, %v5899_v17  ;;  %v6217_v55 = vpop.f32.mrf.mxu1 }
 0x3b4   : > { %2719 = vmatpush.bf16.msra.mxu3 %v2675_v13  ;;  %2511 = vmatpush.bf16.msra.mxu1 %v6010_v29  ;;  %v6213_v29 = vpop.f32.mrf.mxu0 }
 0x3b5   : > { %2744 = vmatpush.bf16.msrb.mxu0 %v2684_v9 }
 0x3b6   : > { %v6202_v35 = vpop.f32.mrf.mxu3 }
 0x3b7   : > { %3106 = vrot.lane.b32.xlu1 %v5361_v51, %s4449_s29  ;;  %2541 = vmatpush.bf16.msrb.mxu2 %v5899_v17  ;;  %v2447_v17 = vsel %vm2439_vm7, %v5914_v46, %v6005_v34  ;;  %v1815_v46 = vadd.f32 %v6084_v14, %v5823_v23  ;;  %v2443_v23 = vsel %vm2439_vm7, %v5812_v59, %v5932_v22 }
 0x3b8   : > { %3104 = vrot.lane.b32.xlu0 %v5091_v12, %s4449_s29  ;;  %2512 = vmatpush.bf16.msra.mxu1 %v2449_v6 }
 0x3b9   : > { %v6215_v24 = vpop.permute.xlu1 %2626  ;;  %v6222_v41 = vpop.f32.mrf.mxu2  ;;  %3102 = vrot.lane.b32.xlu2 %v5287_v5, %s4449_s29  ;;  %2745 = vmatpush.bf16.msrb.mxu0 %v2682_v37 }
 0x3ba   : > { %v2625_v13 = vpop.permute.xlu0 %2624 }
 0x3bb   : > { %2318 = vmatmul.bf16.gmra.mxu3 %v5888_v61  ;;  %v2673_v33 = vsel %vm2672_vm8, %v2625_v13, %v6215_v24  ;;  %2542 = vmatpush.bf16.msrb.mxu2 %v6005_v34  ;;  %v6236_v7 = vpop.permute.xlu2 %2869 }
 0x3bc   : > { %2720 = vmatpush.bf16.msra.mxu3 %v2673_v33  ;;  %2513 = vmatpush.bf16.msra.mxu1 %v2447_v17 }
 0x3bd   : > { %2746 = vmatpush.bf16.msrb.mxu0 %v2680_v20 }
 0x3be   : > { %v6238_v61 = vpop.f32.mrf.mxu3 }
 0x3bf   : > { %3100 = vrot.lane.b32.xlu1 %v5375_v2, %s4449_s29  ;;  %2543 = vmatpush.bf16.msrb.mxu2 %v6029_v50 }
 0x3c0   : > { %3098 = vrot.lane.b32.xlu0 %v5345_v54, %s4449_s29  ;;  %2514 = vmatpush.bf16.msra.mxu1 %v6037_v39  ;;  %v2081_v6 = vpop.f32.mrf.mxu0 }
 0x3c1   : > { %v6248_v34 = vpop.permute.xlu1 %2901  ;;  %v2023_v9 = vpop.f32.mrf.mxu2  ;;  %v6254_v50 = vadd.f32 %v2081_v6, %v6060_v44  ;;  %3096 = vrot.lane.b32.xlu2 %v5356_v10, %s4449_s29  ;;  %v2678_v44 = vsel %vm2672_vm8, %v6157_v28, %v6082_v43  ;;  %v1817_v28 = vadd.f32 %v6109_v0, %v5850_v4 }
 0x3c2   : > { %v2900_v13 = vpop.permute.xlu0 %2899  ;;  %v2101_v33 = vadd.f32 %v2023_v9, %v1815_v46  ;;  %2747 = vmatpush.bf16.msrb.mxu0 %v2678_v44  ;;  %v2676_v46 = vsel %vm2672_vm8, %v6182_v60, %v6107_v48  ;;  %v7101_v60 = vld [vmem:[#allocation14_spill] sm:$0xff] }
 0x3c3   : > { %2544 = vmatpush.bf16.msrb.mxu2 %v5932_v22  ;;  %v6267_v39 = vpop.permute.xlu2 %2865  ;;  %v2920_v59 = vsel %vm2905_vm9, %v2900_v13, %v6248_v34  ;;  %v2441_v22 = vsel %vm2439_vm7, %v5865_v32, %v6033_v47  ;;  %v7100_v32 = vld [vmem:[#allocation8_spill] sm:$0xff] }
 0x3c4   : > { %v2256_v17 = vpop.f32.mrf.mxu1  ;;  %2515 = vmatpush.bf16.msra.mxu1 %v2443_v23 }
 0x3c5   : > { %v6260_v14 = vadd.f32 %v2256_v17, %v2101_v33  ;;  %v7102_v33 = vld [vmem:[#allocation16_spill] sm:$0xff] }
 0x3c6   : > { %v6269_v38 = vpop.f32.mrf.mxu3  ;;  %2748 = vmatpush.bf16.msrb.mxu0 %v2676_v46 }
 0x3c7   : > { %3094 = vrot.lane.b32.xlu1 %v5387_v15, %s4449_s29  ;;  %2545 = vmatpush.bf16.msrb.mxu2 %v6033_v47 }
 0x3c8   : > { %3092 = vrot.lane.b32.xlu0 %v5049_v63, %s4449_s29  ;;  %2516 = vmatpush.bf16.msra.mxu1 %v2441_v22  ;;  %v6288_v20 = vpop.f32.mrf.mxu0 }
 0x3c9   : > { %v6283_v37 = vpop.permute.xlu1 %2895  ;;  %v2025_v6 = vpop.f32.mrf.mxu2  ;;  %3367 = vrot.lane.b32.xlu2 %v7100_v32, %s4450_s16  ;;  %v7105_v32 = vld [vmem:[#allocation9_spill] sm:$0xff] }
 0x3ca   : > { %v2894_v9 = vpop.permute.xlu0 %2893  ;;  %v6291_v13 = vadd.f32 %v2025_v6, %v1817_v28  ;;  %2546 = vmatmul.bf16.vlgmr.msrb.gmra.mxu2 %v6056_v53  ;;  %v7103_v28 = vld [vmem:[#allocation34_spill] sm:$0xff] }
 0x3cb   : > { %2946 = vmatpush.bf16.msra.mxu2 %v2920_v59  ;;  %2323 = vmatmul.bf16.gmra.mxu3 %v5952_v42  ;;  %v2918_v0 = vsel %vm2905_vm9, %v2894_v9, %v6283_v37  ;;  %v6305_v47 = vpop.permute.xlu2 %2885  ;;  %v6310_v42 = vld [vmem:[%s7048_s4 + $0xa0] sm:$0xff] }
 0x3cc   : > { %2771 = vmatpush.bf16.msrb.mxu1 %v6168_v62  ;;  %v6298_v4 = vpop.f32.mrf.mxu1  ;;  %v2674_v62 = vsel %vm2672_vm8, %v6215_v24, %v6124_v1  ;;  %v1820_v24 = vadd.f32 %v6126_v30, %v7102_v33  ;;  %v7104_v9 = vld [vmem:[#allocation6_spill] sm:$0xff] }
 0x3cd   : > { %2517 = vmatmul.bf16.vlgmr.msra.gmra.mxu1 %v6056_v53  ;;  %2749 = vmatpush.bf16.msrb.mxu0 %v2674_v62 }
 0x3ce   : > { %v6313_v53 = vpop.f32.mrf.mxu3 }
 0x3cf   : > { %2947 = vmatpush.bf16.msra.mxu2 %v2918_v0  ;;  %3365 = vrot.lane.b32.xlu1 %v5244_v18, %s4450_s16 }
 0x3d0   : > { %2772 = vmatpush.bf16.msrb.mxu1 %v5992_v58  ;;  %3090 = vrot.lane.b32.xlu0 %v7101_v60, %s4449_s29  ;;  %v2086_v18 = vpop.f32.mrf.mxu0 }
 0x3d1   : > { %v2882_v17 = vpop.permute.xlu1 %2881  ;;  %2750 = vmatmul.bf16.vlgmr.msrb.gmra.mxu0 %v6310_v42  ;;  %v2028_v23 = vpop.f32.mrf.mxu2  ;;  %v6329_v46 = vadd.f32 %v2086_v18, %v7103_v28  ;;  %3353 = vrot.lane.b32.xlu2 %v5266_v49, %s4450_s16  ;;  %v7106_v49 = vld [vmem:[#allocation19_spill] sm:$0xff]  ;;  %v7109_v28 = vld [vmem:[#allocation21_spill] sm:$0xff] }
 0x3d2   : > { %v6323_v44 = vpop.permute.xlu0 %2889  ;;  %v2107_v58 = vadd.f32 %v2028_v23, %v1820_v24  ;;  %v2914_v0 = vsel %vm2905_vm9, %v2882_v17, %v6200_v31  ;;  %v6372_v18 = vld [vmem:[%s7048_s4 + $0xa8] sm:$0xff] }
 0x3d3   : > { %v2916_v59 = vsel %vm2905_vm9, %v6147_v16, %v6323_v44  ;;  %v6335_v6 = vpop.permute.xlu2 %2867 }
 0x3d4   : > { %2773 = vmatpush.bf16.msrb.mxu1 %v6020_v57  ;;  %v2261_v22 = vpop.f32.mrf.mxu1  ;;  %2948 = vmatpush.bf16.msra.mxu2 %v2916_v59  ;;  %v6343_v16 = vsel %vm2905_vm9, %v6267_v39, %v6335_v6 }
 0x3d5   : > { %v6331_v30 = vadd.f32 %v2261_v22, %v2107_v58  ;;  %v7107_v58 = vld [vmem:[#allocation32_spill] sm:$0xff] }
 0x3d6   : > { %v6338_v57 = vpop.f32.mrf.mxu3 }
 0x3d7   : > { %3361 = vrot.lane.b32.xlu1 %v7104_v9, %s4450_s16  ;;  %v1825_v9 = vadd.f32 %v6170_v52, %v7109_v28 }
 0x3d8   : > { %2774 = vmatpush.bf16.msrb.mxu1 %v6042_v40  ;;  %3359 = vrot.lane.b32.xlu0 %v7105_v32, %s4450_s16  ;;  %v1822_v40 = vadd.f32 %v6151_v3, %v7106_v49  ;;  %v6362_v59 = vpop.f32.mrf.mxu0 }
 0x3d9   : > { %2949 = vmatpush.bf16.msra.mxu2 %v2914_v0  ;;  %v6353_v62 = vpop.permute.xlu1 %2877  ;;  %v2030_v33 = vpop.f32.mrf.mxu2  ;;  %3349 = vrot.lane.b32.xlu2 %v5218_v8, %s4450_s16  ;;  %v7108_v8 = vld [vmem:[#allocation7_spill] sm:$0xff] }
 0x3da   : > { %v2876_v24 = vpop.permute.xlu0 %2875  ;;  %v6356_v23 = vadd.f32 %v2030_v33, %v1822_v40  ;;  %2551 = vmatmul.bf16.gmra.mxu2 %v7107_v58 }
 0x3db   : > { %2328 = vmatmul.bf16.gmra.mxu3 %v6015_v25  ;;  %v2912_v17 = vsel %vm2905_vm9, %v2876_v24, %v6353_v62 }
 0x3dc   : > { %2775 = vmatpush.bf16.msrb.mxu1 %v6065_v36  ;;  %v6365_v3 = vpop.f32.mrf.mxu1  ;;  %v2904_v36 = vpop.permute.xlu2 %2903 }
 0x3dd   : > { %2522 = vmatmul.bf16.gmra.mxu1 %v7107_v58  ;;  %2950 = vmatpush.bf16.msra.mxu2 %v2912_v17  ;;  %v2921_v22 = vsel %vm2905_vm9, %v6248_v34, %v2904_v36 }
 0x3de   : > { %v6375_v25 = vpop.f32.mrf.mxu3  ;;  %3004 = vmatpush.bf16.msra.mxu0 %v2904_v36  ;;  %2975 = vmatpush.bf16.msrb.mxu3 %v2921_v22  ;;  %v7111_v22 = vld [vmem:[#allocation36_spill] sm:$0xff] }
 0x3df   : > { %3347 = vrot.lane.b32.xlu1 %v5273_v26, %s4450_s16 }
 0x3e0   : > { %2776 = vmatpush.bf16.msrb.mxu1 %v6082_v43  ;;  %3355 = vrot.lane.b32.xlu0 %v7108_v8, %s4450_s16  ;;  %v2091_v49 = vpop.f32.mrf.mxu0  ;;  %v6430_v8 = vld [vmem:[%s7048_s4 + $0xb0] sm:$0xff] }
 0x3e1   : > { %v2864_v0 = vpop.permute.xlu1 %2863  ;;  %2755 = vmatmul.bf16.gmra.mxu0 %v6372_v18  ;;  %v2033_v43 = vpop.f32.mrf.mxu2  ;;  %v6393_v33 = vadd.f32 %v2091_v49, %v6142_v11  ;;  %3335 = vrot.lane.b32.xlu2 %v5287_v5, %s4450_s16  ;;  %v7110_v11 = vld [vmem:[#allocation23_spill] sm:$0xff] }
 0x3e2   : > { %v6387_v32 = vpop.permute.xlu0 %2871  ;;  %v2113_v34 = vadd.f32 %v2033_v43, %v1825_v9  ;;  %v1827_v58 = vadd.f32 %v6202_v35, %v7110_v11  ;;  %v7112_v9 = vld [vmem:[#allocation15_spill] sm:$0xff]  ;;  %v7113_v43 = vld [vmem:[#allocation25_spill] sm:$0xff] }
 0x3e3   : > { %v2910_v26 = vsel %vm2905_vm9, %v6236_v7, %v6387_v32  ;;  %v2908_v7 = vsel %vm2905_vm9, %v2864_v0, %v6267_v39 }
 0x3e4   : > { %2777 = vmatpush.bf16.msrb.mxu1 %v6107_v48  ;;  %v2266_v40 = vpop.f32.mrf.mxu1  ;;  %2951 = vmatpush.bf16.msra.mxu2 %v2910_v26  ;;  %v6399_v24 = vpop.permute.xlu2 %3136 }
 0x3e5   : > { %v6395_v52 = vadd.f32 %v2266_v40, %v2113_v34  ;;  %v1830_v34 = vadd.f32 %v6238_v61, %v7113_v43 }
 0x3e6   : > { %v6402_v48 = vpop.f32.mrf.mxu3 }
 0x3e7   : > { %3343 = vrot.lane.b32.xlu1 %v5109_v45, %s4450_s16 }
 0x3e8   : > { %2778 = vmatpush.bf16.msrb.mxu1 %v6124_v1  ;;  %3341 = vrot.lane.b32.xlu0 %v5280_v56, %s4450_s16  ;;  %v6420_v39 = vpop.f32.mrf.mxu0 }
 0x3e9   : > { %2952 = vmatpush.bf16.msra.mxu2 %v2908_v7  ;;  %v6412_v5 = vpop.permute.xlu1 %2859  ;;  %v2035_v17 = vpop.f32.mrf.mxu2  ;;  %3331 = vrot.lane.b32.xlu2 %v5345_v54, %s4450_s16 }
 0x3ea   : > { %v2858_v36 = vpop.permute.xlu0 %2857  ;;  %v6414_v1 = vadd.f32 %v2035_v17, %v1827_v58  ;;  %2556 = vmatmul.bf16.gmra.mxu2 %v7111_v22  ;;  %v7115_v17 = vld [vmem:[#allocation17_spill] sm:$0xff] }
 0x3eb   : > { %2721 = vmatmul.bf16.vlgmr.msra.gmra.mxu3 %v6310_v42  ;;  %v2906_v45 = vsel %vm2905_vm9, %v2858_v36, %v6412_v5 }
 0x3ec   : > { %v6423_v56 = vpop.f32.mrf.mxu1  ;;  %v3133_v35 = vpop.permute.xlu2 %3132 }
 0x3ed   : > { %2527 = vmatmul.bf16.gmra.mxu1 %v7111_v22  ;;  %2953 = vmatpush.bf16.msra.mxu2 %v2906_v45 }
 0x3ee   : > { %v2052_v28 = vpop.f32.mrf.mxu3 }
 0x3ef   : > { %v2102_v0 = vadd.f32 %v2052_v28, %v7112_v9  ;;  %3329 = vrot.lane.b32.xlu1 %v5356_v10, %s4450_s16  ;;  %v7117_v9 = vld [vmem:[#allocation27_spill] sm:$0xff] }
 0x3f0   : > { %3337 = vrot.lane.b32.xlu0 %v5091_v12, %s4450_s16  ;;  %v2096_v11 = vpop.f32.mrf.mxu0  ;;  %v7114_v12 = vld [vmem:[#allocation18_spill] sm:$0xff]  ;;  %v1832_v43 = vadd.f32 %v6269_v38, %v7117_v9 }
 0x3f1   : > { %v2892_v26 = vpop.permute.xlu1 %2891  ;;  %2760 = vmatmul.bf16.gmra.mxu0 %v6430_v8  ;;  %v2038_v54 = vpop.f32.mrf.mxu2  ;;  %v6443_v10 = vadd.f32 %v2096_v11, %v6184_v21  ;;  %v1846_v36 = vadd.f32 %v7115_v17, %v7114_v12  ;;  %3325 = vrot.lane.b32.xlu2 %v5049_v63, %s4450_s16  ;;  %v7116_v21 = vld [vmem:[#allocation13_spill] sm:$0xff]  ;;  %v7118_v38 = vld [vmem:[#allocation10_spill] sm:$0xff] }
 0x3f2   : > { %v2898_v49 = vpop.permute.xlu0 %2897  ;;  %v2119_v40 = vadd.f32 %v2038_v54, %v1830_v34 }
 0x3f3   : > { %3005 = vmatpush.bf16.msra.mxu0 %v2898_v49  ;;  %v2919_v7 = vsel %vm2905_vm9, %v6283_v37, %v2898_v49  ;;  %v2917_v37 = vsel %vm2905_vm9, %v6323_v44, %v2892_v26  ;;  %v2915_v44 = vsel %vm2905_vm9, %v6200_v31, %v6305_v47 }
 0x3f4   : > { %v2271_v58 = vpop.f32.mrf.mxu1  ;;  %2976 = vmatpush.bf16.msrb.mxu3 %v2919_v7  ;;  %v3127_v28 = vpop.permute.xlu2 %3126  ;;  %v7119_v7 = vld [vmem:[#allocation20_spill] sm:$0xff] }
 0x3f5   : > { %v6447_v61 = vadd.f32 %v2271_v58, %v2119_v40  ;;  %v7121_v58 = vld [vmem:[#allocation12_spill] sm:$0xff] }
 0x3f6   : > { %v2054_v22 = vpop.f32.mrf.mxu3 }
 0x3f7   : > { %v2105_v45 = vadd.f32 %v2054_v22, %v1846_v36  ;;  %3323 = vrot.lane.b32.xlu1 %v7101_v60, %s4450_s16  ;;  %3006 = vmatpush.bf16.msra.mxu0 %v2892_v26  ;;  %v6475_v26 = vld [vmem:[%s7048_s4 + $0xb8] sm:$0xff] }
 0x3f8   : > { %3369 = vrot.lane.b32.xlu0 %v7116_v21, %s4450_s16  ;;  %2977 = vmatpush.bf16.msrb.mxu3 %v2917_v37  ;;  %v6463_v60 = vpop.f32.mrf.mxu0 }
 0x3f9   : > { %v2874_v34 = vpop.permute.xlu1 %2873  ;;  %v2040_v54 = vpop.f32.mrf.mxu2  ;;  %3351 = vrot.lane.b32.xlu2 %v7118_v38, %s4450_s16 }
 0x3fa   : > { %v2880_v63 = vpop.permute.xlu0 %2879  ;;  %v6459_v49 = vadd.f32 %v2040_v54, %v1832_v43  ;;  %2561 = vmatmul.bf16.gmra.mxu2 %v6191_v27  ;;  %v7122_v54 = vld [vmem:[#allocation22_spill] sm:$0xff] }
 0x3fb   : > { %2726 = vmatmul.bf16.gmra.mxu3 %v6372_v18  ;;  %3007 = vmatpush.bf16.msra.mxu0 %v6305_v47  ;;  %v2913_v31 = vsel %vm2905_vm9, %v6353_v62, %v2880_v63  ;;  %v2911_v62 = vsel %vm2905_vm9, %v6387_v32, %v2874_v34 }
 0x3fc   : > { %2978 = vmatpush.bf16.msrb.mxu3 %v2915_v44  ;;  %v3121_v12 = vpop.permute.xlu2 %3120  ;;  %v6504_v44 = vld [vmem:[%s7048_s4 + $0xc0] sm:$0xff] }
 0x3fd   : > { %2532 = vmatmul.bf16.gmra.mxu1 %v6191_v27  ;;  %v7120_v27 = vld [vmem:[#allocation11_spill] sm:$0xff] }
 0x3fe   : > { %v2057_v40 = vpop.f32.mrf.mxu3 }
 0x3ff   : > { %v2108_v11 = vadd.f32 %v2057_v40, %v7119_v7  ;;  %3357 = vrot.lane.b32.xlu1 %v7120_v27, %s4450_s16  ;;  %3008 = vmatpush.bf16.msra.mxu0 %v2880_v63  ;;  %v7123_v40 = vld [vmem:[#allocation24_spill] sm:$0xff] }
 0x400   : > { %3363 = vrot.lane.b32.xlu0 %v7121_v58, %s4450_s16  ;;  %2979 = vmatpush.bf16.msrb.mxu3 %v2913_v31  ;;  %v2489_v9 = vpop.f32.mrf.mxu0 }
 0x401   : > { %v3135_v47 = vpop.permute.xlu1 %3134  ;;  %2765 = vmatmul.bf16.gmra.mxu0 %v6475_v26  ;;  %v2285_v22 = vpop.f32.mrf.mxu2  ;;  %v6493_v43 = vadd.f32 %v2489_v9, %v6260_v14  ;;  %3333 = vrot.lane.b32.xlu2 %v5375_v2, %s4450_s16 }
 0x402   : > { %v3153_v17 = vsel %vm3138_vm10, %v3133_v35, %v3135_v47  ;;  %v3154_v36 = vsel %vm3138_vm10, %v3135_v47, %v6399_v24  ;;  %v2862_v37 = vpop.permute.xlu0 %2861  ;;  %v6488_v21 = vadd.f32 %v2285_v22, %v2102_v0  ;;  %v1851_v35 = vadd.f32 %v6213_v29, %v7122_v54 }
 0x403   : > { %3179 = vmatpush.bf16.msra.mxu1 %v3153_v17  ;;  %3208 = vmatpush.bf16.msrb.mxu2 %v3154_v36  ;;  %v3526_v17 = vld [vmem:[%s7049_s5 + $0x18] sm:$0xff]  ;;  %v3527_v36 = vld [vmem:[%s7049_s5 + $0x20] sm:$0xff] }
 0x404   : > { %3009 = vmatpush.bf16.msra.mxu0 %v2874_v34  ;;  %2980 = vmatpush.bf16.msrb.mxu3 %v2911_v62 }
 0x406   : > { %v2059_v63 = vpop.f32.mrf.mxu3 }
 0x407   : > { %v2111_v0 = vadd.f32 %v2059_v63, %v1851_v35  ;;  %3339 = vrot.lane.b32.xlu1 %v5361_v51, %s4450_s16  ;;  %v3115_v51 = vpop.permute.xlu2 %3114 }
 0x408   : > { %3010 = vmatpush.bf16.msra.mxu0 %v6335_v6  ;;  %3345 = vrot.lane.b32.xlu0 %v5293_v19, %s4450_s16  ;;  %v6516_v6 = vpop.f32.mrf.mxu0  ;;  %v2907_v19 = vsel %vm2905_vm9, %v6412_v5, %v2862_v37 }
 0x409   : > { %2981 = vmatpush.bf16.msrb.mxu3 %v6343_v16  ;;  %v3131_v29 = vpop.permute.xlu1 %3130  ;;  %v2287_v14 = vpop.f32.mrf.mxu2  ;;  %v3523_v16 = vld [vmem:[%s7049_s5] sm:$0xff] }
 0x40a   : > { %v3129_v2 = vpop.permute.xlu0 %3128  ;;  %v6510_v32 = vadd.f32 %v2287_v14, %v2105_v45  ;;  %2954 = vmatmul.bf16.vlgmr.msra.gmra.mxu2 %v6504_v44  ;;  %v3524_v45 = vld [vmem:[%s7049_s5 + $0x8] sm:$0xff] }
 0x40b   : > { %2731 = vmatmul.bf16.gmra.mxu3 %v6430_v8  ;;  %v3151_v34 = vsel %vm3138_vm10, %v3127_v28, %v3129_v2  ;;  %v3152_v38 = vsel %vm3138_vm10, %v3129_v2, %v3131_v29  ;;  %v1854_v28 = vadd.f32 %v6313_v53, %v7123_v40  ;;  %3538 = vperm.xlu2 %4375, %v3524_v45  }
 0x40c   : > { %3011 = vmatpush.bf16.msra.mxu0 %v2862_v37  ;;  %3180 = vmatpush.bf16.msra.mxu1 %v3151_v34  ;;  %v3525_v37 = vld [vmem:[%s7049_s5 + $0x10] sm:$0xff] }
 0x40d   : > { %2779 = vmatmul.bf16.vlgmr.msrb.gmra.mxu1 %v6310_v42  ;;  %2982 = vmatpush.bf16.msrb.mxu3 %v2907_v19  ;;  %v3529_v34 = vld [vmem:[%s7049_s5 + $0x30] sm:$0xff] }
 0x40e   : > { %3209 = vmatpush.bf16.msrb.mxu2 %v3152_v38  ;;  %v2062_v42 = vpop.f32.mrf.mxu3  ;;  %v7125_v38 = vld [vmem:[#allocation29_spill] sm:$0xff] }
 0x40f   : > { %v2114_v7 = vadd.f32 %v2062_v42, %v1854_v28  ;;  %3533 = vperm.xlu1 %4374, %v3523_v16   ;;  %v1859_v19 = vadd.f32 %v6375_v25, %v7125_v38 }
 0x410   : > { %3327 = vrot.lane.b32.xlu0 %v5387_v15, %s4450_s16  ;;  %s4396_s16 = scalar_lea.hbm %s7050_s6, 384 }
 0x411   : > { %3237 = vmatpush.bf16.msra.mxu3 %v6399_v24  ;;  %v3125_v5 = vpop.permute.xlu1 %3124  ;;  %3012 = vmatmul.bf16.vlgmr.msra.gmra.mxu0 %v6504_v44  ;;  %v2290_v27 = vpop.f32.mrf.mxu2  ;;  %p4398_p1 = scmp.lt.s32.totalorder %s4396_s16, %s4392_s15 }
 0x412   : > { %v3123_v58 = vpop.permute.xlu0 %3122  ;;  %v6533_v31 = vadd.f32 %v2290_v27, %v2108_v11  ;;  %v2494_v24 = vpop.f32.mrf.mxu0  ;;  %v7124_v11 = vld [vmem:[#allocation26_spill] sm:$0xff] }
 0x413   : > { %v3149_v53 = vsel %vm3138_vm10, %v3121_v12, %v3123_v58  ;;  %v3150_v47 = vsel %vm3138_vm10, %v3123_v58, %v3125_v5  ;;  %v6541_v15 = vadd.f32 %v2494_v24, %v6331_v30  ;;  %v1856_v22 = vadd.f32 %v6338_v57, %v7124_v11  ;;  %v3109_v12 = vpop.permute.xlu2 %3108  ;;  %3553 = vperm.xlu2 %4375, %v3527_v36   ;;  %v6554_v30 = vld [vmem:[%s7048_s4 + $0xc8] sm:$0xff]  ;;  %p4399_p2 = por %p4398_p1, %p4397_p0 }
 0x414   : > { %3181 = vmatpush.bf16.msra.mxu1 %v3149_v53  ;;  %3210 = vmatpush.bf16.msrb.mxu2 %v3150_v47  ;;  %v7126_v47 = vld [vmem:[#allocation30_spill] sm:$0xff] }
 0x415   : > { %3238 = vmatpush.bf16.msra.mxu3 %v3131_v29  ;;  %v1861_v24 = vadd.f32 %v6402_v48, %v7126_v47  ;;  %p4400_p3 = pnand %p4399_p2, %p4395_p13 }
 0x416   : > { %v2064_v9 = vpop.f32.mrf.mxu3 }
 0x417   : > { %v2117_v62 = vadd.f32 %v2064_v9, %v1856_v22  ;;  %3548 = vperm.xlu1 %4374, %v3526_v17  }
 0x418   : > { %3543 = vperm.xlu0 %4373, %v3525_v37  }
 0x419   : > { %3239 = vmatpush.bf16.msra.mxu3 %v3125_v5  ;;  %v3119_v54 = vpop.permute.xlu1 %3118  ;;  %v2292_v35 = vpop.f32.mrf.mxu2 }
 0x41a   : > { %v3117_v63 = vpop.permute.xlu0 %3116  ;;  %v6556_v57 = vadd.f32 %v2292_v35, %v2111_v0  ;;  %2959 = vmatmul.bf16.gmra.mxu2 %v6554_v30  ;;  %v6562_v2 = vpop.f32.mrf.mxu0  ;;  %v3530_v0 = vld [vmem:[%s7049_s5 + $0x38] sm:$0xff] }
 0x41b   : > { %2736 = vmatmul.bf16.gmra.mxu3 %v6475_v26  ;;  %v3147_v29 = vsel %vm3138_vm10, %v3115_v51, %v3117_v63  ;;  %v3148_v14 = vsel %vm3138_vm10, %v3117_v63, %v3119_v54  ;;  %v3528_v51 = vld [vmem:[%s7049_s5 + $0x28] sm:$0xff]  ;;  %v3103_v45 = vpop.permute.xlu2 %3102  ;;  %3568 = vperm.xlu2 %4375, %v3530_v0  }
 0x41c   : > { %3211 = vmatpush.bf16.msrb.mxu2 %v3148_v14  ;;  %3182 = vmatpush.bf16.msra.mxu1 %v3147_v29 }
 0x41d   : > { %3240 = vmatpush.bf16.msra.mxu3 %v3119_v54  ;;  %2784 = vmatmul.bf16.gmra.mxu1 %v6372_v18 }
 0x41e   : > { %v2067_v16 = vpop.f32.mrf.mxu3 }
 0x41f   : > { %v2120_v18 = vadd.f32 %v2067_v16, %v1859_v19  ;;  %3563 = vperm.xlu1 %4374, %v3529_v34   ;;  %v7128_v34 = vld [vmem:[#allocation28_spill] sm:$0xff] }
 0x420   : > { %3558 = vperm.xlu0 %4373, %v3528_v51  }
 0x421   : > { %v3113_v40 = vpop.permute.xlu1 %3112  ;;  %3017 = vmatmul.bf16.gmra.mxu0 %v6554_v30  ;;  %v2295_v28 = vpop.f32.mrf.mxu2 }
 0x422   : > { %v3111_v42 = vpop.permute.xlu0 %3110  ;;  %3241 = vmatpush.bf16.msra.mxu3 %v3113_v40  ;;  %v6577_v5 = vadd.f32 %v2295_v28, %v2114_v7  ;;  %v2499_v58 = vpop.f32.mrf.mxu0  ;;  %v6589_v7 = vld [vmem:[%s7048_s4 + $0xd0] sm:$0xff] }
 0x423   : > { %v3145_v25 = vsel %vm3138_vm10, %v3109_v12, %v3111_v42  ;;  %v3146_v27 = vsel %vm3138_vm10, %v3111_v42, %v3113_v40  ;;  %v6582_v53 = vadd.f32 %v2499_v58, %v6395_v52  ;;  %v3097_v11 = vpop.permute.xlu2 %3096 }
 0x424   : > { %3183 = vmatpush.bf16.msra.mxu1 %v3145_v25  ;;  %3212 = vmatpush.bf16.msrb.mxu2 %v3146_v27 }
 0x426   : > { %v2069_v17 = vpop.f32.mrf.mxu3 }
 0x427   : > { %v2123_v36 = vadd.f32 %v2069_v17, %v1861_v24  ;;  %v6626_v17 = vpop.f32.mrf.mxu1 }
 0x429   : > { %v3107_v22 = vpop.permute.xlu1 %3106  ;;  %v2297_v12 = vpop.f32.mrf.mxu2 }
 0x42a   : > { %v3105_v37 = vpop.permute.xlu0 %3104  ;;  %3242 = vmatpush.bf16.msra.mxu3 %v3107_v22  ;;  %v6591_v9 = vadd.f32 %v2297_v12, %v2117_v62  ;;  %2964 = vmatmul.bf16.gmra.mxu2 %v6589_v7  ;;  %v6597_v54 = vpop.f32.mrf.mxu0  ;;  %v7130_v12 = vld [vmem:[#allocation33_spill] sm:$0xff] }
 0x42b   : > { %2983 = vmatmul.bf16.vlgmr.msrb.gmra.mxu3 %v6504_v44  ;;  %v3143_v52 = vsel %vm3138_vm10, %v3103_v45, %v3105_v37  ;;  %v3144_v48 = vsel %vm3138_vm10, %v3105_v37, %v3107_v22  ;;  %v7127_v44 = vld [vmem:[#allocation31_spill] sm:$0xff]  ;;  %v6608_v51 = vpop.permute.xlu2 %3367 }
 0x42c   : > { %3213 = vmatpush.bf16.msrb.mxu2 %v3144_v48  ;;  %3184 = vmatpush.bf16.msra.mxu1 %v3143_v52  ;;  %v1875_v0 = vadd.f32 %v7128_v34, %v7127_v44 }
 0x42d   : > { %2789 = vmatmul.bf16.gmra.mxu1 %v6430_v8 }
 0x42e   : > { %v2314_v35 = vpop.f32.mrf.mxu3  ;;  %v2106_v16 = vadd.f32 %v6288_v20, %v1875_v0 }
 0x42f   : > { %v2336_v63 = vadd.f32 %v2314_v35, %v6254_v50 }
 0x431   : > { %v3101_v29 = vpop.permute.xlu1 %3100  ;;  %3022 = vmatmul.bf16.gmra.mxu0 %v6589_v7  ;;  %v2300_v62 = vpop.f32.mrf.mxu2 }
 0x432   : > { %v3099_v14 = vpop.permute.xlu0 %3098  ;;  %3243 = vmatpush.bf16.msra.mxu3 %v3101_v29  ;;  %v6604_v38 = vadd.f32 %v2300_v62, %v2120_v18  ;;  %v2504_v50 = vpop.f32.mrf.mxu0  ;;  %v6617_v18 = vld [vmem:[%s7048_s4 + $0xd8] sm:$0xff] }
 0x433   : > { %v3141_v19 = vsel %vm3138_vm10, %v3097_v11, %v3099_v14  ;;  %v3142_v8 = vsel %vm3138_vm10, %v3099_v14, %v3101_v29  ;;  %v6612_v45 = vadd.f32 %v2504_v50, %v6447_v61  ;;  %v3354_v61 = vpop.permute.xlu2 %3353  ;;  %v6640_v29 = vld [vmem:[%s7048_s4 + $0xe0] sm:$0xff] }
 0x434   : > { %3185 = vmatpush.bf16.msra.mxu1 %v3141_v19  ;;  %3214 = vmatpush.bf16.msrb.mxu2 %v3142_v8 }
 0x436   : > { %v2316_v40 = vpop.f32.mrf.mxu3 }
 0x437   : > { %v2339_v28 = vadd.f32 %v2316_v40, %v2106_v16 }
 0x439   : > { %v3095_v42 = vpop.permute.xlu1 %3094  ;;  %v2302_v25 = vpop.f32.mrf.mxu2 }
 0x43a   : > { %v3093_v27 = vpop.permute.xlu0 %3092  ;;  %3244 = vmatpush.bf16.msra.mxu3 %v3095_v42  ;;  %v6619_v58 = vadd.f32 %v2302_v25, %v2123_v36  ;;  %2969 = vmatmul.bf16.gmra.mxu2 %v6617_v18  ;;  %v6635_v48 = vpop.f32.mrf.mxu0 }
 0x43b   : > { %2988 = vmatmul.bf16.gmra.mxu3 %v6554_v30  ;;  %v3140_v20 = vsel %vm3138_vm10, %v3093_v27, %v3095_v42  ;;  %v7129_v30 = vld [vmem:[#allocation35_spill] sm:$0xff]  ;;  %v6642_v62 = vpop.permute.xlu2 %3349 }
 0x43c   : > { %3215 = vmatpush.bf16.msrb.mxu2 %v3140_v20  ;;  %v1880_v37 = vadd.f32 %v7130_v12, %v7129_v30  ;;  %v7131_v20 = vld [vmem:[#allocation38_spill] sm:$0xff] }
 0x43d   : > { %2794 = vmatmul.bf16.gmra.mxu1 %v6475_v26 }
 0x43e   : > { %v2319_v47 = vpop.f32.mrf.mxu3  ;;  %v2112_v52 = vadd.f32 %v6362_v59, %v1880_v37 }
 0x43f   : > { %v2342_v24 = vadd.f32 %v2319_v47, %v6329_v46  ;;  %v7132_v47 = vld [vmem:[#allocation37_spill] sm:$0xff] }
 0x441   : > { %v3366_v11 = vpop.permute.xlu1 %3365  ;;  %3027 = vmatmul.bf16.gmra.mxu0 %v6617_v18 }
 0x442   : > { %v3386_v36 = vsel %vm3371_vm11, %v3366_v11, %v6608_v51  ;;  %v3091_v22 = vpop.permute.xlu0 %3090  ;;  %v1885_v11 = vadd.f32 %v7132_v47, %v7131_v20  ;;  %v1890_v47 = vadd.f32 %v6217_v55, %v6222_v41  ;;  %v6716_v55 = vld [vmem:[%s7048_s4 + $0xf0] sm:$0xff] }
 0x443   : > { %3412 = vmatpush.bf16.msrb.mxu0 %v3386_v36  ;;  %v3139_v26 = vsel %vm3138_vm10, %v3091_v22, %v3093_v27  ;;  %v3336_v36 = vpop.permute.xlu2 %3335 }
 0x444   : > { %3186 = vmatpush.bf16.msra.mxu1 %v3139_v26 }
 0x446   : > { %v2321_v46 = vpop.f32.mrf.mxu3 }
 0x447   : > { %v2345_v35 = vadd.f32 %v2321_v46, %v2112_v52  ;;  %v6680_v52 = vld [vmem:[%s7048_s4 + $0xe8] sm:$0xff] }
 0x449   : > { %v6644_v44 = vpop.permute.xlu1 %3361 }
 0x44a   : > { %v2518_v14 = vpop.f32.mrf.mxu1  ;;  %v3360_v0 = vpop.permute.xlu0 %3359  ;;  %3216 = vmatmul.bf16.vlgmr.msrb.gmra.mxu2 %v6640_v29 }
 0x44b   : > { %v2568_v34 = vadd.f32 %v2518_v14, %v6488_v21  ;;  %2993 = vmatmul.bf16.gmra.mxu3 %v6589_v7  ;;  %v3384_v59 = vsel %vm3371_vm11, %v3360_v0, %v6644_v44 }
 0x44c   : > { %3413 = vmatpush.bf16.msrb.mxu0 %v3384_v59 }
 0x44d   : > { %3187 = vmatmul.bf16.vlgmr.msra.gmra.mxu1 %v6640_v29  ;;  %v2547_v19 = vpop.f32.mrf.mxu2 }
 0x44e   : > { %v2324_v8 = vpop.f32.mrf.mxu3  ;;  %v6652_v50 = vadd.f32 %v2547_v19, %v2336_v63  ;;  %v2751_v40 = vpop.f32.mrf.mxu0 }
 0x44f   : > { %v6655_v16 = vadd.f32 %v2324_v8, %v6393_v33  ;;  %v6657_v21 = vadd.f32 %v2751_v40, %v2568_v34  ;;  %v2118_v33 = vadd.f32 %v6420_v39, %v1885_v11  ;;  %v6690_v34 = vpop.permute.xlu2 %3331 }
 0x451   : > { %v3348_v25 = vpop.permute.xlu1 %3347 }
 0x452   : > { %v2520_v42 = vpop.f32.mrf.mxu1  ;;  %v6662_v27 = vpop.permute.xlu0 %3355  ;;  %v3380_v26 = vsel %vm3371_vm11, %v3348_v25, %v6642_v62 }
 0x453   : > { %v6660_v7 = vadd.f32 %v2520_v42, %v6510_v32  ;;  %v3382_v63 = vsel %vm3371_vm11, %v3354_v61, %v6662_v27 }
 0x454   : > { %3414 = vmatpush.bf16.msrb.mxu0 %v3382_v63 }
 0x455   : > { %v2549_v22 = vpop.f32.mrf.mxu2 }
 0x456   : > { %v2326_v30 = vpop.f32.mrf.mxu3  ;;  %v6669_v12 = vadd.f32 %v2549_v22, %v2339_v28  ;;  %v6673_v32 = vpop.f32.mrf.mxu0 }
 0x457   : > { %v6671_v37 = vadd.f32 %v2326_v30, %v2118_v33  ;;  %v6718_v41 = vpop.permute.xlu2 %3325 }
 0x458   : > { %3415 = vmatpush.bf16.msrb.mxu0 %v3380_v26 }
 0x459   : > { %v6682_v46 = vpop.permute.xlu1 %3343 }
 0x45a   : > { %v2523_v61 = vpop.f32.mrf.mxu1  ;;  %v3342_v28 = vpop.permute.xlu0 %3341  ;;  %3221 = vmatmul.bf16.gmra.mxu2 %v6680_v52 }
 0x45b   : > { %v2574_v39 = vadd.f32 %v2523_v61, %v6533_v31  ;;  %2998 = vmatmul.bf16.gmra.mxu3 %v6617_v18  ;;  %v3378_v14 = vsel %vm3371_vm11, %v3342_v28, %v6682_v46 }
 0x45c   : > { %3416 = vmatpush.bf16.msrb.mxu0 %v3378_v14  ;;  %v6733_v14 = vld [vmem:[%s7048_s4 + $0x100] sm:$0xff] }
 0x45d   : > { %3192 = vmatmul.bf16.gmra.mxu1 %v6680_v52  ;;  %v2552_v0 = vpop.f32.mrf.mxu2 }
 0x45e   : > { %v2329_v59 = vpop.f32.mrf.mxu3  ;;  %v6692_v19 = vadd.f32 %v2552_v0, %v2342_v24  ;;  %v2756_v31 = vpop.f32.mrf.mxu0  ;;  %v2124_v24 = vadd.f32 %v6463_v60, %v1890_v47  ;;  %v2337_v47 = vadd.f32 %v6298_v4, %v6291_v13 }
 0x45f   : > { %v6695_v8 = vadd.f32 %v2329_v59, %v6443_v10  ;;  %v6697_v40 = vadd.f32 %v2756_v31, %v2574_v39 }
 0x461   : > { %v3330_v18 = vpop.permute.xlu1 %3329 }
 0x462   : > { %v2525_v42 = vpop.f32.mrf.mxu1  ;;  %v6700_v20 = vpop.permute.xlu0 %3337 }
 0x463   : > { %v2577_v25 = vadd.f32 %v2525_v42, %v6556_v57  ;;  %v3376_v11 = vsel %vm3371_vm11, %v3336_v36, %v6700_v20  ;;  %v3374_v57 = vsel %vm3371_vm11, %v3330_v18, %v6690_v34 }
 0x464   : > { %3417 = vmatpush.bf16.msrb.mxu0 %v3376_v11 }
 0x465   : > { %v2554_v10 = vpop.f32.mrf.mxu2 }
 0x466   : > { %v2331_v63 = vpop.f32.mrf.mxu3  ;;  %v6707_v33 = vadd.f32 %v2554_v10, %v2345_v35  ;;  %v2758_v30 = vpop.f32.mrf.mxu0 }
 0x467   : > { %v6709_v22 = vadd.f32 %v2331_v63, %v2124_v24  ;;  %v6720_v36 = vadd.f32 %v2758_v30, %v2577_v25 }
 0x468   : > { %3418 = vmatpush.bf16.msrb.mxu0 %v3374_v57 }
 0x469   : > { %v3324_v26 = vpop.permute.xlu1 %3323 }
 0x46a   : > { %v2528_v60 = vpop.f32.mrf.mxu1  ;;  %v3370_v61 = vpop.permute.xlu0 %3369  ;;  %v3372_v39 = vsel %vm3371_vm11, %v3324_v26, %v6718_v41  ;;  %3226 = vmatmul.bf16.gmra.mxu2 %v6716_v55 }
 0x46b   : > { %v2580_v35 = vadd.f32 %v2528_v60, %v6577_v5  ;;  %3245 = vmatmul.bf16.vlgmr.msra.gmra.mxu3 %v6640_v29  ;;  %v3387_v28 = vsel %vm3371_vm11, %v6608_v51, %v3370_v61  ;;  %3470 = vmatpush.bf16.msra.mxu2 %v3370_v61  ;;  %v6773_v60 = vld [vmem:[%s7048_s4 + $0x108] sm:$0xff] }
 0x46c   : > { %4310 = vmatpush.bf16.msrb.mxu3 %v3370_v61  ;;  %3419 = vmatpush.bf16.msrb.mxu0 %v3372_v39 }
 0x46d   : > { %3197 = vmatmul.bf16.gmra.mxu1 %v6716_v55  ;;  %v2557_v5 = vpop.f32.mrf.mxu2 }
 0x46e   : > { %4302 = vmatpush.bf16.msrb.mxu1 %v3387_v28  ;;  %v2722_v0 = vpop.f32.mrf.mxu3  ;;  %v6736_v59 = vadd.f32 %v2557_v5, %v6655_v16  ;;  %v2761_v51 = vpop.f32.mrf.mxu0 }
 0x46f   : > { %v6739_v29 = vadd.f32 %v2722_v0, %v6493_v43  ;;  %3420 = vmatmul.bf16.vlgmr.msrb.gmra.mxu0 %v6733_v14  ;;  %v6742_v31 = vadd.f32 %v2761_v51, %v2580_v35  ;;  %v2570_v43 = vadd.f32 %v6516_v6, %v2337_v47  ;;  %v3352_v6 = vpop.permute.xlu2 %3351 }
 0x470   : > { %3441 = vmatpush.bf16.msra.mxu0 %v3387_v28 }
 0x471   : > { %v3358_v11 = vpop.permute.xlu1 %3357 }
 0x472   : > { %v2530_v42 = vpop.f32.mrf.mxu1  ;;  %v3364_v25 = vpop.permute.xlu0 %3363  ;;  %v3383_v4 = vsel %vm3371_vm11, %v6662_v27, %v3358_v11  ;;  %v3381_v27 = vsel %vm3371_vm11, %v6642_v62, %v3352_v6 }
 0x473   : > { %v2583_v18 = vadd.f32 %v2530_v42, %v6591_v9  ;;  %3471 = vmatpush.bf16.msra.mxu2 %v3364_v25  ;;  %4311 = vmatpush.bf16.msrb.mxu3 %v3364_v25  ;;  %v3385_v16 = vsel %vm3371_vm11, %v6644_v44, %v3364_v25  ;;  %v6760_v44 = vld [vmem:[%s7048_s4 + $0xf8] sm:$0xff] }
 0x474   : > { %3442 = vmatpush.bf16.msra.mxu0 %v3385_v16  ;;  %4303 = vmatpush.bf16.msrb.mxu1 %v3385_v16 }
 0x475   : > { %v2559_v24 = vpop.f32.mrf.mxu2 }
 0x476   : > { %v2724_v10 = vpop.f32.mrf.mxu3  ;;  %v6751_v63 = vadd.f32 %v2559_v24, %v6671_v37  ;;  %v2763_v13 = vpop.f32.mrf.mxu0 }
 0x477   : > { %v6753_v9 = vadd.f32 %v2724_v10, %v2570_v43  ;;  %3472 = vmatpush.bf16.msra.mxu2 %v3358_v11  ;;  %4312 = vmatpush.bf16.msrb.mxu3 %v3358_v11  ;;  %v6762_v30 = vadd.f32 %v2763_v13, %v2583_v18  ;;  %v3334_v18 = vpop.permute.xlu2 %3333  ;;  %v4292_v43 = vld [vmem:[%s7048_s4 + $0x110] sm:$0xff] }
 0x478   : > { %3443 = vmatpush.bf16.msra.mxu0 %v3383_v4  ;;  %4304 = vmatpush.bf16.msrb.mxu1 %v3383_v4 }
 0x479   : > { %v3340_v5 = vpop.permute.xlu1 %3339 }
 0x47a   : > { %v2533_v37 = vpop.f32.mrf.mxu1  ;;  %3231 = vmatmul.bf16.gmra.mxu2 %v6760_v44  ;;  %v3346_v26 = vpop.permute.xlu0 %3345 }
 0x47b   : > { %v2586_v57 = vadd.f32 %v2533_v37, %v6604_v38  ;;  %3250 = vmatmul.bf16.gmra.mxu3 %v6680_v52  ;;  %3473 = vmatpush.bf16.msra.mxu2 %v3352_v6  ;;  %v3379_v28 = vsel %vm3371_vm11, %v6682_v46, %v3346_v26 }
 0x47c   : > { %4313 = vmatpush.bf16.msrb.mxu3 %v3352_v6  ;;  %3444 = vmatpush.bf16.msra.mxu0 %v3381_v27  ;;  %v2349_v6 = vadd.f32 %v6423_v56, %v6414_v1  ;;  %v4293_v1 = vld [vmem:[%s7048_s4 + $0x118] sm:$0xff] }
 0x47d   : > { %3202 = vmatmul.bf16.gmra.mxu1 %v6760_v44  ;;  %v2562_v38 = vpop.f32.mrf.mxu2 }
 0x47e   : > { %4305 = vmatpush.bf16.msrb.mxu1 %v3381_v27  ;;  %v2727_v35 = vpop.f32.mrf.mxu3  ;;  %v6776_v61 = vadd.f32 %v2562_v38, %v6695_v8  ;;  %v2766_v39 = vpop.f32.mrf.mxu0  ;;  %v3377_v8 = vsel %vm3371_vm11, %v6700_v20, %v3340_v5  ;;  %v2582_v37 = vadd.f32 %v6597_v54, %v2349_v6 }
 0x47f   : > { %v6779_v52 = vadd.f32 %v2727_v35, %v6541_v15  ;;  %3425 = vmatmul.bf16.gmra.mxu0 %v6773_v60  ;;  %3474 = vmatpush.bf16.msra.mxu2 %v3346_v26  ;;  %v6782_v62 = vadd.f32 %v2766_v39, %v2586_v57  ;;  %v2343_v15 = vadd.f32 %v6365_v3, %v6356_v23 }
 0x480   : > { %4314 = vmatpush.bf16.msrb.mxu3 %v3346_v26  ;;  %3445 = vmatpush.bf16.msra.mxu0 %v3379_v28  ;;  %v3375_v23 = vsel %vm3371_vm11, %v6690_v34, %v3334_v18 }
 0x481   : > { %v2576_v42 = vadd.f32 %v6562_v2, %v2343_v15 }
 0x482   : > { %v2535_v0 = vpop.f32.mrf.mxu1  ;;  %4306 = vmatpush.bf16.msrb.mxu1 %v3379_v28  ;;  %v3328_v3 = vpop.permute.xlu0 %3327 }
 0x483   : > { %v2589_v51 = vadd.f32 %v2535_v0, %v6619_v58  ;;  %3475 = vmatpush.bf16.msra.mxu2 %v3340_v5  ;;  %v2355_v0 = vadd.f32 %v6626_v17, %v6459_v49 }
 0x484   : > { %4315 = vmatpush.bf16.msrb.mxu3 %v3340_v5  ;;  %3446 = vmatpush.bf16.msra.mxu0 %v3377_v8 }
 0x485   : > { %v2564_v46 = vpop.f32.mrf.mxu2 }
 0x486   : > { %4307 = vmatpush.bf16.msrb.mxu1 %v3377_v8  ;;  %v2729_v25 = vpop.f32.mrf.mxu3  ;;  %v6793_v47 = vadd.f32 %v2564_v46, %v6709_v22  ;;  %v2768_v16 = vpop.f32.mrf.mxu0  ;;  %v3373_v22 = vsel %vm3371_vm11, %v6718_v41, %v3328_v3 }
 0x487   : > { %v2809_v58 = vadd.f32 %v2729_v25, %v2576_v42  ;;  %3476 = vmatpush.bf16.msra.mxu2 %v3334_v18  ;;  %v6795_v11 = vadd.f32 %v2768_v16, %v2589_v51  ;;  %v2588_v51 = vadd.f32 %v6635_v48, %v2355_v0 }
 0x488   : > { %4316 = vmatpush.bf16.msrb.mxu3 %v3334_v18  ;;  %3447 = vmatpush.bf16.msra.mxu0 %v3375_v23 }
 0x48a   : > { %v2780_v2 = vpop.f32.mrf.mxu1  ;;  %4308 = vmatpush.bf16.msrb.mxu1 %v3375_v23 }
 0x48b   : > { %v2802_v20 = vadd.f32 %v2780_v2, %v6652_v50  ;;  %3255 = vmatmul.bf16.gmra.mxu3 %v6716_v55  ;;  %3477 = vmatpush.bf16.msra.mxu2 %v3328_v3 }
 0x48c   : > { %4317 = vmatpush.bf16.msrb.mxu3 %v3328_v3  ;;  %3448 = vmatpush.bf16.msra.mxu0 %v3373_v22 }
 0x48d   : > { %v2955_v34 = vpop.f32.mrf.mxu2 }
 0x48e   : > { %4309 = vmatpush.bf16.msrb.mxu1 %v3373_v22  ;;  %v2732_v24 = vpop.f32.mrf.mxu3  ;;  %v6807_v10 = vadd.f32 %v2955_v34, %v6739_v29  ;;  %3478 = vmatmul.bf16.vlgmr.msra.gmra.mxu2 %v6733_v14  ;;  %v3013_v55 = vpop.f32.mrf.mxu0 }
 0x48f   : > { %v2812_v50 = vadd.f32 %v2732_v24, %v6582_v53  ;;  %3430 = vmatmul.bf16.gmra.mxu0 %v4292_v43  ;;  %v6811_v13 = vadd.f32 %v3013_v55, %v2802_v20 }
 0x491   : > { %3454 = vmatmul.bf16.vlgmr.msrb.gmra.mxu1 %v6773_v60 }
 0x492   : > { %v2782_v41 = vpop.f32.mrf.mxu1 }
 0x493   : > { %v2805_v4 = vadd.f32 %v2782_v41, %v6669_v12 }
 0x495   : > { %v2957_v29 = vpop.f32.mrf.mxu2 }
 0x496   : > { %v2734_v57 = vpop.f32.mrf.mxu3  ;;  %v6819_v53 = vadd.f32 %v2957_v29, %v6753_v9  ;;  %v3015_v26 = vpop.f32.mrf.mxu0 }
 0x497   : > { %v2815_v27 = vadd.f32 %v2734_v57, %v2582_v37  ;;  %v6821_v38 = vadd.f32 %v3015_v26, %v2805_v4 }
 0x49a   : > { %v2785_v35 = vpop.f32.mrf.mxu1 }
 0x49b   : > { %v2808_v39 = vadd.f32 %v2785_v35, %v6692_v19  ;;  %3260 = vmatmul.bf16.gmra.mxu3 %v6760_v44 }
 0x49d   : > { %v2960_v56 = vpop.f32.mrf.mxu2 }
 0x49e   : > { %v2737_v54 = vpop.f32.mrf.mxu3  ;;  %v6829_v12 = vadd.f32 %v2960_v56, %v6779_v52  ;;  %3483 = vmatmul.bf16.gmra.mxu2 %v6773_v60  ;;  %v3018_v28 = vpop.f32.mrf.mxu0 }
 0x49f   : > { %v2818_v9 = vadd.f32 %v2737_v54, %v6612_v45  ;;  %3435 = vmatmul.bf16.gmra.mxu0 %v4293_v1  ;;  %v6833_v5 = vadd.f32 %v3018_v28, %v2808_v39 }
 0x4a1   : > { %3459 = vmatmul.bf16.gmra.mxu1 %v4292_v43 }
 0x4a2   : > { %v2787_v19 = vpop.f32.mrf.mxu1 }
 0x4a3   : > { %v2811_v44 = vadd.f32 %v2787_v19, %v6707_v33 }
 0x4a5   : > { %v2962_v15 = vpop.f32.mrf.mxu2 }
 0x4a6   : > { %v2739_v52 = vpop.f32.mrf.mxu3  ;;  %v6839_v8 = vadd.f32 %v2962_v15, %v2809_v58  ;;  %v3020_v42 = vpop.f32.mrf.mxu0 }
 0x4a7   : > { %v2821_v45 = vadd.f32 %v2739_v52, %v2588_v51  ;;  %v6841_v60 = vadd.f32 %v3020_v42, %v2811_v44 }
 0x4aa   : > { %v2790_v18 = vpop.f32.mrf.mxu1 }
 0x4ab   : > { %v2814_v46 = vadd.f32 %v2790_v18, %v6736_v59  ;;  %3493 = vmatmul.bf16.vlgmr.msrb.gmra.mxu3 %v4293_v1  ;;  %v2804_v59 = vadd.f32 %v6673_v32, %v6660_v7 }
 0x4ad   : > { %v2965_v25 = vpop.f32.mrf.mxu2 }
 0x4ae   : > { %v2984_v16 = vpop.f32.mrf.mxu3  ;;  %v6844_v33 = vadd.f32 %v2965_v25, %v2812_v50  ;;  %3488 = vmatmul.bf16.gmra.mxu2 %v4292_v43  ;;  %v3023_v17 = vpop.f32.mrf.mxu0 }
 0x4af   : > { %v3034_v49 = vadd.f32 %v2984_v16, %v6657_v21  ;;  %3449 = vmatmul.bf16.vlgmr.msra.gmra.mxu0 %v6733_v14  ;;  %v6848_v48 = vadd.f32 %v3023_v17, %v2814_v46 }
 0x4b1   : > { %3464 = vmatmul.bf16.gmra.mxu1 %v4293_v1 }
 0x4b2   : > { %v2792_v58 = vpop.f32.mrf.mxu1 }
 0x4b3   : > { %v2817_v23 = vadd.f32 %v2792_v58, %v6751_v63 }
 0x4b5   : > { %v2967_v3 = vpop.f32.mrf.mxu2 }
 0x4b6   : > { %v2986_v2 = vpop.f32.mrf.mxu3  ;;  %v6853_v20 = vadd.f32 %v2967_v3, %v2815_v27  ;;  %v3025_v34 = vpop.f32.mrf.mxu0 }
 0x4b7   : > { %v3037_v22 = vadd.f32 %v2986_v2, %v2804_v59  ;;  %v6855_v21 = vadd.f32 %v3025_v34, %v2817_v23  ;;  %v6906_v3 = vpop.permute.xlu2 %3538 }
 0x4ba   : > { %v2795_v43 = vpop.f32.mrf.mxu1 }
 0x4bb   : > { %v2820_v14 = vadd.f32 %v2795_v43, %v6776_v61 }
 0x4bd   : > { %v2970_v24 = vpop.f32.mrf.mxu2 }
 0x4be   : > { %v2989_v50 = vpop.f32.mrf.mxu3  ;;  %v6858_v55 = vadd.f32 %v2970_v24, %v2818_v9  ;;  %v3028_v41 = vpop.f32.mrf.mxu0 }
 0x4bf   : > { %v6861_v63 = vadd.f32 %v2989_v50, %v6697_v40  ;;  %v6863_v7 = vadd.f32 %v3028_v41, %v2820_v14  ;;  %v6913_v50 = vpop.permute.xlu0 %3543 }
 0x4c2   : > { %v2797_v32 = vpop.f32.mrf.mxu1 }
 0x4c3   : > { %v2823_v4 = vadd.f32 %v2797_v32, %v6793_v47 }
 0x4c5   : > { %v2972_v6 = vpop.f32.mrf.mxu2 }
 0x4c6   : > { %v2991_v37 = vpop.f32.mrf.mxu3  ;;  %v6866_v29 = vadd.f32 %v2972_v6, %v2821_v45  ;;  %v3030_v61 = vpop.f32.mrf.mxu0 }
 0x4c7   : > { %v6869_v57 = vadd.f32 %v2991_v37, %v6720_v36  ;;  %v6871_v27 = vadd.f32 %v3030_v61, %v2823_v4 }
 0x4ca   : > { %v3188_v26 = vpop.f32.mrf.mxu1 }
 0x4cb   : > { %v3266_v42 = vadd.f32 %v3188_v26, %v6807_v10 }
 0x4cd   : > { %v3217_v35 = vpop.f32.mrf.mxu2 }
 0x4ce   : > { %v2994_v40 = vpop.f32.mrf.mxu3  ;;  %v6873_v39 = vadd.f32 %v3217_v35, %v3034_v49 }
 0x4cf   : > { %v6876_v1 = vadd.f32 %v2994_v40, %v6742_v31 }
 0x4d2   : > { %v3190_v47 = vpop.f32.mrf.mxu1 }
 0x4d5   : > { %v3219_v56 = vpop.f32.mrf.mxu2 }
 0x4d6   : > { %v2996_v54 = vpop.f32.mrf.mxu3  ;;  %v6878_v9 = vadd.f32 %v3219_v56, %v3037_v22 }
 0x4d7   : > { %v6881_v36 = vadd.f32 %v2996_v54, %v6762_v30 }
 0x4da   : > { %v3193_v28 = vpop.f32.mrf.mxu1 }
 0x4db   : > { %v3272_v34 = vadd.f32 %v3193_v28, %v6829_v12 }
 0x4dd   : > { %v3222_v19 = vpop.f32.mrf.mxu2 }
 0x4de   : > { %v2999_v44 = vpop.f32.mrf.mxu3 }
 0x4df   : > { %v6884_v0 = vadd.f32 %v2999_v44, %v6782_v62  ;;  %v6897_v62 = vpop.permute.xlu1 %3533 }
 0x4e2   : > { %v3195_v51 = vpop.f32.mrf.mxu1 }
 0x4e3   : > { %v3275_v6 = vadd.f32 %v3195_v51, %v6839_v8  ;;  %v3273_v8 = vadd.f32 %v3222_v19, %v6861_v63 }
 0x4e5   : > { %v6886_v15 = vpop.f32.mrf.mxu2 }
 0x4e6   : > { %v3001_v31 = vpop.f32.mrf.mxu3  ;;  %v3276_v19 = vadd.f32 %v6886_v15, %v6869_v57 }
 0x4e7   : > { %v6889_v52 = vadd.f32 %v3001_v31, %v6795_v11  ;;  %v3269_v11 = vadd.f32 %v3190_v47, %v6819_v53  ;;  %v6924_v35 = vpop.permute.xlu1 %3548 }
 0x4ea   : > { %v3198_v45 = vpop.f32.mrf.mxu1 }
 0x4eb   : > { %v3278_v54 = vadd.f32 %v3198_v45, %v6844_v33 }
 0x4ec   : > { %v3421_v30 = vpop.f32.mrf.mxu0 }
 0x4ed   : > { %v3499_v18 = vadd.f32 %v3421_v30, %v3266_v42  ;;  %v6895_v46 = vpop.f32.mrf.mxu2  ;;  %v6934_v42 = vpop.permute.xlu2 %3553 }
 0x4ee   : > { %v3246_v25 = vpop.f32.mrf.mxu3 }
 0x4ef   : > { %v3571_v16 = vadd.f32 %v6897_v62, %v3499_v18 }
 0x4f1   : > { %v3595_v49 = vmax.f32 %v3571_v16, 0.0  ;;  %v3268_v16 = vadd.f32 %v3246_v25, %v6811_v13 }
 0x4f2   : > { %v3200_v17 = vpop.f32.mrf.mxu1 }
 0x4f3   : > { %3619 = vst [vmem:[%s6901_s18] sm:$0xff] %v3595_v49  ;;  %v3281_v63 = vadd.f32 %v3200_v17, %v6853_v20 }
 0x4f4   : > { %v3423_v10 = vpop.f32.mrf.mxu0 }
 0x4f5   : > { %v3502_v58 = vadd.f32 %v3423_v10, %v3269_v11  ;;  %v6904_v23 = vpop.f32.mrf.mxu2 }
 0x4f6   : > { %v3248_v59 = vpop.f32.mrf.mxu3 }
 0x4f7   : > { %v3574_v2 = vadd.f32 %v6906_v3, %v3502_v58  ;;  %v3271_v17 = vadd.f32 %v3248_v59, %v6821_v38 }
 0x4f9   : > { %v3598_v22 = vmax.f32 %v3574_v2, 0.0 }
 0x4fa   : > { %v3203_v53 = vpop.f32.mrf.mxu1 }
 0x4fb   : > { %3623 = vst [vmem:[%s6901_s18 + $0x18] sm:$0xff] %v3598_v22 }
 0x4fc   : > { %v3426_v43 = vpop.f32.mrf.mxu0 }
 0x4fd   : > { %v3505_v14 = vadd.f32 %v3426_v43, %v3272_v34  ;;  %v6916_v32 = vpop.f32.mrf.mxu2  ;;  %v6947_v34 = vpop.permute.xlu0 %3558 }
 0x4fe   : > { %v6911_v24 = vpop.f32.mrf.mxu3 }
 0x4ff   : > { %v3577_v41 = vadd.f32 %v6913_v50, %v3505_v14 }
 0x501   : > { %v3601_v4 = vmax.f32 %v3577_v41, 0.0 }
 0x502   : > { %v6920_v61 = vpop.f32.mrf.mxu1 }
 0x503   : > { %3626 = vst [vmem:[%s6901_s18 + $0x30] sm:$0xff] %v3601_v4 }
 0x504   : > { %v3428_v37 = vpop.f32.mrf.mxu0 }
 0x505   : > { %v3508_v12 = vadd.f32 %v3428_v37, %v3275_v6  ;;  %v6927_v56 = vpop.f32.mrf.mxu2  ;;  %v3284_v37 = vadd.f32 %v3203_v53, %v6858_v55  ;;  %v3274_v55 = vadd.f32 %v6911_v24, %v6833_v5 }
 0x506   : > { %v6922_v26 = vpop.f32.mrf.mxu3 }
 0x507   : > { %v3580_v40 = vadd.f32 %v6924_v35, %v3508_v12  ;;  %v3279_v12 = vadd.f32 %v6895_v46, %v6876_v1 }
 0x509   : > { %v3604_v47 = vmax.f32 %v3580_v40, 0.0 }
 0x50b   : > { %3629 = vst [vmem:[%s6901_s18 + $0x48] sm:$0xff] %v3604_v47 }
 0x50c   : > { %v3431_v28 = vpop.f32.mrf.mxu0 }
 0x50d   : > { %v3511_v44 = vadd.f32 %v3431_v28, %v3278_v54 }
 0x50e   : > { %v3455_v51 = vpop.f32.mrf.mxu1  ;;  %v6932_v31 = vpop.f32.mrf.mxu3 }
 0x50f   : > { %v3506_v30 = vadd.f32 %v3455_v51, %v3273_v8  ;;  %v3583_v18 = vadd.f32 %v6934_v42, %v3511_v44  ;;  %v3564_v8 = vpop.permute.xlu1 %3563 }
 0x511   : > { %v3578_v49 = vadd.f32 %v6913_v50, %v3506_v30  ;;  %v3607_v33 = vmax.f32 %v3583_v18, 0.0  ;;  %v3479_v45 = vpop.f32.mrf.mxu2 }
 0x512   : > { %v3501_v10 = vadd.f32 %v3479_v45, %v3268_v16  ;;  %v3287_v16 = vadd.f32 %v6920_v61, %v6866_v29  ;;  %v3277_v29 = vadd.f32 %v6922_v26, %v6841_v60 }
 0x513   : > { %v3602_v11 = vmax.f32 %v3578_v49, 0.0  ;;  %3632 = vst [vmem:[%s6901_s18 + $0x60] sm:$0xff] %v3607_v33  ;;  %v3282_v49 = vadd.f32 %v6904_v23, %v6881_v36 }
 0x514   : > { %v3573_v58 = vadd.f32 %v6897_v62, %v3501_v10  ;;  %v3433_v2 = vpop.f32.mrf.mxu0  ;;  %v3569_v10 = vpop.permute.xlu2 %3568 }
 0x515   : > { %3627 = vst [vmem:[%s6901_s18 + $0x38] sm:$0xff] %v3602_v11  ;;  %v3514_v13 = vadd.f32 %v3433_v2, %v3281_v63 }
 0x516   : > { %v3457_v25 = vpop.f32.mrf.mxu1  ;;  %v6945_v22 = vpop.f32.mrf.mxu3  ;;  %v3597_v43 = vmax.f32 %v3573_v58, 0.0 }
 0x517   : > { %v3509_v14 = vadd.f32 %v3457_v25, %v3276_v19  ;;  %v3586_v20 = vadd.f32 %v6947_v34, %v3514_v13  ;;  %v3285_v13 = vadd.f32 %v6916_v32, %v6884_v0  ;;  %v3280_v0 = vadd.f32 %v6932_v31, %v6848_v48 }
 0x518   : > { %3622 = vst.msk [vmem:[%s6901_s18 + $0x10] sm:$0xff] %vm3621_vm12, %v3597_v43 }
 0x519   : > { %v3581_v57 = vadd.f32 %v6924_v35, %v3509_v14  ;;  %v3610_v15 = vmax.f32 %v3586_v20, 0.0  ;;  %v3481_v41 = vpop.f32.mrf.mxu2 }
 0x51a   : > { %v3504_v6 = vadd.f32 %v3481_v41, %v3271_v17 }
 0x51b   : > { %v3605_v4 = vmax.f32 %v3581_v57, 0.0  ;;  %3635 = vst [vmem:[%s6901_s18 + $0x78] sm:$0xff] %v3610_v15 }
 0x51c   : > { %v3576_v40 = vadd.f32 %v6906_v3, %v3504_v6  ;;  %v3436_v47 = vpop.f32.mrf.mxu0 }
 0x51d   : > { %3630 = vst [vmem:[%s6901_s18 + $0x50] sm:$0xff] %v3605_v4  ;;  %v3517_v38 = vadd.f32 %v3436_v47, %v3284_v37 }
 0x51e   : > { %v3460_v59 = vpop.f32.mrf.mxu1  ;;  %v3261_v54 = vpop.f32.mrf.mxu3  ;;  %v3600_v28 = vmax.f32 %v3576_v40, 0.0 }
 0x51f   : > { %v3512_v44 = vadd.f32 %v3460_v59, %v3279_v12  ;;  %v3589_v51 = vadd.f32 %v3564_v8, %v3517_v38  ;;  %v3286_v25 = vadd.f32 %v3261_v54, %v6863_v7  ;;  %v3288_v12 = vadd.f32 %v6927_v56, %v6889_v52 }
 0x520   : > { %3625 = vst.msk [vmem:[%s6901_s18 + $0x28] sm:$0xff] %vm3621_vm12, %v3600_v28 }
 0x521   : > { %v3584_v1 = vadd.f32 %v6934_v42, %v3512_v44  ;;  %v3613_v46 = vmax.f32 %v3589_v51, 0.0  ;;  %v3484_v53 = vpop.f32.mrf.mxu2 }
 0x522   : > { %v3507_v18 = vadd.f32 %v3484_v53, %v3274_v55 }
 0x523   : > { %v3608_v30 = vmax.f32 %v3584_v1, 0.0  ;;  %3638 = vst [vmem:[%s6901_s18 + $0x90] sm:$0xff] %v3613_v46 }
 0x524   : > { %v3579_v33 = vadd.f32 %v6913_v50, %v3507_v18  ;;  %v3438_v5 = vpop.f32.mrf.mxu0 }
 0x525   : > { %3633 = vst [vmem:[%s6901_s18 + $0x68] sm:$0xff] %v3608_v30  ;;  %v3520_v24 = vadd.f32 %v3438_v5, %v3287_v16 }
 0x526   : > { %v3462_v45 = vpop.f32.mrf.mxu1  ;;  %v3263_v11 = vpop.f32.mrf.mxu3  ;;  %v3603_v63 = vmax.f32 %v3579_v33, 0.0 }
 0x527   : > { %v3515_v19 = vadd.f32 %v3462_v45, %v3282_v49  ;;  %v3592_v58 = vadd.f32 %v3569_v10, %v3520_v24 }
 0x528   : > { %3628 = vst.msk [vmem:[%s6901_s18 + $0x40] sm:$0xff] %vm3621_vm12, %v3603_v63 }
 0x529   : > { %v3587_v36 = vadd.f32 %v6947_v34, %v3515_v19  ;;  %v3616_v23 = vmax.f32 %v3592_v58, 0.0  ;;  %v3486_v61 = vpop.f32.mrf.mxu2 }
 0x52a   : > { %v3510_v2 = vadd.f32 %v3486_v61, %v3277_v29 }
 0x52b   : > { %v3611_v50 = vmax.f32 %v3587_v36, 0.0  ;;  %3641 = vst [vmem:[%s6901_s18 + $0xa8] sm:$0xff] %v3616_v23 }
 0x52c   : > { %v3582_v43 = vadd.f32 %v6924_v35, %v3510_v2  ;;  %v3450_v14 = vpop.f32.mrf.mxu0 }
 0x52d   : > { %3636 = vst [vmem:[%s6901_s18 + $0x80] sm:$0xff] %v3611_v50  ;;  %v3500_v60 = vadd.f32 %v3450_v14, %v6873_v39 }
 0x52e   : > { %v3465_v26 = vpop.f32.mrf.mxu1  ;;  %v3494_v20 = vpop.f32.mrf.mxu3  ;;  %v3606_v17 = vmax.f32 %v3582_v43, 0.0 }
 0x52f   : > { %v3518_v57 = vadd.f32 %v3465_v26, %v3285_v13  ;;  %v3519_v15 = vadd.f32 %v3494_v20, %v3286_v25  ;;  %v3572_v41 = vadd.f32 %v6897_v62, %v3500_v60  ;;  %v3289_v62 = vadd.f32 %v3263_v11, %v6871_v27 }
 0x530   : > { %3631 = vst.msk [vmem:[%s6901_s18 + $0x58] sm:$0xff] %vm3621_vm12, %v3606_v17  ;;  %v3283_v27 = vadd.f32 %v6945_v22, %v6855_v21 }
 0x531   : > { %v3590_v7 = vadd.f32 %v3564_v8, %v3518_v57  ;;  %v3591_v32 = vadd.f32 %v3564_v8, %v3519_v15  ;;  %v3596_v35 = vmax.f32 %v3572_v41, 0.0  ;;  %v3489_v39 = vpop.f32.mrf.mxu2 }
 0x532   : > { %v3513_v37 = vadd.f32 %v3489_v39, %v3280_v0 }
 0x533   : > { %v3614_v4 = vmax.f32 %v3590_v7, 0.0  ;;  %v3615_v6 = vmax.f32 %v3591_v32, 0.0  ;;  %3620 = vst [vmem:[%s6901_s18 + $0x8] sm:$0xff] %v3596_v35 }
 0x534   : > { %v3585_v48 = vadd.f32 %v6934_v42, %v3513_v37  ;;  %v3452_v31 = vpop.f32.mrf.mxu0 }
 0x535   : > { %3639 = vst [vmem:[%s6901_s18 + $0x98] sm:$0xff] %v3614_v4  ;;  %v3503_v40 = vadd.f32 %v3452_v31, %v6878_v9 }
 0x536   : > { %3640 = vst.msk [vmem:[%s6901_s18 + $0xa0] sm:$0xff] %vm3621_vm12, %v3615_v6  ;;  %v3467_v47 = vpop.f32.mrf.mxu1  ;;  %v3496_v38 = vpop.f32.mrf.mxu3  ;;  %v3609_v59 = vmax.f32 %v3585_v48, 0.0 }
 0x537   : > { %v3521_v54 = vadd.f32 %v3467_v47, %v3288_v12  ;;  %v3522_v8 = vadd.f32 %v3496_v38, %v3289_v62  ;;  %v3575_v52 = vadd.f32 %v6906_v3, %v3503_v40 }
 0x538   : > { %3634 = vst.msk [vmem:[%s6901_s18 + $0x70] sm:$0xff] %vm3621_vm12, %v3609_v59 }
 0x539   : > { %v3593_v56 = vadd.f32 %v3569_v10, %v3521_v54  ;;  %v3594_v42 = vadd.f32 %v3569_v10, %v3522_v8  ;;  %v3599_v9 = vmax.f32 %v3575_v52, 0.0  ;;  %v3491_v28 = vpop.f32.mrf.mxu2 }
 0x53a   : > { %v3516_v55 = vadd.f32 %v3491_v28, %v3283_v27 }
 0x53b   : > { %v3617_v44 = vmax.f32 %v3593_v56, 0.0  ;;  %v3618_v51 = vmax.f32 %v3594_v42, 0.0  ;;  %3624 = vst [vmem:[%s6901_s18 + $0x20] sm:$0xff] %v3599_v9 }
 0x53c   : > { %v3588_v21 = vadd.f32 %v6947_v34, %v3516_v55 }
 0x53d   : > { %3642 = vst [vmem:[%s6901_s18 + $0xb0] sm:$0xff] %v3617_v44 }
 0x53e   : > { %3643 = vst.msk [vmem:[%s6901_s18 + $0xb8] sm:$0xff] %vm3621_vm12, %v3618_v51  ;;  %v3612_v3 = vmax.f32 %v3588_v21, 0.0 }
 0x540   : > { %3637 = vst.msk [vmem:[%s6901_s18 + $0x88] sm:$0xff] %vm3621_vm12, %v3612_v3 }
 0x541   : > { %4403 = shalt.err (!%p4400_p3)
}
 0x542   : > { %s4451_s20 = smov 384   ;;  %s4452_s18 = smov 24  }
 0x543   : > { %4321 = dma.vmem_to_hbm [thread:$0]  (%p4526_p5), %s3658_s11, 3072, %s3660_s10, %s3645_s12, %s4451_s20, %s4451_s20, %s4452_s18  }
 0x544 PF: > { %p4327_p4 = scmp.ge.s32.totalorder %s4438_s24, 2  ;;  %s3674_s28 = sand.u32 1, %s4426_s21  }
 0x545   : > { %s3675_s25 = scalar_lea.sflag [#allocation4], %s3674_s28 }
 0x546   : > { %p4324_p7 = pnand %p4327_p4, %p4530_p6 }
 0x548   : > { %p4325_p8 = pneg %p4324_p7 }
 0x54a   : > { %4421 = dma.done.wait (%p4325_p8), %s3675_s25, 3072  }
 0x54b   : > { %4423 = vsyncadd (%p4325_p8), %s3675_s25, 4294964224  ;;  %p16_p9 = scmp.ge.s32.totalorder %s4513_s27, 4   ;;  %s7133_s21 = smov %s4430_s22 }
 0x54c   : > { %s7134_s22 = smov %s4434_s23  ;;  %s7135_s23 = smov %s4524_s30 }
 0x54d   : > { %s7136_s24 = smov %s4513_s27  ;;  %18 = sbr.rel (!%p16_p9) target bundleno = 3 (0x3), region = 87 }
 0x552   :  { %3681 = vsyncpa [#allocation4], 1 }
 0x553   :  { %3683 = vsyncpa [#allocation4 + $0x1], 1 }

</bundles_post_ra>
